<compile_context>
chip_gen: v6e
topology: v6e:2x2x1
jax: 0.10.0
libtpu: 0.0.40
codegen_flags: <defaults>
</compile_context>

<pallas_src>
import jax
import jax.numpy as jnp
from jax import lax
from jax.experimental import pallas as pl
from jax.experimental.pallas import tpu as pltpu

LEAK = 0.01      # nn.LeakyReLU default negative_slope
BN_EPS = 1e-5    # nn.BatchNorm2d default eps


def _lrelu(v):
    return jnp.where(v > 0, v, LEAK * v)


def _round_up(v, m):
    return (v + m - 1) // m * m


def _pick_vmem_limit():
    """Per-generation VMEM cap: ~44 MiB on v7x-class (64 MiB physical),
    ~96 MiB on v5e/v6e (128 MiB physical)."""
    try:
        cap = int(pltpu.get_tpu_info().vmem_capacity_bytes)
    except Exception:                      # off-device tracing / older runtime
        cap = 128 * 1024 * 1024
    if cap <= 64 * 1024 * 1024:
        return 44 * 1024 * 1024
    return 96 * 1024 * 1024


def _pick_bands(n, hp_, wp_, target_rows=2048):
    """Number of row-bands per image for stage 1 (wrapper-side tiling).

    Each band owns bh = hp_/nb pooled rows plus a shared 1-row halo in the
    parity planes; this bounds the per-step VMEM working set and provides
    enough grid steps for megacore sharding even when N is 1-2."""
    best = 1
    for nb in range(1, hp_ + 1):
        if hp_ % nb:
            continue
        bh = hp_ // nb
        qi_b = bh * wp_
        if n * nb > 1 and qi_b % 8:        # keep output blocks (8,128)-legal
            continue
        best = nb
        if qi_b <= target_rows:
            break
    return best


# ------------------------------ stage 1 kernel ------------------------------
# One grid step == one (image, row-band) pair.
#   hq_ref : (4, bh+1, wpad, Cin)  parity planes of the zero-padded
#            h = lrelu(bn1(x)); plane p*2+q holds h_pad[2y+p, 2x+q, :].
#   xq_ref : (4*QI, Cin)  raw x in 2x2-quad slab order (transform branch).
#   w3_ref : (9, Cin, Cin) conv3x3 taps (dy*3+dx) as (ci, co) matrices.
# Outputs:
#   y1_ref   : (QI, Cin)   maxpool2(conv3x3(h)) + b3      (residual, pre-BN2)
#   t_ref    : (QI, Cout)  maxpool2(conv1x1(x) + b1t)     (transform branch)
#   stat_ref : (1, 8, Cin) row 0 = sum(y1), row 1 = sum(y1^2)  (BN2 partials)
def _make_stage1_kernel(bh, wp):
    qi = bh * wp

    def kernel(hq_ref, xq_ref, w3_ref, b3_ref, w1t_ref, b1t_ref,
               y1_ref, t_ref, stat_ref):
        cp = hq_ref.shape[-1]
        cop = t_ref.shape[-1]
        mm_dt = w3_ref.dtype                       # f32 (or bf16 if requested)
        taps = [w3_ref[k] for k in range(9)]       # (Cin, Cin) each

        # Accumulate-style 3x3 conv (no im2col scratch).  For pooled pixel
        # (i, j), quad s=(si, sj) and tap (dy, dx) the needed activation is
        # h_pad[2i+si+dy, 2j+sj+dx] = parity plane ((si+dy)&1)*2 + ((sj+dx)&1)
        # shifted by ((si+dy)>>1, (sj+dx)>>1).  Only 16 distinct shifted
        # views; each feeds up to 4 K=Cin matmuls into per-quad accumulators.
        acc = [None, None, None, None]
        for a in range(4):                 # a = si + dy
            for b in range(4):             # b = sj + dx
                pq = (a & 1) * 2 + (b & 1)
                v = hq_ref[pq, pl.ds(a >> 1, bh), pl.ds(b >> 1, wp), :]
                v = v.reshape(qi, cp).astype(mm_dt)
                for dy in range(3):
                    si = a - dy
                    if si < 0 or si > 1:
                        continue
                    for dx in range(3):
                        sj = b - dx
                        if sj < 0 or sj > 1:
                            continue
                        s = si * 2 + sj
                        k = dy * 3 + dx
                        c = jnp.dot(v, taps[k],
                                    preferred_element_type=jnp.float32)
                        acc[s] = c if acc[s] is None else acc[s] + c

        # MaxPool2d(2) == elementwise max over the 4 quad accumulators
        # (per-channel bias commutes with the max).
        y1 = jnp.maximum(jnp.maximum(acc[0], acc[1]),
                         jnp.maximum(acc[2], acc[3])) + b3_ref[...]
        y1_ref[...] = y1.astype(y1_ref.dtype)

        # Partial BN2 statistics (saves a full HBM read pass over y1).
        row_sum = jnp.sum(y1, axis=0, keepdims=True)
        row_ssq = jnp.sum(y1 * y1, axis=0, keepdims=True)
        stat = jnp.concatenate(
            [row_sum, row_ssq, jnp.zeros((6, cp), jnp.float32)], axis=0)
        stat_ref[...] = stat.reshape(1, 8, cp)

        # Transform branch: one 1x1-conv matmul over all 4 quads, then max.
        tz = jnp.dot(xq_ref[...].astype(mm_dt), w1t_ref[...],
                     preferred_element_type=jnp.float32)
        tz = tz.reshape(4, qi, cop)
        t = jnp.maximum(jnp.maximum(tz[0], tz[1]),
                        jnp.maximum(tz[2], tz[3])) + b1t_ref[...]
        t_ref[...] = t.astype(t_ref.dtype)

    return kernel


# ------------------------------ stage 2 kernel ------------------------------
# One grid step == one tile of pooled-pixel rows (pure streaming):
#   out = t + conv1x1(lrelu(bn2(y1)))   (BN2 scale/shift precomputed in JAX)
def _stage2_kernel(y1_ref, t_ref, sc2_ref, sh2_ref, w1r_ref, b1r_ref, o_ref):
    h2 = y1_ref[...] * sc2_ref[...] + sh2_ref[...]
    h2 = jnp.where(h2 > 0, h2, LEAK * h2)
    r = jnp.dot(h2.astype(w1r_ref.dtype), w1r_ref[...],
                preferred_element_type=jnp.float32)
    o_ref[...] = (t_ref[...] + r + b1r_ref[...]).astype(o_ref.dtype)


# --------------------------------- wrapper ----------------------------------

def d_residual_block_with_sn(x_nchw, p, *, matmul_dtype=jnp.float32):
    n, cin, h, w = x_nchw.shape
    assert h % 2 == 0 and w % 2 == 0, "MaxPool2d(2) needs even H, W"
    cout = p["w1r"].shape[0]
    hp_, wp_ = h // 2, w // 2
    f32 = jnp.float32

    nb = _pick_bands(n, hp_, wp_)
    bh = hp_ // nb
    qi_b = bh * wp_
    steps = n * nb

    # Sublane-align the padded plane width only when the inflation is small.
    wp1 = wp_ + 1
    wpad = _round_up(wp1, 8) if (wp1 >= 24 and wp1 % 8) else wp1

    xh = jnp.transpose(x_nchw, (0, 2, 3, 1)).astype(f32)          # NHWC

    # BN1 (training-mode batch stats) + LeakyReLU as cheap JAX glue.  The 3x3
    # conv's implicit zero padding applies to this activation, so the halo is
    # padded *after* the activation.
    mean1 = jnp.mean(xh, axis=(0, 1, 2))
    var1 = jnp.mean((xh - mean1) ** 2, axis=(0, 1, 2))
    scale1 = p["g1"] * lax.rsqrt(var1 + BN_EPS)
    shift1 = p["bt1"] - mean1 * scale1
    hh = _lrelu(xh * scale1 + shift1)

    # Zero-pad halo, parity-split, and slice into row-bands with a shared
    # 1-row halo (wrapper-side row tiling; channels stay unpadded).
    hh = jnp.pad(hh, ((0, 0), (1, 1), (1, 1), (0, 0)))
    hq = hh.reshape(n, hp_ + 1, 2, wp1, 2, cin).transpose(0, 2, 4, 1, 3, 5)
    hq = jnp.stack([hq[:, :, :, b * bh:b * bh + bh + 1] for b in range(nb)],
                   axis=1)                       # (n, nb, 2, 2, bh+1, wp1, cin)
    hq = hq.reshape(steps * 4, bh + 1, wp1, cin)
    if wpad != wp1:
        hq = jnp.pad(hq, ((0, 0), (0, 0), (0, wpad - wp1), (0, 0)))

    # Raw x in 2x2-quad slab order, per band, for the transform branch.
    xq = xh.reshape(n, nb, bh, 2, wp_, 2, cin).transpose(0, 1, 3, 5, 2, 4, 6)
    xq = xq.reshape(steps * 4 * qi_b, cin)

    # Weights (spectral norm already folded into the stored tensors).
    w3 = jnp.transpose(p["w3"], (2, 3, 1, 0)).reshape(9, cin, cin)
    w3 = w3.astype(matmul_dtype)                                  # taps (ci,co)
    b3 = p["b3"].reshape(1, cin).astype(f32)
    w1t = p["w1t"][:, :, 0, 0].T.astype(matmul_dtype)             # (cin, cout)
    b1t = p["b1t"].reshape(1, cout).astype(f32)
    w1r = p["w1r"][:, :, 0, 0].T.astype(matmul_dtype)
    b1r = p["b1r"].reshape(1, cout).astype(f32)

    cparams = pltpu.CompilerParams(dimension_semantics=("parallel",),
                                   vmem_limit_bytes=_pick_vmem_limit())

    ce1 = pl.CostEstimate(
        flops=int(steps * (36 * 2 * qi_b * cin * cin
                           + 2 * 4 * qi_b * cin * cout)),
        transcendentals=0,
        bytes_accessed=int(4 * (hq.size + xq.size + w3.size + w1t.size
                                + steps * qi_b * (cin + cout)
                                + steps * 8 * cin)))

    # ---- stage 1: conv3x3 + pool (residual), conv1x1 + pool (transform),
    #               and per-band BN2 partial sums -----------------------------
    y1, t, stat = pl.pallas_call(
        _make_stage1_kernel(bh, wp_),
        out_shape=(jax.ShapeDtypeStruct((steps * qi_b, cin), f32),
                   jax.ShapeDtypeStruct((steps * qi_b, cout), f32),
                   jax.ShapeDtypeStruct((steps, 8, cin), f32)),
        grid=(steps,),
        in_specs=[
            pl.BlockSpec((4, bh + 1, wpad, cin), lambda i: (i, 0, 0, 0)),
            pl.BlockSpec((4 * qi_b, cin), lambda i: (i, 0)),
            pl.BlockSpec((9, cin, cin), lambda i: (0, 0, 0)),
            pl.BlockSpec((1, cin), lambda i: (0, 0)),
            pl.BlockSpec((cin, cout), lambda i: (0, 0)),
            pl.BlockSpec((1, cout), lambda i: (0, 0)),
        ],
        out_specs=(pl.BlockSpec((qi_b, cin), lambda i: (i, 0)),
                   pl.BlockSpec((qi_b, cout), lambda i: (i, 0)),
                   pl.BlockSpec((1, 8, cin), lambda i: (i, 0, 0))),
        compiler_params=cparams,
        cost_estimate=ce1,
    )(hq, xq, w3, b3, w1t, b1t)

    # ---- BN2 statistics: finalize from the in-kernel partial sums -----------
    cnt = float(n * hp_ * wp_)
    mean2 = jnp.sum(stat[:, 0, :], axis=0) / cnt
    var2 = jnp.maximum(jnp.sum(stat[:, 1, :], axis=0) / cnt - mean2 * mean2,
                       0.0)
    inv2 = lax.rsqrt(var2 + BN_EPS)
    scale2 = (p["g2"] * inv2).reshape(1, cin).astype(f32)
    shift2 = (p["bt2"] - mean2 * p["g2"] * inv2).reshape(1, cin).astype(f32)

    # ---- stage 2: bn2 + lrelu + 1x1 conv + residual add, streamed by rows ---
    rows = steps * qi_b
    tr = min(2048, _round_up(rows, 8))
    rows_p = _round_up(rows, tr)
    y1f, tf = y1, t
    if rows_p != rows:
        y1f = jnp.pad(y1f, ((0, rows_p - rows), (0, 0)))
        tf = jnp.pad(tf, ((0, rows_p - rows), (0, 0)))

    ce2 = pl.CostEstimate(
        flops=int(2 * rows_p * cin * cout + 6 * rows_p * cin),
        transcendentals=0,
        bytes_accessed=int(4 * (rows_p * (cin + 2 * cout) + cin * cout)))

    out = pl.pallas_call(
        _stage2_kernel,
        out_shape=jax.ShapeDtypeStruct((rows_p, cout), f32),
        grid=(rows_p // tr,),
        in_specs=[
            pl.BlockSpec((tr, cin), lambda i: (i, 0)),
            pl.BlockSpec((tr, cout), lambda i: (i, 0)),
            pl.BlockSpec((1, cin), lambda i: (0, 0)),
            pl.BlockSpec((1, cin), lambda i: (0, 0)),
            pl.BlockSpec((cin, cout), lambda i: (0, 0)),
            pl.BlockSpec((1, cout), lambda i: (0, 0)),
        ],
        out_specs=pl.BlockSpec((tr, cout), lambda i: (i, 0)),
        compiler_params=cparams,
        cost_estimate=ce2,
    )(y1f, tf, scale2, shift2, w1r, b1r)

    out = out[:rows].reshape(n, hp_, wp_, cout)
    return jnp.transpose(out, (0, 3, 1, 2))                       # NCHW


# ------------------------- parameter init (with SN) --------------------------

def _spectral_normalize(w, key, n_iter=10):
    out = w.shape[0]
    wm = w.reshape(out, -1)
    u = jax.random.normal(key, (out,), dtype=w.dtype)
    u = u / (jnp.linalg.norm(u) + 1e-12)
    v = wm.T @ u
    for _ in range(n_iter):
        v = wm.T @ u
        v = v / (jnp.linalg.norm(v) + 1e-12)
        u = wm @ v
        u = u / (jnp.linalg.norm(u) + 1e-12)
    sigma = u @ (wm @ v)
    return w / sigma


def init_params(key, cin, cout):
    ks = jax.random.split(key, 10)
    p = {}
    p["w3"] = _spectral_normalize(
        0.1 * jax.random.normal(ks[0], (cin, cin, 3, 3), jnp.float32), ks[1])
    p["b3"] = 0.1 * jax.random.normal(ks[2], (cin,), jnp.float32)
    p["w1r"] = _spectral_normalize(
        0.1 * jax.random.normal(ks[3], (cout, cin, 1, 1), jnp.float32), ks[4])
    p["b1r"] = 0.1 * jax.random.normal(ks[5], (cout,), jnp.float32)
    p["w1t"] = _spectral_normalize(
        0.1 * jax.random.normal(ks[6], (cout, cin, 1, 1), jnp.float32), ks[7])
    p["b1t"] = 0.1 * jax.random.normal(ks[8], (cout,), jnp.float32)
    sub = jax.random.split(ks[9], 4)
    p["g1"] = 1.0 + 0.1 * jax.random.normal(sub[0], (cin,), jnp.float32)
    p["bt1"] = 0.1 * jax.random.normal(sub[1], (cin,), jnp.float32)
    p["g2"] = 1.0 + 0.1 * jax.random.normal(sub[2], (cin,), jnp.float32)
    p["bt2"] = 0.1 * jax.random.normal(sub[3], (cin,), jnp.float32)
    return p


# ------------------------ pure-JAX reference (NCHW) --------------------------

def _ref_forward(x, p):
    def bn(v, g, b):
        m = v.mean(axis=(0, 2, 3), keepdims=True)
        var = ((v - m) ** 2).mean(axis=(0, 2, 3), keepdims=True)
        return ((v - m) * lax.rsqrt(var + BN_EPS) * g.reshape(1, -1, 1, 1)
                + b.reshape(1, -1, 1, 1))

    def conv(v, w, b, pad):
        y = lax.conv_general_dilated(v, w, (1, 1), pad,
                                     dimension_numbers=("NCHW", "OIHW", "NCHW"))
        return y + b.reshape(1, -1, 1, 1)

    def maxpool(v):
        return lax.reduce_window(v, -jnp.inf, lax.max,
                                 (1, 1, 2, 2), (1, 1, 2, 2), "VALID")

    r = _lrelu(bn(x, p["g1"], p["bt1"]))
    r = conv(r, p["w3"], p["b3"], [(1, 1), (1, 1)])
    r = maxpool(r)
    r = _lrelu(bn(r, p["g2"], p["bt2"]))
    r = conv(r, p["w1r"], p["b1r"], [(0, 0), (0, 0)])
    t = maxpool(conv(x, p["w1t"], p["b1t"], [(0, 0), (0, 0)]))
    return t + r


if __name__ == "__main__":
    key = jax.random.PRNGKey(0)
    kx, kp = jax.random.split(key)
    N, CIN, COUT, H, W = 2, 4, 8, 16, 16

    x = jax.random.normal(kx, (N, CIN, H, W), jnp.float32)
    params = init_params(kp, CIN, COUT)

    out = jax.jit(d_residual_block_with_sn)(x, params)
    out = jax.block_until_ready(out)

    ref = _ref_forward(x, params)
    assert out.shape == ref.shape == (N, COUT, H // 2, W // 2)
    err = float(jnp.max(jnp.abs(out - ref)))
    assert bool(jnp.allclose(out, ref, atol=1e-4, rtol=1e-4)), err
    print("KERNEL_OK")
</pallas_src>

<mosaic_0001>
module attributes {stable_mosaic.version = 11 : i64} {
  func.func @kernel(%arg0: i32, %arg1: memref<4x9x9x4xf32, #tpu.memory_space<vmem>>, %arg2: memref<256x4xf32, #tpu.memory_space<vmem>>, %arg3: memref<9x4x4xf32, #tpu.memory_space<vmem>>, %arg4: memref<1x4xf32, #tpu.memory_space<vmem>>, %arg5: memref<4x8xf32, #tpu.memory_space<vmem>>, %arg6: memref<1x8xf32, #tpu.memory_space<vmem>>, %arg7: memref<64x4xf32, #tpu.memory_space<vmem>>, %arg8: memref<64x8xf32, #tpu.memory_space<vmem>>, %arg9: memref<1x8x4xf32, #tpu.memory_space<vmem>>) attributes {dimension_semantics = [#tpu.dimension_semantics<parallel>], iteration_bounds = array<i64: 2>, scalar_prefetch = 0 : i64, scratch_operands = 0 : i64, tpu.core_type = #tpu.core_type<tc>, window_params = [{transform_indices = @transform_0, window_bounds = array<i64: 4, 9, 9, 4>}, {transform_indices = @transform_1, window_bounds = array<i64: 256, 4>}, {pipeline_mode = #tpu.pipeline_mode<synchronous>, transform_indices = @transform_2, window_bounds = array<i64: 9, 4, 4>}, {pipeline_mode = #tpu.pipeline_mode<synchronous>, transform_indices = @transform_3, window_bounds = array<i64: 1, 4>}, {pipeline_mode = #tpu.pipeline_mode<synchronous>, transform_indices = @transform_4, window_bounds = array<i64: 4, 8>}, {pipeline_mode = #tpu.pipeline_mode<synchronous>, transform_indices = @transform_5, window_bounds = array<i64: 1, 8>}, {transform_indices = @transform_6, window_bounds = array<i64: 64, 4>}, {transform_indices = @transform_7, window_bounds = array<i64: 64, 8>}, {transform_indices = @transform_8, window_bounds = array<i64: 1, 8, 4>}]} {
    %c0 = arith.constant 0 : index
    %c0_0 = arith.constant 0 : index
    %c0_1 = arith.constant 0 : index
    %0 = vector.load %arg3[%c0, %c0_0, %c0_1] : memref<9x4x4xf32, #tpu.memory_space<vmem>>, vector<1x4x4xf32>
    %1 = vector.shape_cast %0 : vector<1x4x4xf32> to vector<4x4xf32>
    %c1 = arith.constant 1 : index
    %c0_2 = arith.constant 0 : index
    %c0_3 = arith.constant 0 : index
    %2 = vector.load %arg3[%c1, %c0_2, %c0_3] : memref<9x4x4xf32, #tpu.memory_space<vmem>>, vector<1x4x4xf32>
    %3 = vector.shape_cast %2 : vector<1x4x4xf32> to vector<4x4xf32>
    %c2 = arith.constant 2 : index
    %c0_4 = arith.constant 0 : index
    %c0_5 = arith.constant 0 : index
    %4 = vector.load %arg3[%c2, %c0_4, %c0_5] : memref<9x4x4xf32, #tpu.memory_space<vmem>>, vector<1x4x4xf32>
    %5 = vector.shape_cast %4 : vector<1x4x4xf32> to vector<4x4xf32>
    %c3 = arith.constant 3 : index
    %c0_6 = arith.constant 0 : index
    %c0_7 = arith.constant 0 : index
    %6 = vector.load %arg3[%c3, %c0_6, %c0_7] : memref<9x4x4xf32, #tpu.memory_space<vmem>>, vector<1x4x4xf32>
    %7 = vector.shape_cast %6 : vector<1x4x4xf32> to vector<4x4xf32>
    %c4 = arith.constant 4 : index
    %c0_8 = arith.constant 0 : index
    %c0_9 = arith.constant 0 : index
    %8 = vector.load %arg3[%c4, %c0_8, %c0_9] : memref<9x4x4xf32, #tpu.memory_space<vmem>>, vector<1x4x4xf32>
    %9 = vector.shape_cast %8 : vector<1x4x4xf32> to vector<4x4xf32>
    %c5 = arith.constant 5 : index
    %c0_10 = arith.constant 0 : index
    %c0_11 = arith.constant 0 : index
    %10 = vector.load %arg3[%c5, %c0_10, %c0_11] : memref<9x4x4xf32, #tpu.memory_space<vmem>>, vector<1x4x4xf32>
    %11 = vector.shape_cast %10 : vector<1x4x4xf32> to vector<4x4xf32>
    %c6 = arith.constant 6 : index
    %c0_12 = arith.constant 0 : index
    %c0_13 = arith.constant 0 : index
    %12 = vector.load %arg3[%c6, %c0_12, %c0_13] : memref<9x4x4xf32, #tpu.memory_space<vmem>>, vector<1x4x4xf32>
    %13 = vector.shape_cast %12 : vector<1x4x4xf32> to vector<4x4xf32>
    %c7 = arith.constant 7 : index
    %c0_14 = arith.constant 0 : index
    %c0_15 = arith.constant 0 : index
    %14 = vector.load %arg3[%c7, %c0_14, %c0_15] : memref<9x4x4xf32, #tpu.memory_space<vmem>>, vector<1x4x4xf32>
    %15 = vector.shape_cast %14 : vector<1x4x4xf32> to vector<4x4xf32>
    %c8 = arith.constant 8 : index
    %c0_16 = arith.constant 0 : index
    %c0_17 = arith.constant 0 : index
    %16 = vector.load %arg3[%c8, %c0_16, %c0_17] : memref<9x4x4xf32, #tpu.memory_space<vmem>>, vector<1x4x4xf32>
    %17 = vector.shape_cast %16 : vector<1x4x4xf32> to vector<4x4xf32>
    %c0_18 = arith.constant 0 : index
    %c0_19 = arith.constant 0 : index
    %c0_20 = arith.constant 0 : index
    %c0_21 = arith.constant 0 : index
    %18 = vector.load %arg1[%c0_18, %c0_19, %c0_20, %c0_21] : memref<4x9x9x4xf32, #tpu.memory_space<vmem>>, vector<1x8x8x4xf32>
    %19 = vector.shape_cast %18 : vector<1x8x8x4xf32> to vector<8x8x4xf32>
    %20 = vector.shape_cast %19 : vector<8x8x4xf32> to vector<64x4xf32>
    %cst = arith.constant dense<0.000000e+00> : vector<64x4xf32>
    %21 = tpu.matmul %20, %1, %cst {dimension_numbers = #tpu.dot_dimension_numbers<[1], [0], [0], [1], [0, 0, 1, 1], [], []>} : vector<64x4xf32>, vector<4x4xf32>, vector<64x4xf32> -> vector<64x4xf32>
    %c1_22 = arith.constant 1 : index
    %c0_23 = arith.constant 0 : index
    %c0_24 = arith.constant 0 : index
    %c0_25 = arith.constant 0 : index
    %22 = vector.load %arg1[%c1_22, %c0_23, %c0_24, %c0_25] : memref<4x9x9x4xf32, #tpu.memory_space<vmem>>, vector<1x8x8x4xf32>
    %23 = vector.shape_cast %22 : vector<1x8x8x4xf32> to vector<8x8x4xf32>
    %24 = vector.shape_cast %23 : vector<8x8x4xf32> to vector<64x4xf32>
    %cst_26 = arith.constant dense<0.000000e+00> : vector<64x4xf32>
    %25 = tpu.matmul %24, %1, %cst_26 {dimension_numbers = #tpu.dot_dimension_numbers<[1], [0], [0], [1], [0, 0, 1, 1], [], []>} : vector<64x4xf32>, vector<4x4xf32>, vector<64x4xf32> -> vector<64x4xf32>
    %cst_27 = arith.constant dense<0.000000e+00> : vector<64x4xf32>
    %26 = tpu.matmul %24, %3, %cst_27 {dimension_numbers = #tpu.dot_dimension_numbers<[1], [0], [0], [1], [0, 0, 1, 1], [], []>} : vector<64x4xf32>, vector<4x4xf32>, vector<64x4xf32> -> vector<64x4xf32>
    %27 = arith.addf %21, %26 : vector<64x4xf32>
    %c0_28 = arith.constant 0 : index
    %c0_29 = arith.constant 0 : index
    %c1_30 = arith.constant 1 : index
    %c0_31 = arith.constant 0 : index
    %28 = vector.load %arg1[%c0_28, %c0_29, %c1_30, %c0_31] : memref<4x9x9x4xf32, #tpu.memory_space<vmem>>, vector<1x8x8x4xf32>
    %29 = vector.shape_cast %28 : vector<1x8x8x4xf32> to vector<8x8x4xf32>
    %30 = vector.shape_cast %29 : vector<8x8x4xf32> to vector<64x4xf32>
    %cst_32 = arith.constant dense<0.000000e+00> : vector<64x4xf32>
    %31 = tpu.matmul %30, %3, %cst_32 {dimension_numbers = #tpu.dot_dimension_numbers<[1], [0], [0], [1], [0, 0, 1, 1], [], []>} : vector<64x4xf32>, vector<4x4xf32>, vector<64x4xf32> -> vector<64x4xf32>
    %32 = arith.addf %25, %31 : vector<64x4xf32>
    %cst_33 = arith.constant dense<0.000000e+00> : vector<64x4xf32>
    %33 = tpu.matmul %30, %5, %cst_33 {dimension_numbers = #tpu.dot_dimension_numbers<[1], [0], [0], [1], [0, 0, 1, 1], [], []>} : vector<64x4xf32>, vector<4x4xf32>, vector<64x4xf32> -> vector<64x4xf32>
    %34 = arith.addf %27, %33 : vector<64x4xf32>
    %c1_34 = arith.constant 1 : index
    %c0_35 = arith.constant 0 : index
    %c1_36 = arith.constant 1 : index
    %c0_37 = arith.constant 0 : index
    %35 = vector.load %arg1[%c1_34, %c0_35, %c1_36, %c0_37] : memref<4x9x9x4xf32, #tpu.memory_space<vmem>>, vector<1x8x8x4xf32>
    %36 = vector.shape_cast %35 : vector<1x8x8x4xf32> to vector<8x8x4xf32>
    %37 = vector.shape_cast %36 : vector<8x8x4xf32> to vector<64x4xf32>
    %cst_38 = arith.constant dense<0.000000e+00> : vector<64x4xf32>
    %38 = tpu.matmul %37, %5, %cst_38 {dimension_numbers = #tpu.dot_dimension_numbers<[1], [0], [0], [1], [0, 0, 1, 1], [], []>} : vector<64x4xf32>, vector<4x4xf32>, vector<64x4xf32> -> vector<64x4xf32>
    %39 = arith.addf %32, %38 : vector<64x4xf32>
    %c2_39 = arith.constant 2 : index
    %c0_40 = arith.constant 0 : index
    %c0_41 = arith.constant 0 : index
    %c0_42 = arith.constant 0 : index
    %40 = vector.load %arg1[%c2_39, %c0_40, %c0_41, %c0_42] : memref<4x9x9x4xf32, #tpu.memory_space<vmem>>, vector<1x8x8x4xf32>
    %41 = vector.shape_cast %40 : vector<1x8x8x4xf32> to vector<8x8x4xf32>
    %42 = vector.shape_cast %41 : vector<8x8x4xf32> to vector<64x4xf32>
    %cst_43 = arith.constant dense<0.000000e+00> : vector<64x4xf32>
    %43 = tpu.matmul %42, %1, %cst_43 {dimension_numbers = #tpu.dot_dimension_numbers<[1], [0], [0], [1], [0, 0, 1, 1], [], []>} : vector<64x4xf32>, vector<4x4xf32>, vector<64x4xf32> -> vector<64x4xf32>
    %cst_44 = arith.constant dense<0.000000e+00> : vector<64x4xf32>
    %44 = tpu.matmul %42, %7, %cst_44 {dimension_numbers = #tpu.dot_dimension_numbers<[1], [0], [0], [1], [0, 0, 1, 1], [], []>} : vector<64x4xf32>, vector<4x4xf32>, vector<64x4xf32> -> vector<64x4xf32>
    %45 = arith.addf %34, %44 : vector<64x4xf32>
    %c3_45 = arith.constant 3 : index
    %c0_46 = arith.constant 0 : index
    %c0_47 = arith.constant 0 : index
    %c0_48 = arith.constant 0 : index
    %46 = vector.load %arg1[%c3_45, %c0_46, %c0_47, %c0_48] : memref<4x9x9x4xf32, #tpu.memory_space<vmem>>, vector<1x8x8x4xf32>
    %47 = vector.shape_cast %46 : vector<1x8x8x4xf32> to vector<8x8x4xf32>
    %48 = vector.shape_cast %47 : vector<8x8x4xf32> to vector<64x4xf32>
    %cst_49 = arith.constant dense<0.000000e+00> : vector<64x4xf32>
    %49 = tpu.matmul %48, %1, %cst_49 {dimension_numbers = #tpu.dot_dimension_numbers<[1], [0], [0], [1], [0, 0, 1, 1], [], []>} : vector<64x4xf32>, vector<4x4xf32>, vector<64x4xf32> -> vector<64x4xf32>
    %cst_50 = arith.constant dense<0.000000e+00> : vector<64x4xf32>
    %50 = tpu.matmul %48, %3, %cst_50 {dimension_numbers = #tpu.dot_dimension_numbers<[1], [0], [0], [1], [0, 0, 1, 1], [], []>} : vector<64x4xf32>, vector<4x4xf32>, vector<64x4xf32> -> vector<64x4xf32>
    %51 = arith.addf %43, %50 : vector<64x4xf32>
    %cst_51 = arith.constant dense<0.000000e+00> : vector<64x4xf32>
    %52 = tpu.matmul %48, %7, %cst_51 {dimension_numbers = #tpu.dot_dimension_numbers<[1], [0], [0], [1], [0, 0, 1, 1], [], []>} : vector<64x4xf32>, vector<4x4xf32>, vector<64x4xf32> -> vector<64x4xf32>
    %53 = arith.addf %39, %52 : vector<64x4xf32>
    %cst_52 = arith.constant dense<0.000000e+00> : vector<64x4xf32>
    %54 = tpu.matmul %48, %9, %cst_52 {dimension_numbers = #tpu.dot_dimension_numbers<[1], [0], [0], [1], [0, 0, 1, 1], [], []>} : vector<64x4xf32>, vector<4x4xf32>, vector<64x4xf32> -> vector<64x4xf32>
    %55 = arith.addf %45, %54 : vector<64x4xf32>
    %c2_53 = arith.constant 2 : index
    %c0_54 = arith.constant 0 : index
    %c1_55 = arith.constant 1 : index
    %c0_56 = arith.constant 0 : index
    %56 = vector.load %arg1[%c2_53, %c0_54, %c1_55, %c0_56] : memref<4x9x9x4xf32, #tpu.memory_space<vmem>>, vector<1x8x8x4xf32>
    %57 = vector.shape_cast %56 : vector<1x8x8x4xf32> to vector<8x8x4xf32>
    %58 = vector.shape_cast %57 : vector<8x8x4xf32> to vector<64x4xf32>
    %cst_57 = arith.constant dense<0.000000e+00> : vector<64x4xf32>
    %59 = tpu.matmul %58, %3, %cst_57 {dimension_numbers = #tpu.dot_dimension_numbers<[1], [0], [0], [1], [0, 0, 1, 1], [], []>} : vector<64x4xf32>, vector<4x4xf32>, vector<64x4xf32> -> vector<64x4xf32>
    %60 = arith.addf %49, %59 : vector<64x4xf32>
    %cst_58 = arith.constant dense<0.000000e+00> : vector<64x4xf32>
    %61 = tpu.matmul %58, %5, %cst_58 {dimension_numbers = #tpu.dot_dimension_numbers<[1], [0], [0], [1], [0, 0, 1, 1], [], []>} : vector<64x4xf32>, vector<4x4xf32>, vector<64x4xf32> -> vector<64x4xf32>
    %62 = arith.addf %51, %61 : vector<64x4xf32>
    %cst_59 = arith.constant dense<0.000000e+00> : vector<64x4xf32>
    %63 = tpu.matmul %58, %9, %cst_59 {dimension_numbers = #tpu.dot_dimension_numbers<[1], [0], [0], [1], [0, 0, 1, 1], [], []>} : vector<64x4xf32>, vector<4x4xf32>, vector<64x4xf32> -> vector<64x4xf32>
    %64 = arith.addf %53, %63 : vector<64x4xf32>
    %cst_60 = arith.constant dense<0.000000e+00> : vector<64x4xf32>
    %65 = tpu.matmul %58, %11, %cst_60 {dimension_numbers = #tpu.dot_dimension_numbers<[1], [0], [0], [1], [0, 0, 1, 1], [], []>} : vector<64x4xf32>, vector<4x4xf32>, vector<64x4xf32> -> vector<64x4xf32>
    %66 = arith.addf %55, %65 : vector<64x4xf32>
    %c3_61 = arith.constant 3 : index
    %c0_62 = arith.constant 0 : index
    %c1_63 = arith.constant 1 : index
    %c0_64 = arith.constant 0 : index
    %67 = vector.load %arg1[%c3_61, %c0_62, %c1_63, %c0_64] : memref<4x9x9x4xf32, #tpu.memory_space<vmem>>, vector<1x8x8x4xf32>
    %68 = vector.shape_cast %67 : vector<1x8x8x4xf32> to vector<8x8x4xf32>
    %69 = vector.shape_cast %68 : vector<8x8x4xf32> to vector<64x4xf32>
    %cst_65 = arith.constant dense<0.000000e+00> : vector<64x4xf32>
    %70 = tpu.matmul %69, %5, %cst_65 {dimension_numbers = #tpu.dot_dimension_numbers<[1], [0], [0], [1], [0, 0, 1, 1], [], []>} : vector<64x4xf32>, vector<4x4xf32>, vector<64x4xf32> -> vector<64x4xf32>
    %71 = arith.addf %60, %70 : vector<64x4xf32>
    %cst_66 = arith.constant dense<0.000000e+00> : vector<64x4xf32>
    %72 = tpu.matmul %69, %11, %cst_66 {dimension_numbers = #tpu.dot_dimension_numbers<[1], [0], [0], [1], [0, 0, 1, 1], [], []>} : vector<64x4xf32>, vector<4x4xf32>, vector<64x4xf32> -> vector<64x4xf32>
    %73 = arith.addf %64, %72 : vector<64x4xf32>
    %c0_67 = arith.constant 0 : index
    %c1_68 = arith.constant 1 : index
    %c0_69 = arith.constant 0 : index
    %c0_70 = arith.constant 0 : index
    %74 = vector.load %arg1[%c0_67, %c1_68, %c0_69, %c0_70] : memref<4x9x9x4xf32, #tpu.memory_space<vmem>>, vector<1x8x8x4xf32>
    %75 = vector.shape_cast %74 : vector<1x8x8x4xf32> to vector<8x8x4xf32>
    %76 = vector.shape_cast %75 : vector<8x8x4xf32> to vector<64x4xf32>
    %cst_71 = arith.constant dense<0.000000e+00> : vector<64x4xf32>
    %77 = tpu.matmul %76, %7, %cst_71 {dimension_numbers = #tpu.dot_dimension_numbers<[1], [0], [0], [1], [0, 0, 1, 1], [], []>} : vector<64x4xf32>, vector<4x4xf32>, vector<64x4xf32> -> vector<64x4xf32>
    %78 = arith.addf %62, %77 : vector<64x4xf32>
    %cst_72 = arith.constant dense<0.000000e+00> : vector<64x4xf32>
    %79 = tpu.matmul %76, %13, %cst_72 {dimension_numbers = #tpu.dot_dimension_numbers<[1], [0], [0], [1], [0, 0, 1, 1], [], []>} : vector<64x4xf32>, vector<4x4xf32>, vector<64x4xf32> -> vector<64x4xf32>
    %80 = arith.addf %66, %79 : vector<64x4xf32>
    %c1_73 = arith.constant 1 : index
    %c1_74 = arith.constant 1 : index
    %c0_75 = arith.constant 0 : index
    %c0_76 = arith.constant 0 : index
    %81 = vector.load %arg1[%c1_73, %c1_74, %c0_75, %c0_76] : memref<4x9x9x4xf32, #tpu.memory_space<vmem>>, vector<1x8x8x4xf32>
    %82 = vector.shape_cast %81 : vector<1x8x8x4xf32> to vector<8x8x4xf32>
    %83 = vector.shape_cast %82 : vector<8x8x4xf32> to vector<64x4xf32>
    %cst_77 = arith.constant dense<0.000000e+00> : vector<64x4xf32>
    %84 = tpu.matmul %83, %7, %cst_77 {dimension_numbers = #tpu.dot_dimension_numbers<[1], [0], [0], [1], [0, 0, 1, 1], [], []>} : vector<64x4xf32>, vector<4x4xf32>, vector<64x4xf32> -> vector<64x4xf32>
    %85 = arith.addf %71, %84 : vector<64x4xf32>
    %cst_78 = arith.constant dense<0.000000e+00> : vector<64x4xf32>
    %86 = tpu.matmul %83, %9, %cst_78 {dimension_numbers = #tpu.dot_dimension_numbers<[1], [0], [0], [1], [0, 0, 1, 1], [], []>} : vector<64x4xf32>, vector<4x4xf32>, vector<64x4xf32> -> vector<64x4xf32>
    %87 = arith.addf %78, %86 : vector<64x4xf32>
    %cst_79 = arith.constant dense<0.000000e+00> : vector<64x4xf32>
    %88 = tpu.matmul %83, %13, %cst_79 {dimension_numbers = #tpu.dot_dimension_numbers<[1], [0], [0], [1], [0, 0, 1, 1], [], []>} : vector<64x4xf32>, vector<4x4xf32>, vector<64x4xf32> -> vector<64x4xf32>
    %89 = arith.addf %73, %88 : vector<64x4xf32>
    %cst_80 = arith.constant dense<0.000000e+00> : vector<64x4xf32>
    %90 = tpu.matmul %83, %15, %cst_80 {dimension_numbers = #tpu.dot_dimension_numbers<[1], [0], [0], [1], [0, 0, 1, 1], [], []>} : vector<64x4xf32>, vector<4x4xf32>, vector<64x4xf32> -> vector<64x4xf32>
    %91 = arith.addf %80, %90 : vector<64x4xf32>
    %c0_81 = arith.constant 0 : index
    %c1_82 = arith.constant 1 : index
    %c1_83 = arith.constant 1 : index
    %c0_84 = arith.constant 0 : index
    %92 = vector.load %arg1[%c0_81, %c1_82, %c1_83, %c0_84] : memref<4x9x9x4xf32, #tpu.memory_space<vmem>>, vector<1x8x8x4xf32>
    %93 = vector.shape_cast %92 : vector<1x8x8x4xf32> to vector<8x8x4xf32>
    %94 = vector.shape_cast %93 : vector<8x8x4xf32> to vector<64x4xf32>
    %cst_85 = arith.constant dense<0.000000e+00> : vector<64x4xf32>
    %95 = tpu.matmul %94, %9, %cst_85 {dimension_numbers = #tpu.dot_dimension_numbers<[1], [0], [0], [1], [0, 0, 1, 1], [], []>} : vector<64x4xf32>, vector<4x4xf32>, vector<64x4xf32> -> vector<64x4xf32>
    %96 = arith.addf %85, %95 : vector<64x4xf32>
    %cst_86 = arith.constant dense<0.000000e+00> : vector<64x4xf32>
    %97 = tpu.matmul %94, %11, %cst_86 {dimension_numbers = #tpu.dot_dimension_numbers<[1], [0], [0], [1], [0, 0, 1, 1], [], []>} : vector<64x4xf32>, vector<4x4xf32>, vector<64x4xf32> -> vector<64x4xf32>
    %98 = arith.addf %87, %97 : vector<64x4xf32>
    %cst_87 = arith.constant dense<0.000000e+00> : vector<64x4xf32>
    %99 = tpu.matmul %94, %15, %cst_87 {dimension_numbers = #tpu.dot_dimension_numbers<[1], [0], [0], [1], [0, 0, 1, 1], [], []>} : vector<64x4xf32>, vector<4x4xf32>, vector<64x4xf32> -> vector<64x4xf32>
    %100 = arith.addf %89, %99 : vector<64x4xf32>
    %cst_88 = arith.constant dense<0.000000e+00> : vector<64x4xf32>
    %101 = tpu.matmul %94, %17, %cst_88 {dimension_numbers = #tpu.dot_dimension_numbers<[1], [0], [0], [1], [0, 0, 1, 1], [], []>} : vector<64x4xf32>, vector<4x4xf32>, vector<64x4xf32> -> vector<64x4xf32>
    %102 = arith.addf %91, %101 : vector<64x4xf32>
    %c1_89 = arith.constant 1 : index
    %c1_90 = arith.constant 1 : index
    %c1_91 = arith.constant 1 : index
    %c0_92 = arith.constant 0 : index
    %103 = vector.load %arg1[%c1_89, %c1_90, %c1_91, %c0_92] : memref<4x9x9x4xf32, #tpu.memory_space<vmem>>, vector<1x8x8x4xf32>
    %104 = vector.shape_cast %103 : vector<1x8x8x4xf32> to vector<8x8x4xf32>
    %105 = vector.shape_cast %104 : vector<8x8x4xf32> to vector<64x4xf32>
    %cst_93 = arith.constant dense<0.000000e+00> : vector<64x4xf32>
    %106 = tpu.matmul %105, %11, %cst_93 {dimension_numbers = #tpu.dot_dimension_numbers<[1], [0], [0], [1], [0, 0, 1, 1], [], []>} : vector<64x4xf32>, vector<4x4xf32>, vector<64x4xf32> -> vector<64x4xf32>
    %107 = arith.addf %96, %106 : vector<64x4xf32>
    %cst_94 = arith.constant dense<0.000000e+00> : vector<64x4xf32>
    %108 = tpu.matmul %105, %17, %cst_94 {dimension_numbers = #tpu.dot_dimension_numbers<[1], [0], [0], [1], [0, 0, 1, 1], [], []>} : vector<64x4xf32>, vector<4x4xf32>, vector<64x4xf32> -> vector<64x4xf32>
    %109 = arith.addf %100, %108 : vector<64x4xf32>
    %c2_95 = arith.constant 2 : index
    %c1_96 = arith.constant 1 : index
    %c0_97 = arith.constant 0 : index
    %c0_98 = arith.constant 0 : index
    %110 = vector.load %arg1[%c2_95, %c1_96, %c0_97, %c0_98] : memref<4x9x9x4xf32, #tpu.memory_space<vmem>>, vector<1x8x8x4xf32>
    %111 = vector.shape_cast %110 : vector<1x8x8x4xf32> to vector<8x8x4xf32>
    %112 = vector.shape_cast %111 : vector<8x8x4xf32> to vector<64x4xf32>
    %cst_99 = arith.constant dense<0.000000e+00> : vector<64x4xf32>
    %113 = tpu.matmul %112, %13, %cst_99 {dimension_numbers = #tpu.dot_dimension_numbers<[1], [0], [0], [1], [0, 0, 1, 1], [], []>} : vector<64x4xf32>, vector<4x4xf32>, vector<64x4xf32> -> vector<64x4xf32>
    %114 = arith.addf %98, %113 : vector<64x4xf32>
    %c3_100 = arith.constant 3 : index
    %c1_101 = arith.constant 1 : index
    %c0_102 = arith.constant 0 : index
    %c0_103 = arith.constant 0 : index
    %115 = vector.load %arg1[%c3_100, %c1_101, %c0_102, %c0_103] : memref<4x9x9x4xf32, #tpu.memory_space<vmem>>, vector<1x8x8x4xf32>
    %116 = vector.shape_cast %115 : vector<1x8x8x4xf32> to vector<8x8x4xf32>
    %117 = vector.shape_cast %116 : vector<8x8x4xf32> to vector<64x4xf32>
    %cst_104 = arith.constant dense<0.000000e+00> : vector<64x4xf32>
    %118 = tpu.matmul %117, %13, %cst_104 {dimension_numbers = #tpu.dot_dimension_numbers<[1], [0], [0], [1], [0, 0, 1, 1], [], []>} : vector<64x4xf32>, vector<4x4xf32>, vector<64x4xf32> -> vector<64x4xf32>
    %119 = arith.addf %107, %118 : vector<64x4xf32>
    %cst_105 = arith.constant dense<0.000000e+00> : vector<64x4xf32>
    %120 = tpu.matmul %117, %15, %cst_105 {dimension_numbers = #tpu.dot_dimension_numbers<[1], [0], [0], [1], [0, 0, 1, 1], [], []>} : vector<64x4xf32>, vector<4x4xf32>, vector<64x4xf32> -> vector<64x4xf32>
    %121 = arith.addf %114, %120 : vector<64x4xf32>
    %c2_106 = arith.constant 2 : index
    %c1_107 = arith.constant 1 : index
    %c1_108 = arith.constant 1 : index
    %c0_109 = arith.constant 0 : index
    %122 = vector.load %arg1[%c2_106, %c1_107, %c1_108, %c0_109] : memref<4x9x9x4xf32, #tpu.memory_space<vmem>>, vector<1x8x8x4xf32>
    %123 = vector.shape_cast %122 : vector<1x8x8x4xf32> to vector<8x8x4xf32>
    %124 = vector.shape_cast %123 : vector<8x8x4xf32> to vector<64x4xf32>
    %cst_110 = arith.constant dense<0.000000e+00> : vector<64x4xf32>
    %125 = tpu.matmul %124, %15, %cst_110 {dimension_numbers = #tpu.dot_dimension_numbers<[1], [0], [0], [1], [0, 0, 1, 1], [], []>} : vector<64x4xf32>, vector<4x4xf32>, vector<64x4xf32> -> vector<64x4xf32>
    %126 = arith.addf %119, %125 : vector<64x4xf32>
    %cst_111 = arith.constant dense<0.000000e+00> : vector<64x4xf32>
    %127 = tpu.matmul %124, %17, %cst_111 {dimension_numbers = #tpu.dot_dimension_numbers<[1], [0], [0], [1], [0, 0, 1, 1], [], []>} : vector<64x4xf32>, vector<4x4xf32>, vector<64x4xf32> -> vector<64x4xf32>
    %128 = arith.addf %121, %127 : vector<64x4xf32>
    %c3_112 = arith.constant 3 : index
    %c1_113 = arith.constant 1 : index
    %c1_114 = arith.constant 1 : index
    %c0_115 = arith.constant 0 : index
    %129 = vector.load %arg1[%c3_112, %c1_113, %c1_114, %c0_115] : memref<4x9x9x4xf32, #tpu.memory_space<vmem>>, vector<1x8x8x4xf32>
    %130 = vector.shape_cast %129 : vector<1x8x8x4xf32> to vector<8x8x4xf32>
    %131 = vector.shape_cast %130 : vector<8x8x4xf32> to vector<64x4xf32>
    %cst_116 = arith.constant dense<0.000000e+00> : vector<64x4xf32>
    %132 = tpu.matmul %131, %17, %cst_116 {dimension_numbers = #tpu.dot_dimension_numbers<[1], [0], [0], [1], [0, 0, 1, 1], [], []>} : vector<64x4xf32>, vector<4x4xf32>, vector<64x4xf32> -> vector<64x4xf32>
    %133 = arith.addf %126, %132 : vector<64x4xf32>
    %134 = arith.maximumf %102, %109 : vector<64x4xf32>
    %135 = arith.maximumf %128, %133 : vector<64x4xf32>
    %136 = arith.maximumf %134, %135 : vector<64x4xf32>
    %c0_117 = arith.constant 0 : index
    %c0_118 = arith.constant 0 : index
    %137 = vector.load %arg4[%c0_117, %c0_118] : memref<1x4xf32, #tpu.memory_space<vmem>>, vector<1x4xf32>
    %138 = vector.broadcast %137 : vector<1x4xf32> to vector<64x4xf32>
    %139 = arith.addf %136, %138 : vector<64x4xf32>
    %c0_119 = arith.constant 0 : index
    %c0_120 = arith.constant 0 : index
    %140 = vector.load %arg7[%c0_119, %c0_120] : memref<64x4xf32, #tpu.memory_space<vmem>>, vector<64x4xf32>
    tpu.vector_store %arg7[%c0_119, %c0_120], %139 {strides = array<i32>} : memref<64x4xf32, #tpu.memory_space<vmem>>, vector<64x4xf32>,
    %cst_121 = arith.constant dense<0.000000e+00> : vector<4xf32>
    %141 = vector.multi_reduction <add>, %139, %cst_121 [0] : vector<64x4xf32> to vector<4xf32>
    %142 = vector.shape_cast %141 : vector<4xf32> to vector<1x4xf32>
    %143 = arith.mulf %139, %139 : vector<64x4xf32>
    %cst_122 = arith.constant dense<0.000000e+00> : vector<4xf32>
    %144 = vector.multi_reduction <add>, %143, %cst_122 [0] : vector<64x4xf32> to vector<4xf32>
    %145 = vector.shape_cast %144 : vector<4xf32> to vector<1x4xf32>
    %cst_123 = arith.constant 0.000000e+00 : f32
    %146 = vector.broadcast %cst_123 : f32 to vector<6x4xf32>
    %147 = tpu.concatenate %142, %145, %146 in 0 : vector<1x4xf32>, vector<1x4xf32>, vector<6x4xf32> -> vector<8x4xf32>
    %148 = vector.shape_cast %147 : vector<8x4xf32> to vector<1x8x4xf32>
    %c0_124 = arith.constant 0 : index
    %c0_125 = arith.constant 0 : index
    %c0_126 = arith.constant 0 : index
    %149 = vector.load %arg9[%c0_124, %c0_125, %c0_126] : memref<1x8x4xf32, #tpu.memory_space<vmem>>, vector<1x8x4xf32>
    tpu.vector_store %arg9[%c0_124, %c0_125, %c0_126], %148 {strides = array<i32>} : memref<1x8x4xf32, #tpu.memory_space<vmem>>, vector<1x8x4xf32>,
    %c0_127 = arith.constant 0 : index
    %c0_128 = arith.constant 0 : index
    %150 = vector.load %arg2[%c0_127, %c0_128] : memref<256x4xf32, #tpu.memory_space<vmem>>, vector<256x4xf32>
    %c0_129 = arith.constant 0 : index
    %c0_130 = arith.constant 0 : index
    %151 = vector.load %arg5[%c0_129, %c0_130] : memref<4x8xf32, #tpu.memory_space<vmem>>, vector<4x8xf32>
    %cst_131 = arith.constant dense<0.000000e+00> : vector<256x8xf32>
    %152 = tpu.matmul %150, %151, %cst_131 {dimension_numbers = #tpu.dot_dimension_numbers<[1], [0], [0], [1], [0, 0, 1, 1], [], []>} : vector<256x4xf32>, vector<4x8xf32>, vector<256x8xf32> -> vector<256x8xf32>
    %153 = vector.shape_cast %152 : vector<256x8xf32> to vector<4x64x8xf32>
    %154 = vector.extract_strided_slice %153 {offsets = [0, 0, 0], sizes = [1, 64, 8], strides = [1, 1, 1]} : vector<4x64x8xf32> to vector<1x64x8xf32>
    %155 = vector.shape_cast %154 : vector<1x64x8xf32> to vector<64x8xf32>
    %156 = vector.extract_strided_slice %153 {offsets = [1, 0, 0], sizes = [1, 64, 8], strides = [1, 1, 1]} : vector<4x64x8xf32> to vector<1x64x8xf32>
    %157 = vector.shape_cast %156 : vector<1x64x8xf32> to vector<64x8xf32>
    %158 = arith.maximumf %155, %157 : vector<64x8xf32>
    %159 = vector.extract_strided_slice %153 {offsets = [2, 0, 0], sizes = [1, 64, 8], strides = [1, 1, 1]} : vector<4x64x8xf32> to vector<1x64x8xf32>
    %160 = vector.shape_cast %159 : vector<1x64x8xf32> to vector<64x8xf32>
    %161 = vector.extract_strided_slice %153 {offsets = [3, 0, 0], sizes = [1, 64, 8], strides = [1, 1, 1]} : vector<4x64x8xf32> to vector<1x64x8xf32>
    %162 = vector.shape_cast %161 : vector<1x64x8xf32> to vector<64x8xf32>
    %163 = arith.maximumf %160, %162 : vector<64x8xf32>
    %164 = arith.maximumf %158, %163 : vector<64x8xf32>
    %c0_132 = arith.constant 0 : index
    %c0_133 = arith.constant 0 : index
    %165 = vector.load %arg6[%c0_132, %c0_133] : memref<1x8xf32, #tpu.memory_space<vmem>>, vector<1x8xf32>
    %166 = vector.broadcast %165 : vector<1x8xf32> to vector<64x8xf32>
    %167 = arith.addf %164, %166 : vector<64x8xf32>
    %c0_134 = arith.constant 0 : index
    %c0_135 = arith.constant 0 : index
    %168 = vector.load %arg8[%c0_134, %c0_135] : memref<64x8xf32, #tpu.memory_space<vmem>>, vector<64x8xf32>
    tpu.vector_store %arg8[%c0_134, %c0_135], %167 {strides = array<i32>} : memref<64x8xf32, #tpu.memory_space<vmem>>, vector<64x8xf32>,
    return
  }
  func.func @transform_0(%arg0: i32) -> (i32, i32, i32, i32) {
    %c0_i32 = arith.constant 0 : i32
    %c0_i32_0 = arith.constant 0 : i32
    %c0_i32_1 = arith.constant 0 : i32
    %c0_i32_2 = arith.constant 0 : i32
    return %arg0, %c0_i32, %c0_i32_0, %c0_i32_1 : i32, i32, i32, i32
  }
  func.func @transform_1(%arg0: i32) -> (i32, i32) {
    %c0_i32 = arith.constant 0 : i32
    %c0_i32_0 = arith.constant 0 : i32
    return %arg0, %c0_i32 : i32, i32
  }
  func.func @transform_2(%arg0: i32) -> (i32, i32, i32) {
    %c0_i32 = arith.constant 0 : i32
    %c0_i32_0 = arith.constant 0 : i32
    %c0_i32_1 = arith.constant 0 : i32
    %c0_i32_2 = arith.constant 0 : i32
    return %c0_i32, %c0_i32_0, %c0_i32_1 : i32, i32, i32
  }
  func.func @transform_3(%arg0: i32) -> (i32, i32) {
    %c0_i32 = arith.constant 0 : i32
    %c0_i32_0 = arith.constant 0 : i32
    %c0_i32_1 = arith.constant 0 : i32
    return %c0_i32, %c0_i32_0 : i32, i32
  }
  func.func @transform_4(%arg0: i32) -> (i32, i32) {
    %c0_i32 = arith.constant 0 : i32
    %c0_i32_0 = arith.constant 0 : i32
    %c0_i32_1 = arith.constant 0 : i32
    return %c0_i32, %c0_i32_0 : i32, i32
  }
  func.func @transform_5(%arg0: i32) -> (i32, i32) {
    %c0_i32 = arith.constant 0 : i32
    %c0_i32_0 = arith.constant 0 : i32
    %c0_i32_1 = arith.constant 0 : i32
    return %c0_i32, %c0_i32_0 : i32, i32
  }
  func.func @transform_6(%arg0: i32) -> (i32, i32) {
    %c0_i32 = arith.constant 0 : i32
    %c0_i32_0 = arith.constant 0 : i32
    return %arg0, %c0_i32 : i32, i32
  }
  func.func @transform_7(%arg0: i32) -> (i32, i32) {
    %c0_i32 = arith.constant 0 : i32
    %c0_i32_0 = arith.constant 0 : i32
    return %arg0, %c0_i32 : i32, i32
  }
  func.func @transform_8(%arg0: i32) -> (i32, i32, i32) {
    %c0_i32 = arith.constant 0 : i32
    %c0_i32_0 = arith.constant 0 : i32
    %c0_i32_1 = arith.constant 0 : i32
    return %arg0, %c0_i32, %c0_i32_0 : i32, i32, i32
  }
}

module attributes {stable_mosaic.version = 11 : i64} {
  func.func @_stage2_kernel(%arg0: i32, %arg1: memref<128x4xf32, #tpu.memory_space<vmem>>, %arg2: memref<128x8xf32, #tpu.memory_space<vmem>>, %arg3: memref<1x4xf32, #tpu.memory_space<vmem>>, %arg4: memref<1x4xf32, #tpu.memory_space<vmem>>, %arg5: memref<4x8xf32, #tpu.memory_space<vmem>>, %arg6: memref<1x8xf32, #tpu.memory_space<vmem>>, %arg7: memref<128x8xf32, #tpu.memory_space<vmem>>) attributes {dimension_semantics = [#tpu.dimension_semantics<parallel>], iteration_bounds = array<i64: 1>, scalar_prefetch = 0 : i64, scratch_operands = 0 : i64, tpu.core_type = #tpu.core_type<tc>, window_params = [{transform_indices = @transform_0, window_bounds = array<i64: 128, 4>}, {transform_indices = @transform_1, window_bounds = array<i64: 128, 8>}, {pipeline_mode = #tpu.pipeline_mode<synchronous>, transform_indices = @transform_2, window_bounds = array<i64: 1, 4>}, {pipeline_mode = #tpu.pipeline_mode<synchronous>, transform_indices = @transform_3, window_bounds = array<i64: 1, 4>}, {pipeline_mode = #tpu.pipeline_mode<synchronous>, transform_indices = @transform_4, window_bounds = array<i64: 4, 8>}, {pipeline_mode = #tpu.pipeline_mode<synchronous>, transform_indices = @transform_5, window_bounds = array<i64: 1, 8>}, {transform_indices = @transform_6, window_bounds = array<i64: 128, 8>}]} {
    %c0 = arith.constant 0 : index
    %c0_0 = arith.constant 0 : index
    %0 = vector.load %arg1[%c0, %c0_0] : memref<128x4xf32, #tpu.memory_space<vmem>>, vector<128x4xf32>
    %c0_1 = arith.constant 0 : index
    %c0_2 = arith.constant 0 : index
    %1 = vector.load %arg3[%c0_1, %c0_2] : memref<1x4xf32, #tpu.memory_space<vmem>>, vector<1x4xf32>
    %2 = vector.broadcast %1 : vector<1x4xf32> to vector<128x4xf32>
    %3 = arith.mulf %0, %2 : vector<128x4xf32>
    %c0_3 = arith.constant 0 : index
    %c0_4 = arith.constant 0 : index
    %4 = vector.load %arg4[%c0_3, %c0_4] : memref<1x4xf32, #tpu.memory_space<vmem>>, vector<1x4xf32>
    %5 = vector.broadcast %4 : vector<1x4xf32> to vector<128x4xf32>
    %6 = arith.addf %3, %5 : vector<128x4xf32>
    %cst = arith.constant 0.000000e+00 : f32
    %7 = vector.broadcast %cst : f32 to vector<128x4xf32>
    %8 = arith.cmpf ogt, %6, %7 : vector<128x4xf32>
    %cst_5 = arith.constant 0.00999999977 : f32
    %9 = vector.broadcast %cst_5 : f32 to vector<128x4xf32>
    %10 = arith.mulf %9, %6 : vector<128x4xf32>
    %11 = arith.select %8, %6, %10 : vector<128x4xi1>, vector<128x4xf32>
    %c0_6 = arith.constant 0 : index
    %c0_7 = arith.constant 0 : index
    %12 = vector.load %arg5[%c0_6, %c0_7] : memref<4x8xf32, #tpu.memory_space<vmem>>, vector<4x8xf32>
    %cst_8 = arith.constant dense<0.000000e+00> : vector<128x8xf32>
    %13 = tpu.matmul %11, %12, %cst_8 {dimension_numbers = #tpu.dot_dimension_numbers<[1], [0], [0], [1], [0, 0, 1, 1], [], []>} : vector<128x4xf32>, vector<4x8xf32>, vector<128x8xf32> -> vector<128x8xf32>
    %c0_9 = arith.constant 0 : index
    %c0_10 = arith.constant 0 : index
    %14 = vector.load %arg2[%c0_9, %c0_10] : memref<128x8xf32, #tpu.memory_space<vmem>>, vector<128x8xf32>
    %15 = arith.addf %14, %13 : vector<128x8xf32>
    %c0_11 = arith.constant 0 : index
    %c0_12 = arith.constant 0 : index
    %16 = vector.load %arg6[%c0_11, %c0_12] : memref<1x8xf32, #tpu.memory_space<vmem>>, vector<1x8xf32>
    %17 = vector.broadcast %16 : vector<1x8xf32> to vector<128x8xf32>
    %18 = arith.addf %15, %17 : vector<128x8xf32>
    %c0_13 = arith.constant 0 : index
    %c0_14 = arith.constant 0 : index
    %19 = vector.load %arg7[%c0_13, %c0_14] : memref<128x8xf32, #tpu.memory_space<vmem>>, vector<128x8xf32>
    tpu.vector_store %arg7[%c0_13, %c0_14], %18 {strides = array<i32>} : memref<128x8xf32, #tpu.memory_space<vmem>>, vector<128x8xf32>,
    return
  }
  func.func @transform_0(%arg0: i32) -> (i32, i32) {
    %c0_i32 = arith.constant 0 : i32
    %c0_i32_0 = arith.constant 0 : i32
    return %arg0, %c0_i32 : i32, i32
  }
  func.func @transform_1(%arg0: i32) -> (i32, i32) {
    %c0_i32 = arith.constant 0 : i32
    %c0_i32_0 = arith.constant 0 : i32
    return %arg0, %c0_i32 : i32, i32
  }
  func.func @transform_2(%arg0: i32) -> (i32, i32) {
    %c0_i32 = arith.constant 0 : i32
    %c0_i32_0 = arith.constant 0 : i32
    %c0_i32_1 = arith.constant 0 : i32
    return %c0_i32, %c0_i32_0 : i32, i32
  }
  func.func @transform_3(%arg0: i32) -> (i32, i32) {
    %c0_i32 = arith.constant 0 : i32
    %c0_i32_0 = arith.constant 0 : i32
    %c0_i32_1 = arith.constant 0 : i32
    return %c0_i32, %c0_i32_0 : i32, i32
  }
  func.func @transform_4(%arg0: i32) -> (i32, i32) {
    %c0_i32 = arith.constant 0 : i32
    %c0_i32_0 = arith.constant 0 : i32
    %c0_i32_1 = arith.constant 0 : i32
    return %c0_i32, %c0_i32_0 : i32, i32
  }
  func.func @transform_5(%arg0: i32) -> (i32, i32) {
    %c0_i32 = arith.constant 0 : i32
    %c0_i32_0 = arith.constant 0 : i32
    %c0_i32_1 = arith.constant 0 : i32
    return %c0_i32, %c0_i32_0 : i32, i32
  }
  func.func @transform_6(%arg0: i32) -> (i32, i32) {
    %c0_i32 = arith.constant 0 : i32
    %c0_i32_0 = arith.constant 0 : i32
    return %arg0, %c0_i32 : i32, i32
  }
}

</mosaic_0001>

<bundles_post_ra>
// kernel: d_residual_block_with_sn.3
= control target key start
LH: loop header
LB: loop body
LE: loop exit
PB: predicated region body
PF: predicated region fallthrough
CT: control target
= control target key end

     0   :  { %vm183_vm0 = vcmask 1043456   ;;  %vm134_vm1 = vcmask 31744   ;;  %s750_s4 = inlined_call_operand.vmem [shape: f32[4,8], index: 4, kind: input, shape index: {}]   ;;  %s751_s0 = inlined_call_operand.vmem [shape: f32[128,4], index: 0, kind: input, shape index: {}]   ;;  %s752_s2 = inlined_call_operand.vmem [shape: f32[1,4], index: 2, kind: input, shape index: {}]   ;;  %s753_s3 = inlined_call_operand.vmem [shape: f32[1,4], index: 3, kind: input, shape index: {}]   ;;  %s754_s1 = inlined_call_operand.vmem [shape: f32[128,8], index: 1, kind: input, shape index: {}]   ;;  %s755_s5 = inlined_call_operand.vmem [shape: f32[1,8], index: 5, kind: input, shape index: {}]   ;;  %s756_s6 = inlined_call_operand.vmem [shape: f32[128,8], index: 6, kind: output, shape index: {}]  }
   0x1   :  { %v133_v0 = vld [vmem:[%s750_s4] sm:$0xf]  ;;  %v24_v6 = vld [vmem:[%s751_s0 + $0x8] sm:$0xff]  ;;  %v25_v10 = vld [vmem:[%s751_s0 + $0x10] sm:$0xff] }
   0x2   :  { %v23_v1 = vld [vmem:[%s751_s0] sm:$0xff]  ;;  %445 = vmatprep.subr.msk.mxu0 %vm183_vm0, %v133_v0  ;;  %471 = vmatprep.subr.msk.mxu1 %vm183_vm0, %v133_v0  ;;  %v32_v9 = vld [vmem:[%s751_s0 + $0x48] sm:$0xff]  ;;  %v33_v11 = vld [vmem:[%s751_s0 + $0x50] sm:$0xff] }
   0x3   :  { %v517_v2 = vld [vmem:[%s752_s2] ss:$0 sm:$0xff]  ;;  %446 = vmatpush3.msk.msra.mxu0 %vm183_vm0, %v133_v0  ;;  %472 = vmatpush3.msk.msra.mxu1 %vm183_vm0, %v133_v0  ;;  %v26_v16 = vld [vmem:[%s751_s0 + $0x18] sm:$0xff]  ;;  %v28_v38 = vld [vmem:[%s751_s0 + $0x28] sm:$0xff] }
   0x4   :  { %v46_v3 = vmul.f32 %v517_v2, %v23_v1  ;;  %v523_v4 = vld [vmem:[%s753_s3] ss:$0 sm:$0xff]  ;;  %v47_v8 = vmul.f32 %v517_v2, %v24_v6  ;;  %v55_v13 = vmul.f32 %v517_v2, %v32_v9  ;;  %v48_v14 = vmul.f32 %v517_v2, %v25_v10  ;;  %v34_v17 = vld [vmem:[%s751_s0 + $0x58] sm:$0xff]  ;;  %v36_v42 = vld [vmem:[%s751_s0 + $0x68] sm:$0xff] }
   0x5   :  { %v31_v5 = vld [vmem:[%s751_s0 + $0x40] sm:$0xff]  ;;  %v56_v15 = vmul.f32 %v517_v2, %v33_v11  ;;  %v49_v20 = vmul.f32 %v517_v2, %v26_v16  ;;  %v57_v21 = vmul.f32 %v517_v2, %v34_v17  ;;  %v29_v43 = vld [vmem:[%s751_s0 + $0x30] sm:$0xff]  ;;  %v51_v49 = vmul.f32 %v517_v2, %v28_v38  ;;  %v30_v51 = vld [vmem:[%s751_s0 + $0x38] sm:$0xff] }
   0x6   :  { %v54_v7 = vmul.f32 %v517_v2, %v31_v5  ;;  %v69_v12 = vadd.f32 %v523_v4, %v46_v3  ;;  %v70_v19 = vadd.f32 %v523_v4, %v47_v8  ;;  %v78_v23 = vadd.f32 %v523_v4, %v55_v13  ;;  %v27_v29 = vld [vmem:[%s751_s0 + $0x20] sm:$0xff]  ;;  %v37_v50 = vld [vmem:[%s751_s0 + $0x70] sm:$0xff]  ;;  %v38_v1 = vld [vmem:[%s751_s0 + $0x78] sm:$0xff] }
   0x7   :  { %v71_v24 = vadd.f32 %v523_v4, %v48_v14  ;;  %v79_v33 = vadd.f32 %v523_v4, %v56_v15  ;;  %v72_v35 = vadd.f32 %v523_v4, %v49_v20  ;;  %v80_v36 = vadd.f32 %v523_v4, %v57_v21  ;;  %v35_v37 = vld [vmem:[%s751_s0 + $0x60] sm:$0xff]  ;;  %v333_v20 = vld [vmem:[%s754_s1 + $0x8] sm:$0xff] }
   0x8   :  { %v77_v18 = vadd.f32 %v523_v4, %v54_v7  ;;  %vm85_vm2 = vcmp.gt.f32.partialorder %v69_v12, 0.0  ;;  %v101_v22 = vmul.f32 0.01, %v69_v12  ;;  %vm86_vm4 = vcmp.gt.f32.partialorder %v70_v19, 0.0  ;;  %v341_v21 = vld [vmem:[%s754_s1 + $0x48] sm:$0xff] }
   0x9   :  { %v102_v26 = vmul.f32 0.01, %v70_v19  ;;  %vm94_vm5 = vcmp.gt.f32.partialorder %v78_v23, 0.0  ;;  %v110_v28 = vmul.f32 0.01, %v78_v23  ;;  %vm87_vm6 = vcmp.gt.f32.partialorder %v71_v24, 0.0 }
   0xa   :  { %vm93_vm3 = vcmp.gt.f32.partialorder %v77_v18, 0.0  ;;  %v109_v25 = vmul.f32 0.01, %v77_v18  ;;  %v117_v27 = vsel %vm85_vm2, %v69_v12, %v101_v22  ;;  %v103_v32 = vmul.f32 0.01, %v71_v24 }
   0xb   :  { %447 = vmatprep.mubr.msk.f32.mxu0 %vm134_vm1, %v117_v27  ;;  %v118_v31 = vsel %vm86_vm4, %v70_v19, %v102_v26  ;;  %v126_v34 = vsel %vm94_vm5, %v78_v23, %v110_v28  ;;  %vm95_vm7 = vcmp.gt.f32.partialorder %v79_v33, 0.0  ;;  %v111_v40 = vmul.f32 0.01, %v79_v33  ;;  %v626_v22 = vld [vmem:[%s755_s5] ss:$0 sm:$0xff] }
   0xc   :  { %v125_v30 = vsel %vm93_vm3, %v77_v18, %v109_v25  ;;  %448 = vmatmul.mubr.msk.f32.vlgmr.msra.gmra.mxu0 %vm134_vm1, %v118_v31  ;;  %v119_v39 = vsel %vm87_vm6, %v71_v24, %v103_v32  ;;  %v50_v41 = vmul.f32 %v517_v2, %v27_v29  ;;  %vm88_vm8 = vcmp.gt.f32.partialorder %v72_v35, 0.0  ;;  %v332_v23 = vld [vmem:[%s754_s1] sm:$0xff]  ;;  %v335_v32 = vld [vmem:[%s754_s1 + $0x18] sm:$0xff] }
   0xd   :  { %459 = vmatprep.mubr.msk.f32.mxu1 %vm134_vm1, %v125_v30  ;;  %450 = vmatprep.mubr.msk.f32.mxu0 %vm134_vm1, %v119_v39  ;;  %v104_v44 = vmul.f32 0.01, %v72_v35  ;;  %vm96_vm9 = vcmp.gt.f32.partialorder %v80_v36, 0.0  ;;  %v112_v45 = vmul.f32 0.01, %v80_v36  ;;  %v127_v46 = vsel %vm95_vm7, %v79_v33, %v111_v40  ;;  %v340_v26 = vld [vmem:[%s754_s1 + $0x40] sm:$0xff] }
   0xe   :  { %460 = vmatmul.mubr.msk.f32.vlgmr.msra.gmra.mxu1 %vm134_vm1, %v126_v34  ;;  %v73_v47 = vadd.f32 %v523_v4, %v50_v41  ;;  %v58_v48 = vmul.f32 %v517_v2, %v35_v37  ;;  %v59_v54 = vmul.f32 %v517_v2, %v36_v42  ;;  %v52_v55 = vmul.f32 %v517_v2, %v29_v43  ;;  %v343_v33 = vld [vmem:[%s754_s1 + $0x58] sm:$0xff]  ;;  %v334_v39 = vld [vmem:[%s754_s1 + $0x10] sm:$0xff] }
   0xf   :  { %462 = vmatprep.mubr.msk.f32.mxu1 %vm134_vm1, %v127_v46  ;;  %v120_v52 = vsel %vm88_vm8, %v72_v35, %v104_v44  ;;  %v128_v53 = vsel %vm96_vm9, %v80_v36, %v112_v45  ;;  %v74_v58 = vadd.f32 %v523_v4, %v51_v49  ;;  %v60_v61 = vmul.f32 %v517_v2, %v37_v50  ;;  %v342_v40 = vld [vmem:[%s754_s1 + $0x50] sm:$0xff]  ;;  %v337_v50 = vld [vmem:[%s754_s1 + $0x28] sm:$0xff] }
  0x10   :  { %451 = vmatmul.mubr.msk.f32.gmra.mxu0 %vm134_vm1, %v120_v52  ;;  %vm89_vm10 = vcmp.gt.f32.partialorder %v73_v47, 0.0  ;;  %v105_v56 = vmul.f32 0.01, %v73_v47  ;;  %v81_v57 = vadd.f32 %v523_v4, %v58_v48  ;;  %v82_v59 = vadd.f32 %v523_v4, %v59_v54 }
  0x11   :  { %v75_v60 = vadd.f32 %v523_v4, %v52_v55  ;;  %v53_v62 = vmul.f32 %v517_v2, %v30_v51  ;;  %vm90_vm12 = vcmp.gt.f32.partialorder %v74_v58, 0.0  ;;  %v106_v3 = vmul.f32 0.01, %v74_v58  ;;  %v345_v51 = vld [vmem:[%s754_s1 + $0x68] sm:$0xff] }
  0x12   :  { %463 = vmatmul.mubr.msk.f32.gmra.mxu1 %vm134_vm1, %v128_v53  ;;  %v121_v63 = vsel %vm89_vm10, %v73_v47, %v105_v56  ;;  %vm97_vm11 = vcmp.gt.f32.partialorder %v81_v57, 0.0  ;;  %v113_v0 = vmul.f32 0.01, %v81_v57  ;;  %vm98_vm13 = vcmp.gt.f32.partialorder %v82_v59, 0.0  ;;  %v336_v56 = vld [vmem:[%s754_s1 + $0x20] sm:$0xff] }
  0x13   :  { %453 = vmatprep.mubr.msk.f32.mxu0 %vm134_vm1, %v121_v63  ;;  %v114_v5 = vmul.f32 0.01, %v82_v59  ;;  %vm91_vm14 = vcmp.gt.f32.partialorder %v75_v60, 0.0  ;;  %v107_v7 = vmul.f32 0.01, %v75_v60  ;;  %v83_v8 = vadd.f32 %v523_v4, %v60_v61 }
  0x14   :  { %v129_v6 = vsel %vm97_vm11, %v81_v57, %v113_v0  ;;  %v76_v9 = vadd.f32 %v523_v4, %v53_v62  ;;  %v122_v10 = vsel %vm90_vm12, %v74_v58, %v106_v3  ;;  %v61_v12 = vmul.f32 %v517_v2, %v38_v1  ;;  %v344_v57 = vld [vmem:[%s754_s1 + $0x60] sm:$0xff]  ;;  %v339_v62 = vld [vmem:[%s754_s1 + $0x38] sm:$0xff] }
  0x15   :  { %465 = vmatprep.mubr.msk.f32.mxu1 %vm134_vm1, %v129_v6  ;;  %v130_v11 = vsel %vm98_vm13, %v82_v59, %v114_v5  ;;  %454 = vmatmul.mubr.msk.f32.gmra.mxu0 %vm134_vm1, %v122_v10  ;;  %v123_v13 = vsel %vm91_vm14, %v75_v60, %v107_v7  ;;  %vm99_vm15 = vcmp.gt.f32.partialorder %v83_v8, 0.0  ;;  %v115_v14 = vmul.f32 0.01, %v83_v8  ;;  %v347_v6 = vld [vmem:[%s754_s1 + $0x78] sm:$0xff]  ;;  %v338_v7 = vld [vmem:[%s754_s1 + $0x30] sm:$0xff] }
  0x16   :  { %466 = vmatmul.mubr.msk.f32.gmra.mxu1 %vm134_vm1, %v130_v11  ;;  %vm92_vm0 = vcmp.gt.f32.partialorder %v76_v9, 0.0  ;;  %456 = vmatprep.mubr.msk.f32.mxu0 %vm134_vm1, %v123_v13  ;;  %v108_v15 = vmul.f32 0.01, %v76_v9  ;;  %v84_v16 = vadd.f32 %v523_v4, %v61_v12  ;;  %v346_v13 = vld [vmem:[%s754_s1 + $0x70] sm:$0xff] }
  0x17   :  { %v131_v17 = vsel %vm99_vm15, %v83_v8, %v115_v14 }
  0x18   :  { %468 = vmatprep.mubr.msk.f32.mxu1 %vm134_vm1, %v131_v17  ;;  %v124_v18 = vsel %vm92_vm0, %v76_v9, %v108_v15  ;;  %vm100_vm2 = vcmp.gt.f32.partialorder %v84_v16, 0.0  ;;  %v116_v19 = vmul.f32 0.01, %v84_v16 }
  0x19   :  { %457 = vmatmul.mubr.msk.f32.gmra.mxu0 %vm134_vm1, %v124_v18 }
  0x1a   :  { %v132_v2 = vsel %vm100_vm2, %v84_v16, %v116_v19 }
  0x1b   :  { %469 = vmatmul.mubr.msk.f32.gmra.mxu1 %vm134_vm1, %v132_v2  ;;  %vm387_vm1 = vcmask 64512  }
  0xcc   :  { %v449_v4 = vpop.f32.mrf.mxu0 }
  0xcd   :  { %v349_v24 = vadd.f32 %v449_v4, %v333_v20 }
  0xce   :  { %v461_v25 = vpop.f32.mrf.mxu1  ;;  %v253_v28 = vpop.f32.mrf.mxu0 }
  0xcf   :  { %v357_v27 = vadd.f32 %v461_v25, %v341_v21  ;;  %v372_v29 = vadd.f32 %v626_v22, %v349_v24  ;;  %v348_v30 = vadd.f32 %v332_v23, %v253_v28 }
  0xd0   :  { %v293_v31 = vpop.f32.mrf.mxu1  ;;  %v452_v37 = vpop.f32.mrf.mxu0 }
  0xd1   :  { %v380_v34 = vadd.f32 %v626_v22, %v357_v27  ;;  %v356_v35 = vadd.f32 %v340_v26, %v293_v31  ;;  %389 = vst.msk [vmem:[%s756_s6 + $0x8] sm:$0xff] %vm387_vm1, %v372_v29  ;;  %v371_v36 = vadd.f32 %v626_v22, %v348_v30  ;;  %v351_v42 = vadd.f32 %v452_v37, %v335_v32 }
  0xd2   :  { %v464_v38 = vpop.f32.mrf.mxu1  ;;  %v263_v44 = vpop.f32.mrf.mxu0 }
  0xd3   :  { %397 = vst.msk [vmem:[%s756_s6 + $0x48] sm:$0xff] %vm387_vm1, %v380_v34  ;;  %v379_v41 = vadd.f32 %v626_v22, %v356_v35  ;;  %v359_v43 = vadd.f32 %v464_v38, %v343_v33  ;;  %388 = vst.msk [vmem:[%s756_s6] sm:$0xff] %vm387_vm1, %v371_v36  ;;  %v374_v46 = vadd.f32 %v626_v22, %v351_v42 }
  0xd4   :  { %v303_v45 = vpop.f32.mrf.mxu1  ;;  %v350_v48 = vadd.f32 %v334_v39, %v263_v44 }
  0xd5   :  { %396 = vst.msk [vmem:[%s756_s6 + $0x40] sm:$0xff] %vm387_vm1, %v379_v41  ;;  %v382_v47 = vadd.f32 %v626_v22, %v359_v43  ;;  %v358_v49 = vadd.f32 %v342_v40, %v303_v45  ;;  %391 = vst.msk [vmem:[%s756_s6 + $0x18] sm:$0xff] %vm387_vm1, %v374_v46  ;;  %v455_v54 = vpop.f32.mrf.mxu0 }
  0xd6   :  { %v373_v52 = vadd.f32 %v626_v22, %v350_v48  ;;  %v467_v55 = vpop.f32.mrf.mxu1  ;;  %v353_v58 = vadd.f32 %v455_v54, %v337_v50 }
  0xd7   :  { %399 = vst.msk [vmem:[%s756_s6 + $0x58] sm:$0xff] %vm387_vm1, %v382_v47  ;;  %v381_v53 = vadd.f32 %v626_v22, %v358_v49  ;;  %v361_v59 = vadd.f32 %v467_v55, %v345_v51  ;;  %v273_v60 = vpop.f32.mrf.mxu0 }
  0xd8   :  { %390 = vst.msk [vmem:[%s756_s6 + $0x10] sm:$0xff] %vm387_vm1, %v373_v52  ;;  %v313_v61 = vpop.f32.mrf.mxu1  ;;  %v376_v63 = vadd.f32 %v626_v22, %v353_v58  ;;  %v352_v1 = vadd.f32 %v336_v56, %v273_v60 }
  0xd9   :  { %398 = vst.msk [vmem:[%s756_s6 + $0x50] sm:$0xff] %vm387_vm1, %v381_v53  ;;  %v384_v0 = vadd.f32 %v626_v22, %v361_v59  ;;  %v360_v3 = vadd.f32 %v344_v57, %v313_v61  ;;  %v458_v5 = vpop.f32.mrf.mxu0 }
  0xda   :  { %393 = vst.msk [vmem:[%s756_s6 + $0x28] sm:$0xff] %vm387_vm1, %v376_v63  ;;  %v375_v8 = vadd.f32 %v626_v22, %v352_v1  ;;  %v355_v10 = vadd.f32 %v458_v5, %v339_v62 }
  0xdb   :  { %401 = vst.msk [vmem:[%s756_s6 + $0x68] sm:$0xff] %vm387_vm1, %v384_v0  ;;  %v383_v9 = vadd.f32 %v626_v22, %v360_v3  ;;  %v470_v11 = vpop.f32.mrf.mxu1  ;;  %v283_v12 = vpop.f32.mrf.mxu0 }
  0xdc   :  { %392 = vst.msk [vmem:[%s756_s6 + $0x20] sm:$0xff] %vm387_vm1, %v375_v8  ;;  %v378_v14 = vadd.f32 %v626_v22, %v355_v10  ;;  %v363_v15 = vadd.f32 %v470_v11, %v347_v6  ;;  %v354_v16 = vadd.f32 %v338_v7, %v283_v12 }
  0xdd   :  { %400 = vst.msk [vmem:[%s756_s6 + $0x60] sm:$0xff] %vm387_vm1, %v383_v9  ;;  %v323_v17 = vpop.f32.mrf.mxu1 }
  0xde   :  { %395 = vst.msk [vmem:[%s756_s6 + $0x38] sm:$0xff] %vm387_vm1, %v378_v14  ;;  %v386_v18 = vadd.f32 %v626_v22, %v363_v15  ;;  %v377_v19 = vadd.f32 %v626_v22, %v354_v16  ;;  %v362_v2 = vadd.f32 %v346_v13, %v323_v17 }
  0xe0   :  { %403 = vst.msk [vmem:[%s756_s6 + $0x78] sm:$0xff] %vm387_vm1, %v386_v18  ;;  %394 = vst.msk [vmem:[%s756_s6 + $0x30] sm:$0xff] %vm387_vm1, %v377_v19  ;;  %v385_v20 = vadd.f32 %v626_v22, %v362_v2 }
  0xe2   :  { %402 = vst.msk [vmem:[%s756_s6 + $0x70] sm:$0xff] %vm387_vm1, %v385_v20 }

// kernel: d_residual_block_with_sn.2
= control target key start
LH: loop header
LB: loop body
LE: loop exit
PB: predicated region body
PF: predicated region fallthrough
CT: control target
= control target key end

     0   :  { %s7037_s27 = smov 0   ;;  %s8715_s0 = inlined_call_operand.vmem [shape: f32[8,9,9,4], index: 0, kind: input, shape index: {}]   ;;  %s8716_s1 = inlined_call_operand.vmem [shape: f32[512,4], index: 1, kind: input, shape index: {}]   ;;  %s8717_s2 = inlined_call_operand.vmem [shape: f32[9,4,4], index: 2, kind: input, shape index: {}]   ;;  %s8718_s3 = inlined_call_operand.vmem [shape: f32[1,4], index: 3, kind: input, shape index: {}]   ;;  %s8719_s4 = inlined_call_operand.vmem [shape: f32[4,8], index: 4, kind: input, shape index: {}]   ;;  %s8720_s5 = inlined_call_operand.vmem [shape: f32[1,8], index: 5, kind: input, shape index: {}]   ;;  %s8721_s6 = inlined_call_operand.vmem [shape: f32[128,4], index: 6, kind: output, shape index: {0}]   ;;  %s8722_s7 = inlined_call_operand.vmem [shape: f32[128,8], index: 7, kind: output, shape index: {1}]   ;;  %s8723_s8 = inlined_call_operand.vmem [shape: f32[2,8,4], index: 8, kind: output, shape index: {2}]  }
   0x1 LB: > { %s7043_s28 = sadd.s32 4294967295, %s6990_s27   ;;  %p5571_p0 = scmp.ge.s32.totalorder %s6990_s27, 1  ;;  %s6990_s27 = sphi %s7037_s27, %s19_s27  }
   0x2   : > { %p280_p1 = scmp.lt.s32.totalorder %s6990_s27, 3 }
   0x4   : > { %p281_p2 = pnand %p5571_p0, %p280_p1 }
   0x6   : > { %284 = sbr.rel (%p281_p2) target bundleno = 538 (0x21a), region = 44 }
   0xb   : > { %v7050_v0 = vld [vmem:[%s8717_s2 + $0x4] sm:$0xf]  ;;  %vm417_vm0 = vcmask 1043456   ;;  %v7055_v1 = vld [vmem:[%s8717_s2] sm:$0xf]  ;;  %s5572_s11 = sshll.u32 %s7043_s28, 2 }
   0xc   : > { %6419 = vmatprep.subr.msk.mxu0 %vm417_vm0, %v7050_v0  ;;  %6433 = vmatprep.subr.msk.mxu1 %vm417_vm0, %v7055_v1  ;;  %p330_p3 = scmp.lt.s32.totalorder %s5572_s11, 7  ;;  %vm392_vm1 = vcmask 31744   ;;  %v7098_v8 = vld [vmem:[%s8717_s2 + $0x8] sm:$0xf]  ;;  %v7178_v22 = vld [vmem:[%s8717_s2 + $0xc] sm:$0xf] }
   0xd   : > { %6420 = vmatpush3.msk.msra.mxu0 %vm417_vm0, %v7050_v0  ;;  %6434 = vmatpush3.msk.msra.mxu1 %vm417_vm0, %v7055_v1  ;;  %v7313_v42 = vld [vmem:[%s8717_s2 + $0x10] sm:$0xf]  ;;  %v7433_v56 = vld [vmem:[%s8717_s2 + $0x14] sm:$0xf]  ;;  %v7530_v62 = vld [vmem:[%s8717_s2 + $0x18] sm:$0xf] }
   0xe   : > { %s8776_s11 = smov (!%p330_p3, %s5572_s11), 7  ;;  %6447 = vmatprep.subr.msk.mxu0 %vm417_vm0, %v7050_v0  ;;  %6461 = vmatprep.subr.msk.mxu1 %vm417_vm0, %v7055_v1  ;;  %p354_p6 = scmp.lt.s32.totalorder %s7043_s28, 1  ;;  %vm5425_vm2 = vcmask 64512   ;;  %vm5024_vm3 = vcmask 1040384   ;;  %vm5026_vm4 = vcmask 1041408  }
   0xf   : > { %s6975_s12 = smul.u32 144, %s8776_s11 }
  0x11   : > { %s7073_s15 = scalar_lea.vmem %s8715_s0, %s6975_s12  ;;  %s5574_s12 = sshll.u32 %s7043_s28, 5 }
  0x12   : > { %v5589_v2 = vld [vmem:[%s7073_s15 + $0x90] sm:$0xff]  ;;  %v375_v3 = vld [vmem:[%s7073_s15] sm:$0xff]  ;;  %p337_p4 = scmp.lt.s32.totalorder %s5574_s12, 63 }
  0x13   : > { %v7078_v4 = vld [vmem:[%s7073_s15 + $0xa0] sm:$0xff]  ;;  %6421 = vmatprep.mubr.msk.f32.mxu0 %vm392_vm1, %v5589_v2  ;;  %6435 = vmatprep.mubr.msk.f32.mxu1 %vm392_vm1, %v375_v3  ;;  %v7083_v5 = vld [vmem:[%s7073_s15 + $0x10] sm:$0xff] }
  0x14   : > { %v7086_v6 = vld [vmem:[%s7073_s15 + $0xb0] sm:$0xff]  ;;  %v7089_v7 = vld [vmem:[%s7073_s15 + $0x20] sm:$0xff]  ;;  %6422 = vmatmul.mubr.msk.f32.vlgmr.msra.gmra.mxu0 %vm392_vm1, %v7078_v4  ;;  %6436 = vmatmul.mubr.msk.f32.vlgmr.msra.gmra.mxu1 %vm392_vm1, %v7083_v5  ;;  %s8778_s12 = smov (!%p337_p4, %s5574_s12), 63 }
  0x15   : > { %6448 = vmatpush3.msk.msra.mxu0 %vm417_vm0, %v7050_v0  ;;  %6462 = vmatpush3.msk.msra.mxu1 %vm417_vm0, %v7055_v1  ;;  %v7105_v9 = vld [vmem:[%s7073_s15 + $0xc0] sm:$0xff]  ;;  %v7108_v10 = vld [vmem:[%s7073_s15 + $0x30] sm:$0xff]  ;;  %s5575_s13 = sshll.u32 %s8778_s12, 3 }
  0x16   : > { %6424 = vmatprep.mubr.msk.f32.mxu0 %vm392_vm1, %v7086_v6  ;;  %6438 = vmatprep.mubr.msk.f32.mxu1 %vm392_vm1, %v7089_v7  ;;  %v7115_v11 = vld [vmem:[%s7073_s15 + $0xd0] sm:$0xff]  ;;  %v7118_v12 = vld [vmem:[%s7073_s15 + $0x40] sm:$0xff]  ;;  %s8080_s17 = scalar_lea.vmem %s8716_s1, %s5575_s13 }
  0x17   : > { %6475 = vmatprep.subr.msk.mxu0 %vm417_vm0, %v7098_v8  ;;  %6489 = vmatprep.subr.msk.mxu1 %vm417_vm0, %v7098_v8  ;;  %v7133_v13 = vld [vmem:[%s7073_s15 + $0xe0] sm:$0xff]  ;;  %v7136_v14 = vld [vmem:[%s7073_s15 + $0x50] sm:$0xff] }
  0x18   : > { %6425 = vmatmul.mubr.msk.f32.gmra.mxu0 %vm392_vm1, %v7105_v9  ;;  %6439 = vmatmul.mubr.msk.f32.gmra.mxu1 %vm392_vm1, %v7108_v10  ;;  %v7139_v15 = vld [vmem:[%s7073_s15 + $0xf0] sm:$0xff]  ;;  %v7142_v16 = vld [vmem:[%s7073_s15 + $0x60] sm:$0xff] }
  0x19   : > { %6427 = vmatprep.mubr.msk.f32.mxu0 %vm392_vm1, %v7115_v11  ;;  %6441 = vmatprep.mubr.msk.f32.mxu1 %vm392_vm1, %v7118_v12  ;;  %v7153_v17 = vld [vmem:[%s7073_s15 + $0x100] sm:$0xff]  ;;  %v7156_v18 = vld [vmem:[%s7073_s15 + $0x70] sm:$0xff] }
  0x1a   : > { %v658_v19 = vld [vmem:[%s7073_s15 + $0x1] sm:$0xff]  ;;  %v7166_v20 = vld [vmem:[%s7073_s15 + $0x11] sm:$0xff] }
  0x1b   : > { %v7169_v21 = vld [vmem:[%s7073_s15 + $0x21] sm:$0xff]  ;;  %v7185_v23 = vld [vmem:[%s7073_s15 + $0x31] sm:$0xff] }
  0x1c   : > { %6428 = vmatmul.mubr.msk.f32.gmra.mxu0 %vm392_vm1, %v7133_v13  ;;  %6442 = vmatmul.mubr.msk.f32.gmra.mxu1 %vm392_vm1, %v7136_v14  ;;  %v7192_v24 = vld [vmem:[%s7073_s15 + $0x41] sm:$0xff]  ;;  %v7207_v25 = vld [vmem:[%s7073_s15 + $0x51] sm:$0xff] }
  0x1d   : > { %6430 = vmatprep.mubr.msk.f32.mxu0 %vm392_vm1, %v7139_v15  ;;  %6444 = vmatprep.mubr.msk.f32.mxu1 %vm392_vm1, %v7142_v16  ;;  %v7210_v26 = vld [vmem:[%s7073_s15 + $0x61] sm:$0xff]  ;;  %v7221_v27 = vld [vmem:[%s7073_s15 + $0x71] sm:$0xff] }
  0x1e   : > { %v5642_v28 = vld [vmem:[%s7073_s15 + $0x91] sm:$0xff]  ;;  %v7231_v29 = vld [vmem:[%s7073_s15 + $0xa1] sm:$0xff] }
  0x1f   : > { %v7234_v30 = vld [vmem:[%s7073_s15 + $0xb1] sm:$0xff]  ;;  %v7245_v31 = vld [vmem:[%s7073_s15 + $0xc1] sm:$0xff] }
  0x20   : > { %6431 = vmatmul.mubr.msk.f32.gmra.mxu0 %vm392_vm1, %v7153_v17  ;;  %6445 = vmatmul.mubr.msk.f32.gmra.mxu1 %vm392_vm1, %v7156_v18  ;;  %v7252_v32 = vld [vmem:[%s7073_s15 + $0xd1] sm:$0xff]  ;;  %v7267_v33 = vld [vmem:[%s7073_s15 + $0xe1] sm:$0xff] }
  0x21   : > { %6449 = vmatprep.mubr.msk.f32.mxu0 %vm392_vm1, %v658_v19  ;;  %6463 = vmatprep.mubr.msk.f32.mxu1 %vm392_vm1, %v5589_v2  ;;  %v7270_v34 = vld [vmem:[%s7073_s15 + $0xf1] sm:$0xff]  ;;  %v7281_v35 = vld [vmem:[%s7073_s15 + $0x101] sm:$0xff] }
  0x22   : > { %v5659_v36 = vld [vmem:[%s7073_s15 + $0x120] sm:$0xff]  ;;  %v7285_v37 = vld [vmem:[%s7073_s15 + $0x1b0] sm:$0xff] }
  0x23   : > { %v7295_v38 = vld [vmem:[%s7073_s15 + $0x130] sm:$0xff]  ;;  %v7298_v39 = vld [vmem:[%s7073_s15 + $0x1c0] sm:$0xff] }
  0x24   : > { %6450 = vmatmul.mubr.msk.f32.vlgmr.msra.gmra.mxu0 %vm392_vm1, %v7166_v20  ;;  %6464 = vmatmul.mubr.msk.f32.vlgmr.msra.gmra.mxu1 %vm392_vm1, %v7078_v4  ;;  %v7301_v40 = vld [vmem:[%s7073_s15 + $0x140] sm:$0xff]  ;;  %v7304_v41 = vld [vmem:[%s7073_s15 + $0x1d0] sm:$0xff] }
  0x25   : > { %6476 = vmatpush3.msk.msra.mxu0 %vm417_vm0, %v7098_v8  ;;  %6490 = vmatpush3.msk.msra.mxu1 %vm417_vm0, %v7098_v8  ;;  %v7320_v43 = vld [vmem:[%s7073_s15 + $0x150] sm:$0xff]  ;;  %v7323_v44 = vld [vmem:[%s7073_s15 + $0x1e0] sm:$0xff] }
  0x26   : > { %6452 = vmatprep.mubr.msk.f32.mxu0 %vm392_vm1, %v7169_v21  ;;  %6466 = vmatprep.mubr.msk.f32.mxu1 %vm392_vm1, %v7086_v6  ;;  %v7330_v45 = vld [vmem:[%s7073_s15 + $0x160] sm:$0xff]  ;;  %v7333_v46 = vld [vmem:[%s7073_s15 + $0x1f0] sm:$0xff] }
  0x27   : > { %6503 = vmatprep.subr.msk.mxu0 %vm417_vm0, %v7178_v22  ;;  %6517 = vmatprep.subr.msk.mxu1 %vm417_vm0, %v7050_v0  ;;  %v7348_v47 = vld [vmem:[%s7073_s15 + $0x170] sm:$0xff]  ;;  %v7351_v48 = vld [vmem:[%s7073_s15 + $0x200] sm:$0xff] }
  0x28   : > { %6453 = vmatmul.mubr.msk.f32.gmra.mxu0 %vm392_vm1, %v7185_v23  ;;  %6467 = vmatmul.mubr.msk.f32.gmra.mxu1 %vm392_vm1, %v7105_v9  ;;  %v7354_v49 = vld [vmem:[%s7073_s15 + $0x180] sm:$0xff]  ;;  %v7357_v50 = vld [vmem:[%s7073_s15 + $0x210] sm:$0xff] }
  0x29   : > { %6455 = vmatprep.mubr.msk.f32.mxu0 %vm392_vm1, %v7192_v24  ;;  %6469 = vmatprep.mubr.msk.f32.mxu1 %vm392_vm1, %v7115_v11  ;;  %v7368_v51 = vld [vmem:[%s7073_s15 + $0x190] sm:$0xff]  ;;  %v7371_v52 = vld [vmem:[%s7073_s15 + $0x220] sm:$0xff] }
  0x2a   : > { %v5720_v53 = vld [vmem:[%s7073_s15 + $0x121] sm:$0xff]  ;;  %v7421_v54 = vld [vmem:[%s7073_s15 + $0x131] sm:$0xff] }
  0x2b   : > { %v7424_v55 = vld [vmem:[%s7073_s15 + $0x141] sm:$0xff]  ;;  %v7440_v57 = vld [vmem:[%s7073_s15 + $0x151] sm:$0xff] }
  0x2c   : > { %6456 = vmatmul.mubr.msk.f32.gmra.mxu0 %vm392_vm1, %v7207_v25  ;;  %6470 = vmatmul.mubr.msk.f32.gmra.mxu1 %vm392_vm1, %v7133_v13  ;;  %v7447_v58 = vld [vmem:[%s7073_s15 + $0x161] sm:$0xff]  ;;  %v7462_v59 = vld [vmem:[%s7073_s15 + $0x171] sm:$0xff] }
  0x2d   : > { %6458 = vmatprep.mubr.msk.f32.mxu0 %vm392_vm1, %v7210_v26  ;;  %6472 = vmatprep.mubr.msk.f32.mxu1 %vm392_vm1, %v7139_v15  ;;  %v7465_v60 = vld [vmem:[%s7073_s15 + $0x181] sm:$0xff]  ;;  %v7476_v61 = vld [vmem:[%s7073_s15 + $0x191] sm:$0xff] }
  0x2e   : > { %v5773_v63 = vld [vmem:[%s7073_s15 + $0x1b1] sm:$0xff]  ;;  %v7582_v2 = vld [vmem:[%s7073_s15 + $0x1e1] sm:$0xff] }
  0x2f   : > { %v7589_v3 = vld [vmem:[%s7073_s15 + $0x1f1] sm:$0xff] }
  0x30   : > { %6459 = vmatmul.mubr.msk.f32.gmra.mxu0 %vm392_vm1, %v7221_v27  ;;  %6473 = vmatmul.mubr.msk.f32.gmra.mxu1 %vm392_vm1, %v7153_v17 }
  0x31   : > { %6477 = vmatprep.mubr.msk.f32.mxu0 %vm392_vm1, %v658_v19  ;;  %6491 = vmatprep.mubr.msk.f32.mxu1 %vm392_vm1, %v5642_v28  ;;  %v7607_v19 = vld [vmem:[%s7073_s15 + $0x211] sm:$0xff]  ;;  %v7618_v28 = vld [vmem:[%s7073_s15 + $0x221] sm:$0xff] }
  0x34   : > { %6478 = vmatmul.mubr.msk.f32.vlgmr.msra.gmra.mxu0 %vm392_vm1, %v7166_v20  ;;  %6492 = vmatmul.mubr.msk.f32.vlgmr.msra.gmra.mxu1 %vm392_vm1, %v7231_v29 }
  0x35   : > { %6504 = vmatpush3.msk.msra.mxu0 %vm417_vm0, %v7178_v22  ;;  %6518 = vmatpush3.msk.msra.mxu1 %vm417_vm0, %v7050_v0 }
  0x36   : > { %6480 = vmatprep.mubr.msk.f32.mxu0 %vm392_vm1, %v7169_v21  ;;  %6494 = vmatprep.mubr.msk.f32.mxu1 %vm392_vm1, %v7234_v30 }
  0x37   : > { %6531 = vmatprep.subr.msk.mxu0 %vm417_vm0, %v7055_v1  ;;  %6545 = vmatprep.subr.msk.mxu1 %vm417_vm0, %v7178_v22 }
  0x38   : > { %6481 = vmatmul.mubr.msk.f32.gmra.mxu0 %vm392_vm1, %v7185_v23  ;;  %6495 = vmatmul.mubr.msk.f32.gmra.mxu1 %vm392_vm1, %v7245_v31 }
  0x39   : > { %6483 = vmatprep.mubr.msk.f32.mxu0 %vm392_vm1, %v7192_v24  ;;  %6497 = vmatprep.mubr.msk.f32.mxu1 %vm392_vm1, %v7252_v32 }
  0x3c   : > { %6484 = vmatmul.mubr.msk.f32.gmra.mxu0 %vm392_vm1, %v7207_v25  ;;  %6498 = vmatmul.mubr.msk.f32.gmra.mxu1 %vm392_vm1, %v7267_v33 }
  0x3d   : > { %6486 = vmatprep.mubr.msk.f32.mxu0 %vm392_vm1, %v7210_v26  ;;  %6500 = vmatprep.mubr.msk.f32.mxu1 %vm392_vm1, %v7270_v34 }
  0x40   : > { %6487 = vmatmul.mubr.msk.f32.gmra.mxu0 %vm392_vm1, %v7221_v27  ;;  %6501 = vmatmul.mubr.msk.f32.gmra.mxu1 %vm392_vm1, %v7281_v35 }
  0x41   : > { %6505 = vmatprep.mubr.msk.f32.mxu0 %vm392_vm1, %v5659_v36  ;;  %6519 = vmatprep.mubr.msk.f32.mxu1 %vm392_vm1, %v7285_v37 }
  0x44   : > { %6506 = vmatmul.mubr.msk.f32.vlgmr.msra.gmra.mxu0 %vm392_vm1, %v7295_v38  ;;  %6520 = vmatmul.mubr.msk.f32.vlgmr.msra.gmra.mxu1 %vm392_vm1, %v7298_v39 }
  0x45   : > { %6532 = vmatpush3.msk.msra.mxu0 %vm417_vm0, %v7055_v1  ;;  %6546 = vmatpush3.msk.msra.mxu1 %vm417_vm0, %v7178_v22 }
  0x46   : > { %6508 = vmatprep.mubr.msk.f32.mxu0 %vm392_vm1, %v7301_v40  ;;  %6522 = vmatprep.mubr.msk.f32.mxu1 %vm392_vm1, %v7304_v41 }
  0x47   : > { %6559 = vmatprep.subr.msk.mxu0 %vm417_vm0, %v7313_v42  ;;  %6573 = vmatprep.subr.msk.mxu1 %vm417_vm0, %v7050_v0 }
  0x48   : > { %6509 = vmatmul.mubr.msk.f32.gmra.mxu0 %vm392_vm1, %v7320_v43  ;;  %6523 = vmatmul.mubr.msk.f32.gmra.mxu1 %vm392_vm1, %v7323_v44 }
  0x49   : > { %6511 = vmatprep.mubr.msk.f32.mxu0 %vm392_vm1, %v7330_v45  ;;  %6525 = vmatprep.mubr.msk.f32.mxu1 %vm392_vm1, %v7333_v46 }
  0x4c   : > { %6512 = vmatmul.mubr.msk.f32.gmra.mxu0 %vm392_vm1, %v7348_v47  ;;  %6526 = vmatmul.mubr.msk.f32.gmra.mxu1 %vm392_vm1, %v7351_v48 }
  0x4d   : > { %6514 = vmatprep.mubr.msk.f32.mxu0 %vm392_vm1, %v7354_v49  ;;  %6528 = vmatprep.mubr.msk.f32.mxu1 %vm392_vm1, %v7357_v50 }
  0x50   : > { %6515 = vmatmul.mubr.msk.f32.gmra.mxu0 %vm392_vm1, %v7368_v51  ;;  %6529 = vmatmul.mubr.msk.f32.gmra.mxu1 %vm392_vm1, %v7371_v52 }
  0x51   : > { %6533 = vmatprep.mubr.msk.f32.mxu0 %vm392_vm1, %v5659_v36  ;;  %6547 = vmatprep.mubr.msk.f32.mxu1 %vm392_vm1, %v7285_v37  ;;  %v7635_v36 = vld [vmem:[%s8717_s2 + $0x1c] sm:$0xf] }
  0x54   : > { %6534 = vmatmul.mubr.msk.f32.vlgmr.msra.gmra.mxu0 %vm392_vm1, %v7295_v38  ;;  %6548 = vmatmul.mubr.msk.f32.vlgmr.msra.gmra.mxu1 %vm392_vm1, %v7298_v39 }
  0x55   : > { %6560 = vmatpush3.msk.msra.mxu0 %vm417_vm0, %v7313_v42  ;;  %6574 = vmatpush3.msk.msra.mxu1 %vm417_vm0, %v7050_v0  ;;  %v7568_v0 = vld [vmem:[%s7073_s15 + $0x1c1] sm:$0xff] }
  0x56   : > { %6536 = vmatprep.mubr.msk.f32.mxu0 %vm392_vm1, %v7301_v40  ;;  %6550 = vmatprep.mubr.msk.f32.mxu1 %vm392_vm1, %v7304_v41 }
  0x57   : > { %6587 = vmatprep.subr.msk.mxu0 %vm417_vm0, %v7055_v1  ;;  %6601 = vmatprep.subr.msk.mxu1 %vm417_vm0, %v7098_v8 }
  0x58   : > { %6537 = vmatmul.mubr.msk.f32.gmra.mxu0 %vm392_vm1, %v7320_v43  ;;  %6551 = vmatmul.mubr.msk.f32.gmra.mxu1 %vm392_vm1, %v7323_v44 }
  0x59   : > { %6539 = vmatprep.mubr.msk.f32.mxu0 %vm392_vm1, %v7330_v45  ;;  %6553 = vmatprep.mubr.msk.f32.mxu1 %vm392_vm1, %v7333_v46 }
  0x5c   : > { %6540 = vmatmul.mubr.msk.f32.gmra.mxu0 %vm392_vm1, %v7348_v47  ;;  %6554 = vmatmul.mubr.msk.f32.gmra.mxu1 %vm392_vm1, %v7351_v48 }
  0x5d   : > { %6542 = vmatprep.mubr.msk.f32.mxu0 %vm392_vm1, %v7354_v49  ;;  %6556 = vmatprep.mubr.msk.f32.mxu1 %vm392_vm1, %v7357_v50 }
  0x60   : > { %6543 = vmatmul.mubr.msk.f32.gmra.mxu0 %vm392_vm1, %v7368_v51  ;;  %6557 = vmatmul.mubr.msk.f32.gmra.mxu1 %vm392_vm1, %v7371_v52 }
  0x61   : > { %6561 = vmatprep.mubr.msk.f32.mxu0 %vm392_vm1, %v7285_v37  ;;  %6575 = vmatprep.mubr.msk.f32.mxu1 %vm392_vm1, %v5720_v53 }
  0x64   : > { %6562 = vmatmul.mubr.msk.f32.vlgmr.msra.gmra.mxu0 %vm392_vm1, %v7298_v39  ;;  %6576 = vmatmul.mubr.msk.f32.vlgmr.msra.gmra.mxu1 %vm392_vm1, %v7421_v54 }
  0x65   : > { %6588 = vmatpush3.msk.msra.mxu0 %vm417_vm0, %v7055_v1  ;;  %6602 = vmatpush3.msk.msra.mxu1 %vm417_vm0, %v7098_v8  ;;  %v7571_v1 = vld [vmem:[%s7073_s15 + $0x1d1] sm:$0xff] }
  0x66   : > { %6564 = vmatprep.mubr.msk.f32.mxu0 %vm392_vm1, %v7304_v41  ;;  %6578 = vmatprep.mubr.msk.f32.mxu1 %vm392_vm1, %v7424_v55 }
  0x67   : > { %6615 = vmatprep.subr.msk.mxu0 %vm417_vm0, %v7313_v42  ;;  %6629 = vmatprep.subr.msk.mxu1 %vm417_vm0, %v7433_v56 }
  0x68   : > { %6565 = vmatmul.mubr.msk.f32.gmra.mxu0 %vm392_vm1, %v7323_v44  ;;  %6579 = vmatmul.mubr.msk.f32.gmra.mxu1 %vm392_vm1, %v7440_v57 }
  0x69   : > { %6567 = vmatprep.mubr.msk.f32.mxu0 %vm392_vm1, %v7333_v46  ;;  %6581 = vmatprep.mubr.msk.f32.mxu1 %vm392_vm1, %v7447_v58 }
  0x6c   : > { %6568 = vmatmul.mubr.msk.f32.gmra.mxu0 %vm392_vm1, %v7351_v48  ;;  %6582 = vmatmul.mubr.msk.f32.gmra.mxu1 %vm392_vm1, %v7462_v59 }
  0x6d   : > { %6570 = vmatprep.mubr.msk.f32.mxu0 %vm392_vm1, %v7357_v50  ;;  %6584 = vmatprep.mubr.msk.f32.mxu1 %vm392_vm1, %v7465_v60 }
  0x70   : > { %6571 = vmatmul.mubr.msk.f32.gmra.mxu0 %vm392_vm1, %v7371_v52  ;;  %6585 = vmatmul.mubr.msk.f32.gmra.mxu1 %vm392_vm1, %v7476_v61 }
  0x71   : > { %6589 = vmatprep.mubr.msk.f32.mxu0 %vm392_vm1, %v7285_v37  ;;  %6603 = vmatprep.mubr.msk.f32.mxu1 %vm392_vm1, %v5720_v53 }
  0x74   : > { %6590 = vmatmul.mubr.msk.f32.vlgmr.msra.gmra.mxu0 %vm392_vm1, %v7298_v39  ;;  %6604 = vmatmul.mubr.msk.f32.vlgmr.msra.gmra.mxu1 %vm392_vm1, %v7421_v54 }
  0x75   : > { %6616 = vmatpush3.msk.msra.mxu0 %vm417_vm0, %v7313_v42  ;;  %6630 = vmatpush3.msk.msra.mxu1 %vm417_vm0, %v7433_v56 }
  0x76   : > { %6592 = vmatprep.mubr.msk.f32.mxu0 %vm392_vm1, %v7304_v41  ;;  %6606 = vmatprep.mubr.msk.f32.mxu1 %vm392_vm1, %v7424_v55 }
  0x77   : > { %6643 = vmatprep.subr.msk.mxu0 %vm417_vm0, %v7098_v8  ;;  %6657 = vmatprep.subr.msk.mxu1 %vm417_vm0, %v7433_v56 }
  0x78   : > { %6593 = vmatmul.mubr.msk.f32.gmra.mxu0 %vm392_vm1, %v7323_v44  ;;  %6607 = vmatmul.mubr.msk.f32.gmra.mxu1 %vm392_vm1, %v7440_v57 }
  0x79   : > { %6595 = vmatprep.mubr.msk.f32.mxu0 %vm392_vm1, %v7333_v46  ;;  %6609 = vmatprep.mubr.msk.f32.mxu1 %vm392_vm1, %v7447_v58 }
  0x7c   : > { %6596 = vmatmul.mubr.msk.f32.gmra.mxu0 %vm392_vm1, %v7351_v48  ;;  %6610 = vmatmul.mubr.msk.f32.gmra.mxu1 %vm392_vm1, %v7462_v59 }
  0x7d   : > { %6598 = vmatprep.mubr.msk.f32.mxu0 %vm392_vm1, %v7357_v50  ;;  %6612 = vmatprep.mubr.msk.f32.mxu1 %vm392_vm1, %v7465_v60 }
  0x80   : > { %6599 = vmatmul.mubr.msk.f32.gmra.mxu0 %vm392_vm1, %v7371_v52  ;;  %6613 = vmatmul.mubr.msk.f32.gmra.mxu1 %vm392_vm1, %v7476_v61 }
  0x81   : > { %6617 = vmatprep.mubr.msk.f32.mxu0 %vm392_vm1, %v5720_v53  ;;  %6631 = vmatprep.mubr.msk.f32.mxu1 %vm392_vm1, %v5720_v53 }
  0x84   : > { %6618 = vmatmul.mubr.msk.f32.vlgmr.msra.gmra.mxu0 %vm392_vm1, %v7421_v54  ;;  %6632 = vmatmul.mubr.msk.f32.vlgmr.msra.gmra.mxu1 %vm392_vm1, %v7421_v54 }
  0x85   : > { %6644 = vmatpush3.msk.msra.mxu0 %vm417_vm0, %v7098_v8  ;;  %6658 = vmatpush3.msk.msra.mxu1 %vm417_vm0, %v7433_v56  ;;  %v7604_v8 = vld [vmem:[%s7073_s15 + $0x201] sm:$0xff] }
  0x86   : > { %6620 = vmatprep.mubr.msk.f32.mxu0 %vm392_vm1, %v7424_v55  ;;  %6634 = vmatprep.mubr.msk.f32.mxu1 %vm392_vm1, %v7424_v55 }
  0x87   : > { %6671 = vmatprep.subr.msk.mxu0 %vm417_vm0, %v7178_v22  ;;  %6685 = vmatprep.subr.msk.mxu1 %vm417_vm0, %v7530_v62 }
  0x88   : > { %6621 = vmatmul.mubr.msk.f32.gmra.mxu0 %vm392_vm1, %v7440_v57  ;;  %6635 = vmatmul.mubr.msk.f32.gmra.mxu1 %vm392_vm1, %v7440_v57 }
  0x89   : > { %6623 = vmatprep.mubr.msk.f32.mxu0 %vm392_vm1, %v7447_v58  ;;  %6637 = vmatprep.mubr.msk.f32.mxu1 %vm392_vm1, %v7447_v58 }
  0x8c   : > { %6624 = vmatmul.mubr.msk.f32.gmra.mxu0 %vm392_vm1, %v7462_v59  ;;  %6638 = vmatmul.mubr.msk.f32.gmra.mxu1 %vm392_vm1, %v7462_v59 }
  0x8d   : > { %6626 = vmatprep.mubr.msk.f32.mxu0 %vm392_vm1, %v7465_v60  ;;  %6640 = vmatprep.mubr.msk.f32.mxu1 %vm392_vm1, %v7465_v60 }
  0x90   : > { %6627 = vmatmul.mubr.msk.f32.gmra.mxu0 %vm392_vm1, %v7476_v61  ;;  %6641 = vmatmul.mubr.msk.f32.gmra.mxu1 %vm392_vm1, %v7476_v61 }
  0x91   : > { %6645 = vmatprep.mubr.msk.f32.mxu0 %vm392_vm1, %v5773_v63  ;;  %6659 = vmatprep.mubr.msk.f32.mxu1 %vm392_vm1, %v5773_v63  ;;  %v5876_v63 = vld [vmem:[%s7073_s15 + $0x81] sm:$0xff] }
  0x94   : > { %6646 = vmatmul.mubr.msk.f32.vlgmr.msra.gmra.mxu0 %vm392_vm1, %v7568_v0  ;;  %6660 = vmatmul.mubr.msk.f32.vlgmr.msra.gmra.mxu1 %vm392_vm1, %v7568_v0 }
  0x95   : > { %6672 = vmatpush3.msk.msra.mxu0 %vm417_vm0, %v7178_v22  ;;  %6686 = vmatpush3.msk.msra.mxu1 %vm417_vm0, %v7530_v62 }
  0x96   : > { %6648 = vmatprep.mubr.msk.f32.mxu0 %vm392_vm1, %v7571_v1  ;;  %6662 = vmatprep.mubr.msk.f32.mxu1 %vm392_vm1, %v7571_v1 }
  0x97   : > { %6699 = vmatprep.subr.msk.mxu0 %vm417_vm0, %v7178_v22  ;;  %6713 = vmatprep.subr.msk.mxu1 %vm417_vm0, %v7313_v42 }
  0x98   : > { %6649 = vmatmul.mubr.msk.f32.gmra.mxu0 %vm392_vm1, %v7582_v2  ;;  %6663 = vmatmul.mubr.msk.f32.gmra.mxu1 %vm392_vm1, %v7582_v2 }
  0x99   : > { %6651 = vmatprep.mubr.msk.f32.mxu0 %vm392_vm1, %v7589_v3  ;;  %6665 = vmatprep.mubr.msk.f32.mxu1 %vm392_vm1, %v7589_v3 }
  0x9c   : > { %6652 = vmatmul.mubr.msk.f32.gmra.mxu0 %vm392_vm1, %v7604_v8  ;;  %6666 = vmatmul.mubr.msk.f32.gmra.mxu1 %vm392_vm1, %v7604_v8 }
  0x9d   : > { %6654 = vmatprep.mubr.msk.f32.mxu0 %vm392_vm1, %v7607_v19  ;;  %6668 = vmatprep.mubr.msk.f32.mxu1 %vm392_vm1, %v7607_v19 }
  0xa0   : > { %6655 = vmatmul.mubr.msk.f32.gmra.mxu0 %vm392_vm1, %v7618_v28  ;;  %6669 = vmatmul.mubr.msk.f32.gmra.mxu1 %vm392_vm1, %v7618_v28 }
  0xa1   : > { %6673 = vmatprep.mubr.msk.f32.mxu0 %vm392_vm1, %v7083_v5  ;;  %6687 = vmatprep.mubr.msk.f32.mxu1 %vm392_vm1, %v7083_v5  ;;  %v5806_v5 = vld [vmem:[%s7073_s15 + $0x80] sm:$0xff] }
  0xa4   : > { %6674 = vmatmul.mubr.msk.f32.vlgmr.msra.gmra.mxu0 %vm392_vm1, %v7089_v7  ;;  %6688 = vmatmul.mubr.msk.f32.vlgmr.msra.gmra.mxu1 %vm392_vm1, %v7089_v7  ;;  %v5832_v7 = vld [vmem:[%s7073_s15 + $0x110] sm:$0xff] }
  0xa5   : > { %6700 = vmatpush3.msk.msra.mxu0 %vm417_vm0, %v7178_v22  ;;  %6714 = vmatpush3.msk.msra.mxu1 %vm417_vm0, %v7313_v42 }
  0xa6   : > { %6676 = vmatprep.mubr.msk.f32.mxu0 %vm392_vm1, %v7108_v10  ;;  %6690 = vmatprep.mubr.msk.f32.mxu1 %vm392_vm1, %v7108_v10  ;;  %v7718_v10 = vld [vmem:[%s8717_s2 + $0x20] sm:$0xf] }
  0xa7   : > { %6727 = vmatprep.subr.msk.mxu0 %vm417_vm0, %v7530_v62  ;;  %6741 = vmatprep.subr.msk.mxu1 %vm417_vm0, %v7635_v36 }
  0xa8   : > { %6677 = vmatmul.mubr.msk.f32.gmra.mxu0 %vm392_vm1, %v7118_v12  ;;  %6691 = vmatmul.mubr.msk.f32.gmra.mxu1 %vm392_vm1, %v7118_v12 }
  0xa9   : > { %6679 = vmatprep.mubr.msk.f32.mxu0 %vm392_vm1, %v7136_v14  ;;  %6693 = vmatprep.mubr.msk.f32.mxu1 %vm392_vm1, %v7136_v14 }
  0xac   : > { %6680 = vmatmul.mubr.msk.f32.gmra.mxu0 %vm392_vm1, %v7142_v16  ;;  %6694 = vmatmul.mubr.msk.f32.gmra.mxu1 %vm392_vm1, %v7142_v16 }
  0xad   : > { %6682 = vmatprep.mubr.msk.f32.mxu0 %vm392_vm1, %v7156_v18  ;;  %6696 = vmatprep.mubr.msk.f32.mxu1 %vm392_vm1, %v7156_v18 }
  0xb0   : > { %6683 = vmatmul.mubr.msk.f32.gmra.mxu0 %vm392_vm1, %v5806_v5  ;;  %6697 = vmatmul.mubr.msk.f32.gmra.mxu1 %vm392_vm1, %v5806_v5 }
  0xb1   : > { %6701 = vmatprep.mubr.msk.f32.mxu0 %vm392_vm1, %v7078_v4  ;;  %6715 = vmatprep.mubr.msk.f32.mxu1 %vm392_vm1, %v7078_v4 }
  0xb4   : > { %6702 = vmatmul.mubr.msk.f32.vlgmr.msra.gmra.mxu0 %vm392_vm1, %v7086_v6  ;;  %6716 = vmatmul.mubr.msk.f32.vlgmr.msra.gmra.mxu1 %vm392_vm1, %v7086_v6 }
  0xb5   : > { %6728 = vmatpush3.msk.msra.mxu0 %vm417_vm0, %v7530_v62  ;;  %6742 = vmatpush3.msk.msra.mxu1 %vm417_vm0, %v7635_v36 }
  0xb6   : > { %6704 = vmatprep.mubr.msk.f32.mxu0 %vm392_vm1, %v7105_v9  ;;  %6718 = vmatprep.mubr.msk.f32.mxu1 %vm392_vm1, %v7105_v9 }
  0xb7   : > { %6755 = vmatprep.subr.msk.mxu0 %vm417_vm0, %v7313_v42  ;;  %6769 = vmatprep.subr.msk.mxu1 %vm417_vm0, %v7433_v56 }
  0xb8   : > { %6705 = vmatmul.mubr.msk.f32.gmra.mxu0 %vm392_vm1, %v7115_v11  ;;  %6719 = vmatmul.mubr.msk.f32.gmra.mxu1 %vm392_vm1, %v7115_v11 }
  0xb9   : > { %6707 = vmatprep.mubr.msk.f32.mxu0 %vm392_vm1, %v7133_v13  ;;  %6721 = vmatprep.mubr.msk.f32.mxu1 %vm392_vm1, %v7133_v13 }
  0xbc   : > { %6708 = vmatmul.mubr.msk.f32.gmra.mxu0 %vm392_vm1, %v7139_v15  ;;  %6722 = vmatmul.mubr.msk.f32.gmra.mxu1 %vm392_vm1, %v7139_v15 }
  0xbd   : > { %6710 = vmatprep.mubr.msk.f32.mxu0 %vm392_vm1, %v7153_v17  ;;  %6724 = vmatprep.mubr.msk.f32.mxu1 %vm392_vm1, %v7153_v17 }
  0xc0   : > { %6711 = vmatmul.mubr.msk.f32.gmra.mxu0 %vm392_vm1, %v5832_v7  ;;  %6725 = vmatmul.mubr.msk.f32.gmra.mxu1 %vm392_vm1, %v5832_v7 }
  0xc1   : > { %6729 = vmatprep.mubr.msk.f32.mxu0 %vm392_vm1, %v7078_v4  ;;  %6743 = vmatprep.mubr.msk.f32.mxu1 %vm392_vm1, %v7078_v4 }
  0xc4   : > { %6730 = vmatmul.mubr.msk.f32.vlgmr.msra.gmra.mxu0 %vm392_vm1, %v7086_v6  ;;  %6744 = vmatmul.mubr.msk.f32.vlgmr.msra.gmra.mxu1 %vm392_vm1, %v7086_v6 }
  0xc5   : > { %6756 = vmatpush3.msk.msra.mxu0 %vm417_vm0, %v7313_v42  ;;  %6770 = vmatpush3.msk.msra.mxu1 %vm417_vm0, %v7433_v56 }
  0xc6   : > { %6732 = vmatprep.mubr.msk.f32.mxu0 %vm392_vm1, %v7105_v9  ;;  %6746 = vmatprep.mubr.msk.f32.mxu1 %vm392_vm1, %v7105_v9 }
  0xc7   : > { %6783 = vmatprep.subr.msk.mxu0 %vm417_vm0, %v7635_v36  ;;  %6797 = vmatprep.subr.msk.mxu1 %vm417_vm0, %v7718_v10 }
  0xc8   : > { %6733 = vmatmul.mubr.msk.f32.gmra.mxu0 %vm392_vm1, %v7115_v11  ;;  %6747 = vmatmul.mubr.msk.f32.gmra.mxu1 %vm392_vm1, %v7115_v11 }
  0xc9   : > { %6735 = vmatprep.mubr.msk.f32.mxu0 %vm392_vm1, %v7133_v13  ;;  %6749 = vmatprep.mubr.msk.f32.mxu1 %vm392_vm1, %v7133_v13 }
  0xcc   : > { %6736 = vmatmul.mubr.msk.f32.gmra.mxu0 %vm392_vm1, %v7139_v15  ;;  %6750 = vmatmul.mubr.msk.f32.gmra.mxu1 %vm392_vm1, %v7139_v15 }
  0xcd   : > { %6738 = vmatprep.mubr.msk.f32.mxu0 %vm392_vm1, %v7153_v17  ;;  %6752 = vmatprep.mubr.msk.f32.mxu1 %vm392_vm1, %v7153_v17 }
  0xd0   : > { %6739 = vmatmul.mubr.msk.f32.gmra.mxu0 %vm392_vm1, %v5832_v7  ;;  %6753 = vmatmul.mubr.msk.f32.gmra.mxu1 %vm392_vm1, %v5832_v7 }
  0xd1   : > { %6757 = vmatprep.mubr.msk.f32.mxu0 %vm392_vm1, %v7166_v20  ;;  %6771 = vmatprep.mubr.msk.f32.mxu1 %vm392_vm1, %v7166_v20 }
  0xd4   : > { %v6423_v4 = vpop.f32.mrf.mxu0  ;;  %v6437_v6 = vpop.f32.mrf.mxu1  ;;  %6758 = vmatmul.mubr.msk.f32.vlgmr.msra.gmra.mxu0 %vm392_vm1, %v7169_v21  ;;  %6772 = vmatmul.mubr.msk.f32.vlgmr.msra.gmra.mxu1 %vm392_vm1, %v7169_v21 }
  0xd5   : > { %v7758_v9 = vadd.f32 %v6437_v6, %v6423_v4  ;;  %6784 = vmatpush3.msk.msra.mxu0 %vm417_vm0, %v7635_v36  ;;  %6798 = vmatpush3.msk.msra.mxu1 %vm417_vm0, %v7718_v10 }
  0xd6   : > { %v487_v11 = vpop.f32.mrf.mxu0  ;;  %v619_v12 = vpop.f32.mrf.mxu1  ;;  %6760 = vmatprep.mubr.msk.f32.mxu0 %vm392_vm1, %v7185_v23  ;;  %6774 = vmatprep.mubr.msk.f32.mxu1 %vm392_vm1, %v7185_v23 }
  0xd7   : > { %v7768_v13 = vadd.f32 %v619_v12, %v487_v11  ;;  %6811 = vmatprep.subr.msk.mxu0 %vm417_vm0, %v7433_v56  ;;  %6825 = vmatprep.subr.msk.mxu1 %vm417_vm0, %v7718_v10 }
  0xd8   : > { %v6426_v14 = vpop.f32.mrf.mxu0  ;;  %v6440_v15 = vpop.f32.mrf.mxu1  ;;  %6761 = vmatmul.mubr.msk.f32.gmra.mxu0 %vm392_vm1, %v7192_v24  ;;  %6775 = vmatmul.mubr.msk.f32.gmra.mxu1 %vm392_vm1, %v7192_v24 }
  0xd9   : > { %v7778_v16 = vadd.f32 %v6440_v15, %v6426_v14  ;;  %6763 = vmatprep.mubr.msk.f32.mxu0 %vm392_vm1, %v7207_v25  ;;  %6777 = vmatprep.mubr.msk.f32.mxu1 %vm392_vm1, %v7207_v25 }
  0xda   : > { %v497_v17 = vpop.f32.mrf.mxu0  ;;  %v629_v18 = vpop.f32.mrf.mxu1 }
  0xdb   : > { %v7784_v22 = vadd.f32 %v629_v18, %v497_v17 }
  0xdc   : > { %v6429_v37 = vpop.f32.mrf.mxu0  ;;  %v6443_v42 = vpop.f32.mrf.mxu1  ;;  %6764 = vmatmul.mubr.msk.f32.gmra.mxu0 %vm392_vm1, %v7210_v26  ;;  %6778 = vmatmul.mubr.msk.f32.gmra.mxu1 %vm392_vm1, %v7210_v26 }
  0xdd   : > { %v7790_v53 = vadd.f32 %v6443_v42, %v6429_v37  ;;  %6766 = vmatprep.mubr.msk.f32.mxu0 %vm392_vm1, %v7221_v27  ;;  %6780 = vmatprep.mubr.msk.f32.mxu1 %vm392_vm1, %v7221_v27 }
  0xde   : > { %v507_v5 = vpop.f32.mrf.mxu0  ;;  %v639_v7 = vpop.f32.mrf.mxu1 }
  0xdf   : > { %v7797_v4 = vadd.f32 %v639_v7, %v507_v5 }
  0xe0   : > { %v6432_v6 = vpop.f32.mrf.mxu0  ;;  %v6446_v11 = vpop.f32.mrf.mxu1  ;;  %6767 = vmatmul.mubr.msk.f32.gmra.mxu0 %vm392_vm1, %v5876_v63  ;;  %6781 = vmatmul.mubr.msk.f32.gmra.mxu1 %vm392_vm1, %v5876_v63 }
  0xe1   : > { %v7801_v12 = vadd.f32 %v6446_v11, %v6432_v6  ;;  %6785 = vmatprep.mubr.msk.f32.mxu0 %vm392_vm1, %v7166_v20  ;;  %6799 = vmatprep.mubr.msk.f32.mxu1 %vm392_vm1, %v7166_v20 }
  0xe2   : > { %v517_v14 = vpop.f32.mrf.mxu0  ;;  %v649_v15 = vpop.f32.mrf.mxu1 }
  0xe3   : > { %v7807_v17 = vadd.f32 %v649_v15, %v517_v14 }
  0xe4   : > { %v6451_v18 = vpop.f32.mrf.mxu0  ;;  %v6465_v37 = vpop.f32.mrf.mxu1  ;;  %6786 = vmatmul.mubr.msk.f32.vlgmr.msra.gmra.mxu0 %vm392_vm1, %v7169_v21  ;;  %6800 = vmatmul.mubr.msk.f32.vlgmr.msra.gmra.mxu1 %vm392_vm1, %v7169_v21 }
  0xe5   : > { %v867_v42 = vadd.f32 %v6465_v37, %v6451_v18  ;;  %6812 = vmatpush3.msk.msra.mxu0 %vm417_vm0, %v7433_v56  ;;  %6826 = vmatpush3.msk.msra.mxu1 %vm417_vm0, %v7718_v10 }
  0xe6   : > { %v756_v20 = vpop.f32.mrf.mxu0  ;;  %v861_v5 = vpop.f32.mrf.mxu1  ;;  %6788 = vmatprep.mubr.msk.f32.mxu0 %vm392_vm1, %v7185_v23  ;;  %6802 = vmatprep.mubr.msk.f32.mxu1 %vm392_vm1, %v7185_v23 }
  0xe7   : > { %v862_v7 = vadd.f32 %v861_v5, %v756_v20  ;;  %6839 = vmatprep.subr.msk.mxu0 %vm417_vm0, %v7530_v62  ;;  %6853 = vmatprep.subr.msk.mxu1 %vm417_vm0, %v7530_v62 }
  0xe8   : > { %v6454_v21 = vpop.f32.mrf.mxu0  ;;  %v6468_v56 = vpop.f32.mrf.mxu1  ;;  %6789 = vmatmul.mubr.msk.f32.gmra.mxu0 %vm392_vm1, %v7192_v24  ;;  %6803 = vmatmul.mubr.msk.f32.gmra.mxu1 %vm392_vm1, %v7192_v24 }
  0xe9   : > { %v877_v6 = vadd.f32 %v6468_v56, %v6454_v21  ;;  %6791 = vmatprep.mubr.msk.f32.mxu0 %vm392_vm1, %v7207_v25  ;;  %6805 = vmatprep.mubr.msk.f32.mxu1 %vm392_vm1, %v7207_v25 }
  0xea   : > { %v766_v23 = vpop.f32.mrf.mxu0  ;;  %v871_v11 = vpop.f32.mrf.mxu1 }
  0xeb   : > { %v872_v14 = vadd.f32 %v871_v11, %v766_v23 }
  0xec   : > { %v6457_v15 = vpop.f32.mrf.mxu0  ;;  %v6471_v18 = vpop.f32.mrf.mxu1  ;;  %6792 = vmatmul.mubr.msk.f32.gmra.mxu0 %vm392_vm1, %v7210_v26  ;;  %6806 = vmatmul.mubr.msk.f32.gmra.mxu1 %vm392_vm1, %v7210_v26 }
  0xed   : > { %v887_v37 = vadd.f32 %v6471_v18, %v6457_v15  ;;  %6794 = vmatprep.mubr.msk.f32.mxu0 %vm392_vm1, %v7221_v27  ;;  %6808 = vmatprep.mubr.msk.f32.mxu1 %vm392_vm1, %v7221_v27 }
  0xee   : > { %v776_v24 = vpop.f32.mrf.mxu0  ;;  %v881_v25 = vpop.f32.mrf.mxu1 }
  0xef   : > { %v882_v20 = vadd.f32 %v881_v25, %v776_v24 }
  0xf0   : > { %v6460_v5 = vpop.f32.mrf.mxu0  ;;  %v6474_v21 = vpop.f32.mrf.mxu1  ;;  %6795 = vmatmul.mubr.msk.f32.gmra.mxu0 %vm392_vm1, %v5876_v63  ;;  %6809 = vmatmul.mubr.msk.f32.gmra.mxu1 %vm392_vm1, %v5876_v63 }
  0xf1   : > { %v897_v56 = vadd.f32 %v6474_v21, %v6460_v5  ;;  %6813 = vmatprep.mubr.msk.f32.mxu0 %vm392_vm1, %v7231_v29  ;;  %6827 = vmatprep.mubr.msk.f32.mxu1 %vm392_vm1, %v7231_v29 }
  0xf2   : > { %v786_v26 = vpop.f32.mrf.mxu0  ;;  %v891_v23 = vpop.f32.mrf.mxu1 }
  0xf3   : > { %v892_v11 = vadd.f32 %v891_v23, %v786_v26 }
  0xf4   : > { %v6479_v27 = vpop.f32.mrf.mxu0  ;;  %v6493_v15 = vpop.f32.mrf.mxu1  ;;  %6814 = vmatmul.mubr.msk.f32.vlgmr.msra.gmra.mxu0 %vm392_vm1, %v7234_v30  ;;  %6828 = vmatmul.mubr.msk.f32.vlgmr.msra.gmra.mxu1 %vm392_vm1, %v7234_v30 }
  0xf5   : > { %v1009_v63 = vadd.f32 %v6479_v27, %v7758_v9  ;;  %v7852_v18 = vadd.f32 %v6493_v15, %v867_v42  ;;  %6840 = vmatpush3.msk.msra.mxu0 %vm417_vm0, %v7530_v62  ;;  %6854 = vmatpush3.msk.msra.mxu1 %vm417_vm0, %v7530_v62 }
  0xf6   : > { %v969_v29 = vpop.f32.mrf.mxu0  ;;  %v1114_v24 = vpop.f32.mrf.mxu1  ;;  %6816 = vmatprep.mubr.msk.f32.mxu0 %vm392_vm1, %v7245_v31  ;;  %6830 = vmatprep.mubr.msk.f32.mxu1 %vm392_vm1, %v7245_v31 }
  0xf7   : > { %v1008_v30 = vadd.f32 %v969_v29, %v7768_v13  ;;  %v7863_v25 = vadd.f32 %v1114_v24, %v862_v7  ;;  %6867 = vmatprep.subr.msk.mxu0 %vm417_vm0, %v7635_v36  ;;  %6881 = vmatprep.subr.msk.mxu1 %vm417_vm0, %v7635_v36 }
  0xf8   : > { %v6482_v9 = vpop.f32.mrf.mxu0  ;;  %v6496_v62 = vpop.f32.mrf.mxu1  ;;  %6817 = vmatmul.mubr.msk.f32.gmra.mxu0 %vm392_vm1, %v7252_v32  ;;  %6831 = vmatmul.mubr.msk.f32.gmra.mxu1 %vm392_vm1, %v7252_v32 }
  0xf9   : > { %v1011_v31 = vadd.f32 %v6482_v9, %v7778_v16  ;;  %v7874_v13 = vadd.f32 %v6496_v62, %v877_v6  ;;  %6819 = vmatprep.mubr.msk.f32.mxu0 %vm392_vm1, %v7267_v33  ;;  %6833 = vmatprep.mubr.msk.f32.mxu1 %vm392_vm1, %v7267_v33  ;;  %v5920_v33 = vld [vmem:[%s7073_s15 + $0x111] sm:$0xff] }
  0xfa   : > { %v979_v42 = vpop.f32.mrf.mxu0  ;;  %v1124_v7 = vpop.f32.mrf.mxu1 }
  0xfb   : > { %v1010_v5 = vadd.f32 %v979_v42, %v7784_v22  ;;  %v7881_v21 = vadd.f32 %v1124_v7, %v872_v14 }
  0xfc   : > { %v6485_v26 = vpop.f32.mrf.mxu0  ;;  %v6499_v23 = vpop.f32.mrf.mxu1  ;;  %6820 = vmatmul.mubr.msk.f32.gmra.mxu0 %vm392_vm1, %v7270_v34  ;;  %6834 = vmatmul.mubr.msk.f32.gmra.mxu1 %vm392_vm1, %v7270_v34 }
  0xfd   : > { %v1013_v32 = vadd.f32 %v6485_v26, %v7790_v53  ;;  %v7888_v16 = vadd.f32 %v6499_v23, %v887_v37  ;;  %6822 = vmatprep.mubr.msk.f32.mxu0 %vm392_vm1, %v7281_v35  ;;  %6836 = vmatprep.mubr.msk.f32.mxu1 %vm392_vm1, %v7281_v35 }
  0xfe   : > { %v989_v22 = vpop.f32.mrf.mxu0  ;;  %v1134_v6 = vpop.f32.mrf.mxu1 }
  0xff   : > { %v1012_v14 = vadd.f32 %v989_v22, %v7797_v4  ;;  %v7896_v27 = vadd.f32 %v1134_v6, %v882_v20 }
 0x100   : > { %v6488_v15 = vpop.f32.mrf.mxu0  ;;  %v6502_v29 = vpop.f32.mrf.mxu1  ;;  %6823 = vmatmul.mubr.msk.f32.gmra.mxu0 %vm392_vm1, %v5920_v33  ;;  %6837 = vmatmul.mubr.msk.f32.gmra.mxu1 %vm392_vm1, %v5920_v33 }
 0x101   : > { %v1015_v34 = vadd.f32 %v6488_v15, %v7801_v12  ;;  %v7901_v53 = vadd.f32 %v6502_v29, %v897_v56  ;;  %6841 = vmatprep.mubr.msk.f32.mxu0 %vm392_vm1, %v7295_v38  ;;  %6855 = vmatprep.mubr.msk.f32.mxu1 %vm392_vm1, %v7298_v39  ;;  %v5061_v15 = vld [vmem:[%s8719_s4] sm:$0xf] }
 0x102   : > { %v999_v35 = vpop.f32.mrf.mxu0  ;;  %v1144_v4 = vpop.f32.mrf.mxu1 }
 0x103   : > { %v1014_v37 = vadd.f32 %v999_v35, %v7807_v17  ;;  %v7908_v20 = vadd.f32 %v1144_v4, %v892_v11 }
 0x104   : > { %v6507_v24 = vpop.f32.mrf.mxu0  ;;  %v6521_v9 = vpop.f32.mrf.mxu1  ;;  %6842 = vmatmul.mubr.msk.f32.vlgmr.msra.gmra.mxu0 %vm392_vm1, %v7301_v40  ;;  %6856 = vmatmul.mubr.msk.f32.vlgmr.msra.gmra.mxu1 %vm392_vm1, %v7304_v41 }
 0x105   : > { %v7914_v12 = vadd.f32 %v6507_v24, %v1009_v63  ;;  %6868 = vmatpush3.msk.msra.mxu0 %vm417_vm0, %v7635_v36  ;;  %6882 = vmatpush3.msk.msra.mxu1 %vm417_vm0, %v7635_v36 }
 0x106   : > { %v1263_v38 = vpop.f32.mrf.mxu0  ;;  %v1409_v17 = vpop.f32.mrf.mxu1  ;;  %6844 = vmatprep.mubr.msk.f32.mxu0 %vm392_vm1, %v7320_v43  ;;  %6858 = vmatprep.mubr.msk.f32.mxu1 %vm392_vm1, %v7323_v44 }
 0x107   : > { %v7924_v40 = vadd.f32 %v1263_v38, %v1008_v30  ;;  %6895 = vmatprep.subr.msk.mxu0 %vm417_vm0, %v7718_v10  ;;  %6909 = vmatprep.subr.msk.mxu1 %vm417_vm0, %v7718_v10 }
 0x108   : > { %v6510_v56 = vpop.f32.mrf.mxu0  ;;  %v6524_v11 = vpop.f32.mrf.mxu1  ;;  %6845 = vmatmul.mubr.msk.f32.gmra.mxu0 %vm392_vm1, %v7330_v45  ;;  %6859 = vmatmul.mubr.msk.f32.gmra.mxu1 %vm392_vm1, %v7333_v46 }
 0x109   : > { %v7934_v43 = vadd.f32 %v6510_v56, %v1011_v31  ;;  %6847 = vmatprep.mubr.msk.f32.mxu0 %vm392_vm1, %v7348_v47  ;;  %6861 = vmatprep.mubr.msk.f32.mxu1 %vm392_vm1, %v7351_v48  ;;  %v5946_v47 = vld [vmem:[%s7073_s15 + $0x1a0] sm:$0xff]  ;;  %v5963_v31 = vld [vmem:[%s7073_s15 + $0x230] sm:$0xff] }
 0x10a   : > { %v1273_v36 = vpop.f32.mrf.mxu0  ;;  %v1419_v63 = vpop.f32.mrf.mxu1 }
 0x10b   : > { %v7940_v30 = vadd.f32 %v1273_v36, %v1010_v5 }
 0x10c   : > { %v6513_v62 = vpop.f32.mrf.mxu0  ;;  %v6527_v42 = vpop.f32.mrf.mxu1  ;;  %6848 = vmatmul.mubr.msk.f32.gmra.mxu0 %vm392_vm1, %v7354_v49  ;;  %6862 = vmatmul.mubr.msk.f32.gmra.mxu1 %vm392_vm1, %v7357_v50 }
 0x10d   : > { %v7946_v45 = vadd.f32 %v6513_v62, %v1013_v32  ;;  %6850 = vmatprep.mubr.msk.f32.mxu0 %vm392_vm1, %v7368_v51  ;;  %6864 = vmatprep.mubr.msk.f32.mxu1 %vm392_vm1, %v7371_v52 }
 0x10e   : > { %v1283_v7 = vpop.f32.mrf.mxu0  ;;  %v1429_v5 = vpop.f32.mrf.mxu1 }
 0x10f   : > { %v7954_v26 = vadd.f32 %v1283_v7, %v1012_v14 }
 0x110   : > { %v6516_v23 = vpop.f32.mrf.mxu0  ;;  %v6530_v33 = vpop.f32.mrf.mxu1  ;;  %6851 = vmatmul.mubr.msk.f32.gmra.mxu0 %vm392_vm1, %v5946_v47  ;;  %6865 = vmatmul.mubr.msk.f32.gmra.mxu1 %vm392_vm1, %v5963_v31 }
 0x111   : > { %v7958_v49 = vadd.f32 %v6516_v23, %v1015_v34  ;;  %6869 = vmatprep.mubr.msk.f32.mxu0 %vm392_vm1, %v7298_v39  ;;  %6883 = vmatprep.mubr.msk.f32.mxu1 %vm392_vm1, %v7421_v54  ;;  %v5045_v23 = vld [vmem:[%s8080_s17 + $0x80] sm:$0xff] }
 0x112   : > { %v1293_v51 = vpop.f32.mrf.mxu0  ;;  %v1439_v32 = vpop.f32.mrf.mxu1 }
 0x113   : > { %v7964_v22 = vadd.f32 %v1293_v51, %v1014_v37  ;;  %v5046_v51 = vld [vmem:[%s8080_s17 + $0x88] sm:$0xff] }
 0x114   : > { %v6535_v6 = vpop.f32.mrf.mxu0  ;;  %v6549_v14 = vpop.f32.mrf.mxu1  ;;  %6870 = vmatmul.mubr.msk.f32.vlgmr.msra.gmra.mxu0 %vm392_vm1, %v7304_v41  ;;  %6884 = vmatmul.mubr.msk.f32.vlgmr.msra.gmra.mxu1 %vm392_vm1, %v7424_v55 }
 0x115   : > { %v7973_v39 = vadd.f32 %v6535_v6, %v6521_v9  ;;  %v7976_v29 = vadd.f32 %v6549_v14, %v7852_v18  ;;  %6896 = vmatpush3.msk.msra.mxu0 %vm417_vm0, %v7718_v10  ;;  %6910 = vmatpush3.msk.msra.mxu1 %vm417_vm0, %v7718_v10  ;;  %v5031_v6 = vld [vmem:[%s8080_s17 + $0x10] sm:$0xff] }
 0x116   : > { %v1514_v34 = vpop.f32.mrf.mxu0  ;;  %v1619_v41 = vpop.f32.mrf.mxu1  ;;  %6872 = vmatprep.mubr.msk.f32.mxu0 %vm392_vm1, %v7323_v44  ;;  %6886 = vmatprep.mubr.msk.f32.mxu1 %vm392_vm1, %v7440_v57  ;;  %v5047_v14 = vld [vmem:[%s8080_s17 + $0x90] sm:$0xff] }
 0x117   : > { %v7986_v35 = vadd.f32 %v1514_v34, %v1409_v17  ;;  %v7989_v4 = vadd.f32 %v1619_v41, %v7863_v25  ;;  %6923 = vmatprep.subr.msk.mxu0 %vm417_vm0, %v5061_v15  ;;  %6973 = vmatprep.subr.msk.mxu1 %vm417_vm0, %v5061_v15 }
 0x118   : > { %v6538_v18 = vpop.f32.mrf.mxu0  ;;  %v6552_v37 = vpop.f32.mrf.mxu1  ;;  %6873 = vmatmul.mubr.msk.f32.gmra.mxu0 %vm392_vm1, %v7333_v46  ;;  %6887 = vmatmul.mubr.msk.f32.gmra.mxu1 %vm392_vm1, %v7447_v58 }
 0x119   : > { %v7997_v44 = vadd.f32 %v6538_v18, %v6524_v11  ;;  %v8000_v10 = vadd.f32 %v6552_v37, %v7874_v13  ;;  %6875 = vmatprep.mubr.msk.f32.mxu0 %vm392_vm1, %v7351_v48  ;;  %6889 = vmatprep.mubr.msk.f32.mxu1 %vm392_vm1, %v7462_v59  ;;  %v5032_v37 = vld [vmem:[%s8080_s17 + $0x18] sm:$0xff] }
 0x11a   : > { %v1524_v25 = vpop.f32.mrf.mxu0  ;;  %v1629_v24 = vpop.f32.mrf.mxu1 }
 0x11b   : > { %v8006_v9 = vadd.f32 %v1524_v25, %v1419_v63  ;;  %v8009_v46 = vadd.f32 %v1629_v24, %v7881_v21  ;;  %v5989_v21 = vld [vmem:[%s7073_s15 + $0x1a1] sm:$0xff]  ;;  %v5048_v25 = vld [vmem:[%s8080_s17 + $0x98] sm:$0xff] }
 0x11c   : > { %v6541_v38 = vpop.f32.mrf.mxu0  ;;  %v6555_v17 = vpop.f32.mrf.mxu1  ;;  %6876 = vmatmul.mubr.msk.f32.gmra.mxu0 %vm392_vm1, %v7357_v50  ;;  %6890 = vmatmul.mubr.msk.f32.gmra.mxu1 %vm392_vm1, %v7465_v60 }
 0x11d   : > { %v8015_v13 = vadd.f32 %v6541_v38, %v6527_v42  ;;  %v8018_v48 = vadd.f32 %v6555_v17, %v7888_v16  ;;  %6878 = vmatprep.mubr.msk.f32.mxu0 %vm392_vm1, %v7371_v52  ;;  %6892 = vmatprep.mubr.msk.f32.mxu1 %vm392_vm1, %v7476_v61  ;;  %v5033_v38 = vld [vmem:[%s8080_s17 + $0x20] sm:$0xff] }
 0x11e   : > { %v1534_v56 = vpop.f32.mrf.mxu0  ;;  %v1639_v11 = vpop.f32.mrf.mxu1  ;;  %v5049_v17 = vld [vmem:[%s8080_s17 + $0xa0] sm:$0xff] }
 0x11f   : > { %v8026_v36 = vadd.f32 %v1534_v56, %v1429_v5  ;;  %v8029_v50 = vadd.f32 %v1639_v11, %v7896_v27 }
 0x120   : > { %v6544_v63 = vpop.f32.mrf.mxu0  ;;  %v6558_v62 = vpop.f32.mrf.mxu1  ;;  %6879 = vmatmul.mubr.msk.f32.gmra.mxu0 %vm392_vm1, %v5963_v31  ;;  %6893 = vmatmul.mubr.msk.f32.gmra.mxu1 %vm392_vm1, %v5989_v21 }
 0x121   : > { %v8033_v52 = vadd.f32 %v6544_v63, %v6530_v33  ;;  %v8036_v16 = vadd.f32 %v6558_v62, %v7901_v53  ;;  %6897 = vmatprep.mubr.msk.f32.mxu0 %vm392_vm1, %v7421_v54  ;;  %6911 = vmatprep.mubr.msk.f32.mxu1 %vm392_vm1, %v7568_v0 }
 0x122   : > { %v1544_v27 = vpop.f32.mrf.mxu0  ;;  %v1649_v42 = vpop.f32.mrf.mxu1 }
 0x123   : > { %v8042_v47 = vadd.f32 %v1544_v27, %v1439_v32  ;;  %v8045_v31 = vadd.f32 %v1649_v42, %v7908_v20  ;;  %v5034_v27 = vld [vmem:[%s8080_s17 + $0x28] sm:$0xff] }
 0x124   : > { %v6563_v7 = vpop.f32.mrf.mxu0  ;;  %v6577_v5 = vpop.f32.mrf.mxu1  ;;  %6898 = vmatmul.mubr.msk.f32.vlgmr.msra.gmra.mxu0 %vm392_vm1, %v7424_v55  ;;  %6912 = vmatmul.mubr.msk.f32.vlgmr.msra.gmra.mxu1 %vm392_vm1, %v7571_v1  ;;  %v5050_v42 = vld [vmem:[%s8080_s17 + $0xa8] sm:$0xff] }
 0x125   : > { %v8052_v54 = vadd.f32 %v6563_v7, %v7914_v12  ;;  %6924 = vmatpush3.msk.msra.mxu0 %vm417_vm0, %v5061_v15  ;;  %6974 = vmatpush3.msk.msra.mxu1 %vm417_vm0, %v5061_v15 }
 0x126   : > { %v1735_v0 = vpop.f32.mrf.mxu0  ;;  %v1880_v53 = vpop.f32.mrf.mxu1  ;;  %6900 = vmatprep.mubr.msk.f32.mxu0 %vm392_vm1, %v7440_v57  ;;  %6914 = vmatprep.mubr.msk.f32.mxu1 %vm392_vm1, %v7582_v2 }
 0x127   : > { %v8061_v55 = vadd.f32 %v1735_v0, %v7924_v40  ;;  %v5051_v0 = vld [vmem:[%s8080_s17 + $0xb0] sm:$0xff] }
 0x128   : > { %v6566_v1 = vpop.f32.mrf.mxu0  ;;  %v6580_v20 = vpop.f32.mrf.mxu1  ;;  %6901 = vmatmul.mubr.msk.f32.gmra.mxu0 %vm392_vm1, %v7447_v58  ;;  %6915 = vmatmul.mubr.msk.f32.gmra.mxu1 %vm392_vm1, %v7589_v3 }
 0x129   : > { %v8068_v12 = vadd.f32 %v6566_v1, %v7934_v43  ;;  %6903 = vmatprep.mubr.msk.f32.mxu0 %vm392_vm1, %v7462_v59  ;;  %6917 = vmatprep.mubr.msk.f32.mxu1 %vm392_vm1, %v7604_v8  ;;  %v6015_v8 = vld [vmem:[%s7073_s15 + $0x231] sm:$0xff]  ;;  %s5576_s15 = sshll.u32 %s7043_s28, 3  ;;  %s8782_s28 = smov (!%p354_p6, %s7043_s28), 1 }
 0x12a   : > { %v1745_v57 = vpop.f32.mrf.mxu0  ;;  %v1890_v2 = vpop.f32.mrf.mxu1  ;;  %p8508_p5 = scmp.lt.s32.totalorder %s5576_s15, 15  ;;  %s5580_s10 = sshll.u32 %s8782_s28, 3 }
 0x12b   : > { %v8075_v40 = vadd.f32 %v1745_v57, %v7940_v30  ;;  %s357_s12 = scalar_lea.vmem %s8723_s8, %s5580_s10 }
 0x12c   : > { %v6569_v58 = vpop.f32.mrf.mxu0  ;;  %v6583_v3 = vpop.f32.mrf.mxu1  ;;  %6904 = vmatmul.mubr.msk.f32.gmra.mxu0 %vm392_vm1, %v7465_v60  ;;  %6918 = vmatmul.mubr.msk.f32.gmra.mxu1 %vm392_vm1, %v7607_v19  ;;  %v5029_v60 = vld [vmem:[%s8080_s17] sm:$0xff]  ;;  %s8780_s15 = smov (!%p8508_p5, %s5576_s15), 15 }
 0x12d   : > { %v8087_v59 = vadd.f32 %v6569_v58, %v7946_v45  ;;  %6906 = vmatprep.mubr.msk.f32.mxu0 %vm392_vm1, %v7476_v61  ;;  %6920 = vmatprep.mubr.msk.f32.mxu1 %vm392_vm1, %v7618_v28  ;;  %v5030_v28 = vld [vmem:[%s8080_s17 + $0x8] sm:$0xff]  ;;  %s5577_s19 = sshll.u32 %s8780_s15, 3 }
 0x12e   : > { %v1755_v43 = vpop.f32.mrf.mxu0  ;;  %v8094_v30 = vpop.f32.mrf.mxu1  ;;  %s8551_s24 = scalar_lea.vmem %s8721_s6, %s5577_s19  ;;  %s8668_s9 = scalar_lea.vmem %s8722_s7, %s5577_s19 }
 0x12f   : > { %v8099_v19 = vadd.f32 %v1755_v43, %v7954_v26 }
 0x130   : > { %v6572_v45 = vpop.f32.mrf.mxu0  ;;  %v8101_v33 = vpop.f32.mrf.mxu1  ;;  %6907 = vmatmul.mubr.msk.f32.gmra.mxu0 %vm392_vm1, %v5989_v21  ;;  %6921 = vmatmul.mubr.msk.f32.gmra.mxu1 %vm392_vm1, %v6015_v8  ;;  %v5052_v8 = vld [vmem:[%s8080_s17 + $0xb8] sm:$0xff] }
 0x131   : > { %v8106_v61 = vadd.f32 %v6572_v45, %v7958_v49  ;;  %6925 = vmatprep.mubr.msk.f32.mxu0 %vm392_vm1, %v5029_v60  ;;  %6949 = vmatprep.mubr.msk.f32.mxu1 %vm392_vm1, %v5045_v23  ;;  %v5037_v60 = vld [vmem:[%s8080_s17 + $0x40] sm:$0xff] }
 0x132   : > { %v1765_v26 = vpop.f32.mrf.mxu0  ;;  %v8112_v32 = vpop.f32.mrf.mxu1  ;;  %v5053_v23 = vld [vmem:[%s8080_s17 + $0xc0] sm:$0xff] }
 0x133   : > { %v8117_v15 = vadd.f32 %v1765_v26, %v7964_v22 }
 0x134   : > { %v6591_v49 = vpop.f32.mrf.mxu0  ;;  %v6605_v34 = vpop.f32.mrf.mxu1  ;;  %6926 = vmatmul.mubr.msk.f32.vlgmr.msra.gmra.mxu0 %vm392_vm1, %v5030_v28  ;;  %6950 = vmatmul.mubr.msk.f32.vlgmr.msra.gmra.mxu1 %vm392_vm1, %v5046_v51 }
 0x135   : > { %v8121_v41 = vadd.f32 %v6591_v49, %v6577_v5  ;;  %v8124_v18 = vadd.f32 %v6605_v34, %v7973_v39  ;;  %6928 = vmatprep.mubr.msk.f32.mxu0 %vm392_vm1, %v5031_v6  ;;  %6952 = vmatprep.mubr.msk.f32.mxu1 %vm392_vm1, %v5047_v14  ;;  %v5035_v5 = vld [vmem:[%s8080_s17 + $0x30] sm:$0xff] }
 0x136   : > { %v1985_v22 = vpop.f32.mrf.mxu0  ;;  %v2090_v24 = vpop.f32.mrf.mxu1  ;;  %v5039_v49 = vld [vmem:[%s8080_s17 + $0x50] sm:$0xff] }
 0x137   : > { %v8132_v21 = vadd.f32 %v1985_v22, %v1880_v53  ;;  %v8135_v56 = vadd.f32 %v2090_v24, %v7986_v35  ;;  %v5055_v34 = vld [vmem:[%s8080_s17 + $0xd0] sm:$0xff] }
 0x138   : > { %v6594_v39 = vpop.f32.mrf.mxu0  ;;  %v6608_v11 = vpop.f32.mrf.mxu1  ;;  %6929 = vmatmul.mubr.msk.f32.gmra.mxu0 %vm392_vm1, %v5032_v37  ;;  %6953 = vmatmul.mubr.msk.f32.gmra.mxu1 %vm392_vm1, %v5048_v25 }
 0x139   : > { %v8139_v63 = vadd.f32 %v6594_v39, %v6580_v20  ;;  %v8142_v62 = vadd.f32 %v6608_v11, %v7997_v44  ;;  %6931 = vmatprep.mubr.msk.f32.mxu0 %vm392_vm1, %v5033_v38  ;;  %6955 = vmatprep.mubr.msk.f32.mxu1 %vm392_vm1, %v5049_v17  ;;  %v5056_v38 = vld [vmem:[%s8080_s17 + $0xd8] sm:$0xff]  ;;  %v5041_v39 = vld [vmem:[%s8080_s17 + $0x60] sm:$0xff] }
 0x13a   : > { %v1995_v35 = vpop.f32.mrf.mxu0  ;;  %v2100_v7 = vpop.f32.mrf.mxu1  ;;  %v5057_v11 = vld [vmem:[%s8080_s17 + $0xe0] sm:$0xff] }
 0x13b   : > { %v8150_v53 = vadd.f32 %v1995_v35, %v1890_v2  ;;  %v8153_v1 = vadd.f32 %v2100_v7, %v8006_v9  ;;  %v5036_v2 = vld [vmem:[%s8080_s17 + $0x38] sm:$0xff] }
 0x13c   : > { %v6597_v44 = vpop.f32.mrf.mxu0  ;;  %v6611_v20 = vpop.f32.mrf.mxu1  ;;  %6932 = vmatmul.mubr.msk.f32.gmra.mxu0 %vm392_vm1, %v5034_v27  ;;  %6956 = vmatmul.mubr.msk.f32.gmra.mxu1 %vm392_vm1, %v5050_v42 }
 0x13d   : > { %v8157_v57 = vadd.f32 %v6597_v44, %v6583_v3  ;;  %v8160_v58 = vadd.f32 %v6611_v20, %v8015_v13  ;;  %6934 = vmatprep.mubr.msk.f32.mxu0 %vm392_vm1, %v5035_v5  ;;  %6958 = vmatprep.mubr.msk.f32.mxu1 %vm392_vm1, %v5051_v0  ;;  %v5042_v5 = vld [vmem:[%s8080_s17 + $0x68] sm:$0xff]  ;;  %v5043_v44 = vld [vmem:[%s8080_s17 + $0x70] sm:$0xff] }
 0x13e   : > { %v2005_v9 = vpop.f32.mrf.mxu0  ;;  %v2110_v43 = vpop.f32.mrf.mxu1  ;;  %v5059_v20 = vld [vmem:[%s8080_s17 + $0xf0] sm:$0xff] }
 0x13f   : > { %v8169_v3 = vadd.f32 %v2005_v9, %v8094_v30  ;;  %v8172_v13 = vadd.f32 %v2110_v43, %v8026_v36  ;;  %v5038_v30 = vld [vmem:[%s8080_s17 + $0x48] sm:$0xff] }
 0x140   : > { %v6600_v45 = vpop.f32.mrf.mxu0  ;;  %v6614_v28 = vpop.f32.mrf.mxu1  ;;  %6935 = vmatmul.mubr.msk.f32.gmra.mxu0 %vm392_vm1, %v5036_v2  ;;  %6959 = vmatmul.mubr.msk.f32.gmra.mxu1 %vm392_vm1, %v5052_v8  ;;  %v5054_v36 = vld [vmem:[%s8080_s17 + $0xc8] sm:$0xff] }
 0x141   : > { %v8177_v51 = vadd.f32 %v6600_v45, %v8101_v33  ;;  %v8180_v26 = vadd.f32 %v6614_v28, %v8033_v52  ;;  %6937 = vmatprep.mubr.msk.f32.mxu0 %vm392_vm1, %v5037_v60  ;;  %6961 = vmatprep.mubr.msk.f32.mxu1 %vm392_vm1, %v5053_v23  ;;  %v5044_v60 = vld [vmem:[%s8080_s17 + $0x78] sm:$0xff] }
 0x142   : > { %v2015_v6 = vpop.f32.mrf.mxu0  ;;  %v2120_v14 = vpop.f32.mrf.mxu1 }
 0x143   : > { %v8189_v33 = vadd.f32 %v2015_v6, %v8112_v32  ;;  %v8192_v52 = vadd.f32 %v2120_v14, %v8042_v47  ;;  %v5040_v32 = vld [vmem:[%s8080_s17 + $0x58] sm:$0xff] }
 0x144   : > { %v6619_v37 = vpop.f32.mrf.mxu0  ;;  %v6633_v25 = vpop.f32.mrf.mxu1  ;;  %6938 = vmatmul.mubr.msk.f32.gmra.mxu0 %vm392_vm1, %v5038_v30  ;;  %6962 = vmatmul.mubr.msk.f32.gmra.mxu1 %vm392_vm1, %v5054_v36 }
 0x145   : > { %v2243_v22 = vadd.f32 %v6619_v37, %v7976_v29  ;;  %v8198_v24 = vadd.f32 %v6633_v25, %v8052_v54  ;;  %6940 = vmatprep.mubr.msk.f32.mxu0 %vm392_vm1, %v5039_v49  ;;  %6964 = vmatprep.mubr.msk.f32.mxu1 %vm392_vm1, %v5055_v34 }
 0x146   : > { %v2203_v47 = vpop.f32.mrf.mxu0  ;;  %v2319_v17 = vpop.f32.mrf.mxu1 }
 0x147   : > { %v2242_v27 = vadd.f32 %v2203_v47, %v7989_v4  ;;  %v8208_v29 = vadd.f32 %v2319_v17, %v8061_v55  ;;  %v5058_v4 = vld [vmem:[%s8080_s17 + $0xe8] sm:$0xff] }
 0x148   : > { %v6622_v54 = vpop.f32.mrf.mxu0  ;;  %v6636_v42 = vpop.f32.mrf.mxu1  ;;  %6941 = vmatmul.mubr.msk.f32.gmra.mxu0 %vm392_vm1, %v5040_v32  ;;  %6965 = vmatmul.mubr.msk.f32.gmra.mxu1 %vm392_vm1, %v5056_v38 }
 0x149   : > { %v2245_v35 = vadd.f32 %v6622_v54, %v8000_v10  ;;  %v8214_v7 = vadd.f32 %v6636_v42, %v8068_v12  ;;  %6943 = vmatprep.mubr.msk.f32.mxu0 %vm392_vm1, %v5041_v39  ;;  %6967 = vmatprep.mubr.msk.f32.mxu1 %vm392_vm1, %v5057_v11 }
 0x14a   : > { %v2213_v55 = vpop.f32.mrf.mxu0  ;;  %v2329_v0 = vpop.f32.mrf.mxu1 }
 0x14b   : > { %v2244_v2 = vadd.f32 %v2213_v55, %v8009_v46  ;;  %v8224_v8 = vadd.f32 %v2329_v0, %v8075_v40  ;;  %v5060_v46 = vld [vmem:[%s8080_s17 + $0xf8] sm:$0xff] }
 0x14c   : > { %v6625_v10 = vpop.f32.mrf.mxu0  ;;  %v6639_v12 = vpop.f32.mrf.mxu1  ;;  %6944 = vmatmul.mubr.msk.f32.gmra.mxu0 %vm392_vm1, %v5042_v5  ;;  %6968 = vmatmul.mubr.msk.f32.gmra.mxu1 %vm392_vm1, %v5058_v4 }
 0x14d   : > { %v2247_v9 = vadd.f32 %v6625_v10, %v8018_v48  ;;  %v8230_v43 = vadd.f32 %v6639_v12, %v8087_v59  ;;  %6946 = vmatprep.mubr.msk.f32.mxu0 %vm392_vm1, %v5043_v44  ;;  %6970 = vmatprep.mubr.msk.f32.mxu1 %vm392_vm1, %v5059_v20 }
 0x14e   : > { %v2223_v23 = vpop.f32.mrf.mxu0  ;;  %v2339_v40 = vpop.f32.mrf.mxu1 }
 0x14f   : > { %v2246_v45 = vadd.f32 %v2223_v23, %v8029_v50  ;;  %v8238_v28 = vadd.f32 %v2339_v40, %v8099_v19 }
 0x150   : > { %v6628_v30 = vpop.f32.mrf.mxu0  ;;  %v6642_v36 = vpop.f32.mrf.mxu1  ;;  %6947 = vmatmul.mubr.msk.f32.gmra.mxu0 %vm392_vm1, %v5044_v60  ;;  %6971 = vmatmul.mubr.msk.f32.gmra.mxu1 %vm392_vm1, %v5060_v46 }
 0x151   : > { %v2249_v48 = vadd.f32 %v6628_v30, %v8036_v16  ;;  %v8244_v59 = vadd.f32 %v6642_v36, %v8106_v61 }
 0x152   : > { %v2233_v6 = vpop.f32.mrf.mxu0  ;;  %v2349_v14 = vpop.f32.mrf.mxu1 }
 0x153   : > { %v2248_v49 = vadd.f32 %v2233_v6, %v8045_v31  ;;  %v8248_v50 = vadd.f32 %v2349_v14, %v8117_v15 }
 0x154   : > { %v6647_v19 = vpop.f32.mrf.mxu0  ;;  %v6661_v34 = vpop.f32.mrf.mxu1 }
 0x155   : > { %v8251_v37 = vadd.f32 %v6647_v19, %v8121_v41  ;;  %v8253_v25 = vadd.f32 %v6661_v34, %v2243_v22 }
 0x156   : > { %v2464_v32 = vpop.f32.mrf.mxu0  ;;  %v2577_v38 = vpop.f32.mrf.mxu1 }
 0x157   : > { %v8256_v16 = vadd.f32 %v2464_v32, %v8132_v21  ;;  %v8258_v61 = vadd.f32 %v2577_v38, %v2242_v27 }
 0x158   : > { %v6650_v47 = vpop.f32.mrf.mxu0  ;;  %v6664_v17 = vpop.f32.mrf.mxu1 }
 0x159   : > { %v8261_v31 = vadd.f32 %v6650_v47, %v8139_v63  ;;  %v8263_v15 = vadd.f32 %v6664_v17, %v2245_v35 }
 0x15a   : > { %v2474_v39 = vpop.f32.mrf.mxu0  ;;  %v2587_v11 = vpop.f32.mrf.mxu1 }
 0x15b   : > { %v8266_v41 = vadd.f32 %v2474_v39, %v8150_v53  ;;  %v8268_v22 = vadd.f32 %v2587_v11, %v2244_v2 }
 0x15c   : > { %v6653_v54 = vpop.f32.mrf.mxu0  ;;  %v6667_v42 = vpop.f32.mrf.mxu1 }
 0x15d   : > { %v8271_v21 = vadd.f32 %v6653_v54, %v8157_v57  ;;  %v8273_v27 = vadd.f32 %v6667_v42, %v2247_v9 }
 0x15e   : > { %v2484_v5 = vpop.f32.mrf.mxu0  ;;  %v2597_v4 = vpop.f32.mrf.mxu1 }
 0x15f   : > { %v8276_v63 = vadd.f32 %v2484_v5, %v8169_v3  ;;  %v8278_v35 = vadd.f32 %v2597_v4, %v2246_v45 }
 0x160   : > { %v6656_v55 = vpop.f32.mrf.mxu0  ;;  %v6670_v0 = vpop.f32.mrf.mxu1 }
 0x161   : > { %v8281_v53 = vadd.f32 %v6656_v55, %v8177_v51  ;;  %v8283_v44 = vadd.f32 %v6670_v0, %v2249_v48 }
 0x162   : > { %v2494_v20 = vpop.f32.mrf.mxu0  ;;  %v2607_v2 = vpop.f32.mrf.mxu1 }
 0x163   : > { %v8286_v57 = vadd.f32 %v2494_v20, %v8189_v33  ;;  %v8288_v10 = vadd.f32 %v2607_v2, %v2248_v49 }
 0x164   : > { %v6675_v12 = vpop.f32.mrf.mxu0  ;;  %v6689_v9 = vpop.f32.mrf.mxu1 }
 0x165   : > { %v2763_v3 = vadd.f32 %v6675_v12, %v8124_v18  ;;  %v8292_v60 = vadd.f32 %v6689_v9, %v8198_v24 }
 0x166   : > { %v2723_v46 = vpop.f32.mrf.mxu0  ;;  %v2839_v23 = vpop.f32.mrf.mxu1 }
 0x167   : > { %v2762_v51 = vadd.f32 %v2723_v46, %v8135_v56  ;;  %v8296_v40 = vadd.f32 %v2839_v23, %v8208_v29 }
 0x168   : > { %v6678_v45 = vpop.f32.mrf.mxu0  ;;  %v6692_v30 = vpop.f32.mrf.mxu1 }
 0x169   : > { %v2765_v33 = vadd.f32 %v6678_v45, %v8142_v62  ;;  %v8300_v36 = vadd.f32 %v6692_v30, %v8214_v7 }
 0x16a   : > { %v2733_v48 = vpop.f32.mrf.mxu0  ;;  %v2849_v6 = vpop.f32.mrf.mxu1 }
 0x16b   : > { %v2764_v18 = vadd.f32 %v2733_v48, %v8153_v1  ;;  %v8304_v24 = vadd.f32 %v2849_v6, %v8224_v8 }
 0x16c   : > { %v6681_v14 = vpop.f32.mrf.mxu0  ;;  %v6695_v49 = vpop.f32.mrf.mxu1 }
 0x16d   : > { %v2767_v56 = vadd.f32 %v6681_v14, %v8160_v58  ;;  %v8308_v29 = vadd.f32 %v6695_v49, %v8230_v43 }
 0x16e   : > { %v2743_v19 = vpop.f32.mrf.mxu0  ;;  %v2859_v34 = vpop.f32.mrf.mxu1 }
 0x16f   : > { %v2766_v62 = vadd.f32 %v2743_v19, %v8172_v13  ;;  %v8312_v7 = vadd.f32 %v2859_v34, %v8238_v28 }
 0x170   : > { %v6684_v32 = vpop.f32.mrf.mxu0  ;;  %v6698_v38 = vpop.f32.mrf.mxu1 }
 0x171   : > { %v2769_v1 = vadd.f32 %v6684_v32, %v8180_v26  ;;  %v8316_v8 = vadd.f32 %v6698_v38, %v8244_v59 }
 0x172   : > { %v2753_v47 = vpop.f32.mrf.mxu0  ;;  %v2869_v17 = vpop.f32.mrf.mxu1 }
 0x173   : > { %v2768_v58 = vadd.f32 %v2753_v47, %v8192_v52  ;;  %v8320_v43 = vadd.f32 %v2869_v17, %v8248_v50 }
 0x174   : > { %v6703_v39 = vpop.f32.mrf.mxu0  ;;  %v6717_v11 = vpop.f32.mrf.mxu1 }
 0x175   : > { %v8323_v13 = vadd.f32 %v6703_v39, %v8251_v37  ;;  %v8325_v28 = vadd.f32 %v6717_v11, %v2763_v3 }
 0x176   : > { %v2985_v54 = vpop.f32.mrf.mxu0  ;;  %v3098_v42 = vpop.f32.mrf.mxu1 }
 0x177   : > { %v8328_v26 = vadd.f32 %v2985_v54, %v8256_v16  ;;  %v8330_v59 = vadd.f32 %v3098_v42, %v2762_v51 }
 0x178   : > { %v6706_v5 = vpop.f32.mrf.mxu0  ;;  %v6720_v4 = vpop.f32.mrf.mxu1 }
 0x179   : > { %v8333_v52 = vadd.f32 %v6706_v5, %v8261_v31  ;;  %v8335_v50 = vadd.f32 %v6720_v4, %v2765_v33 }
 0x17a   : > { %v2995_v55 = vpop.f32.mrf.mxu0  ;;  %v3108_v0 = vpop.f32.mrf.mxu1 }
 0x17b   : > { %v8338_v37 = vadd.f32 %v2995_v55, %v8266_v41  ;;  %v8340_v20 = vadd.f32 %v3108_v0, %v2764_v18 }
 0x17c   : > { %v6709_v2 = vpop.f32.mrf.mxu0  ;;  %v6723_v12 = vpop.f32.mrf.mxu1 }
 0x17d   : > { %v8343_v16 = vadd.f32 %v6709_v2, %v8271_v21  ;;  %v8345_v9 = vadd.f32 %v6723_v12, %v2767_v56 }
 0x17e   : > { %v3005_v3 = vpop.f32.mrf.mxu0  ;;  %v3118_v46 = vpop.f32.mrf.mxu1 }
 0x17f   : > { %v8348_v31 = vadd.f32 %v3005_v3, %v8276_v63  ;;  %v8350_v23 = vadd.f32 %v3118_v46, %v2766_v62 }
 0x180   : > { %v6712_v51 = vpop.f32.mrf.mxu0  ;;  %v6726_v45 = vpop.f32.mrf.mxu1 }
 0x181   : > { %v8353_v41 = vadd.f32 %v6712_v51, %v8281_v53  ;;  %v8355_v30 = vadd.f32 %v6726_v45, %v2769_v1 }
 0x182   : > { %v3015_v33 = vpop.f32.mrf.mxu0  ;;  %v3128_v48 = vpop.f32.mrf.mxu1 }
 0x183   : > { %v8358_v21 = vadd.f32 %v3015_v33, %v8286_v57  ;;  %v8360_v6 = vadd.f32 %v3128_v48, %v2768_v58 }
 0x184   : > { %v6731_v18 = vpop.f32.mrf.mxu0  ;;  %v6745_v14 = vpop.f32.mrf.mxu1 }
 0x185   : > { %v8363_v63 = vadd.f32 %v6731_v18, %v8253_v25  ;;  %v8366_v49 = vadd.f32 %v6745_v14, %v8292_v60 }
 0x186   : > { %v3211_v56 = vpop.f32.mrf.mxu0  ;;  %v3327_v53 = vpop.f32.mrf.mxu1 }
 0x187   : > { %v8369_v19 = vadd.f32 %v3211_v56, %v8258_v61  ;;  %v3366_v34 = vadd.f32 %v3327_v53, %v8296_v40 }
 0x188   : > { %v6734_v62 = vpop.f32.mrf.mxu0  ;;  %v6748_v57 = vpop.f32.mrf.mxu1 }
 0x189   : > { %v8373_v32 = vadd.f32 %v6734_v62, %v8263_v15  ;;  %v3369_v38 = vadd.f32 %v6748_v57, %v8300_v36 }
 0x18a   : > { %v3221_v1 = vpop.f32.mrf.mxu0  ;;  %v3337_v25 = vpop.f32.mrf.mxu1 }
 0x18b   : > { %v8377_v47 = vadd.f32 %v3221_v1, %v8268_v22  ;;  %v3368_v60 = vadd.f32 %v3337_v25, %v8304_v24 }
 0x18c   : > { %v6737_v17 = vpop.f32.mrf.mxu0  ;;  %v6751_v58 = vpop.f32.mrf.mxu1 }
 0x18d   : > { %v8381_v61 = vadd.f32 %v6737_v17, %v8273_v27  ;;  %v3371_v40 = vadd.f32 %v6751_v58, %v8308_v29 }
 0x18e   : > { %v3231_v39 = vpop.f32.mrf.mxu0  ;;  %v3347_v11 = vpop.f32.mrf.mxu1 }
 0x18f   : > { %v3254_v15 = vadd.f32 %v3231_v39, %v8278_v35  ;;  %v3370_v36 = vadd.f32 %v3347_v11, %v8312_v7 }
 0x190   : > { %v6740_v54 = vpop.f32.mrf.mxu0  ;;  %v6754_v42 = vpop.f32.mrf.mxu1 }
 0x191   : > { %v3257_v22 = vadd.f32 %v6740_v54, %v8283_v44  ;;  %v3373_v5 = vadd.f32 %v6754_v42, %v8316_v8 }
 0x192   : > { %v3241_v24 = vpop.f32.mrf.mxu0  ;;  %v3357_v4 = vpop.f32.mrf.mxu1 }
 0x193   : > { %v8389_v55 = vadd.f32 %v3241_v24, %v8288_v10  ;;  %v3372_v27 = vadd.f32 %v3357_v4, %v8320_v43 }
 0x194   : > { %v6759_v29 = vpop.f32.mrf.mxu0  ;;  %v6773_v0 = vpop.f32.mrf.mxu1 }
 0x195   : > { %v8393_v2 = vadd.f32 %v6759_v29, %v8323_v13  ;;  %v8396_v35 = vadd.f32 %v6773_v0, %v8325_v28 }
 0x196   : > { %v3472_v7 = vpop.f32.mrf.mxu0  ;;  %v3585_v12 = vpop.f32.mrf.mxu1 }
 0x197   : > { %v8399_v44 = vadd.f32 %v3472_v7, %v8328_v26  ;;  %v8402_v8 = vadd.f32 %v3585_v12, %v8330_v59 }
 0x198   : > { %v6762_v10 = vpop.f32.mrf.mxu0  ;;  %v6776_v3 = vpop.f32.mrf.mxu1 }
 0x199   : > { %v8405_v43 = vadd.f32 %v6762_v10, %v8333_v52  ;;  %v8408_v46 = vadd.f32 %v6776_v3, %v8335_v50 }
 0x19a   : > { %v3482_v13 = vpop.f32.mrf.mxu0  ;;  %v3595_v51 = vpop.f32.mrf.mxu1 }
 0x19b   : > { %v8411_v28 = vadd.f32 %v3482_v13, %v8338_v37  ;;  %v8414_v45 = vadd.f32 %v3595_v51, %v8340_v20 }
 0x19c   : > { %v6765_v26 = vpop.f32.mrf.mxu0  ;;  %v6779_v33 = vpop.f32.mrf.mxu1 }
 0x19d   : > { %v8417_v59 = vadd.f32 %v6765_v26, %v8343_v16  ;;  %v8420_v48 = vadd.f32 %v6779_v33, %v8345_v9 }
 0x19e   : > { %v3492_v52 = vpop.f32.mrf.mxu0  ;;  %v3605_v18 = vpop.f32.mrf.mxu1 }
 0x19f   : > { %v8423_v50 = vadd.f32 %v3492_v52, %v8348_v31  ;;  %v8426_v14 = vadd.f32 %v3605_v18, %v8350_v23 }
 0x1a0   : > { %v6768_v37 = vpop.f32.mrf.mxu0  ;;  %v6782_v56 = vpop.f32.mrf.mxu1 }
 0x1a1   : > { %v8429_v20 = vadd.f32 %v6768_v37, %v8353_v41  ;;  %v8432_v53 = vadd.f32 %v6782_v56, %v8355_v30 }
 0x1a2   : > { %v3502_v16 = vpop.f32.mrf.mxu0  ;;  %v3615_v62 = vpop.f32.mrf.mxu1 }
 0x1a3   : > { %v8435_v9 = vadd.f32 %v3502_v16, %v8358_v21  ;;  %v8438_v57 = vadd.f32 %v3615_v62, %v8360_v6 }
 0x1a4   : > { %v6787_v31 = vpop.f32.mrf.mxu0  ;;  %v6801_v1 = vpop.f32.mrf.mxu1 }
 0x1a5   : > { %v8441_v23 = vadd.f32 %v6801_v1, %v8366_v49  ;;  %v3738_v13 = vadd.f32 %v6787_v31, %v8363_v63 }
 0x1a6   : > { %v3698_v25 = vpop.f32.mrf.mxu0  ;;  %v3814_v17 = vpop.f32.mrf.mxu1 }
 0x1a7   : > { %v8443_v41 = vadd.f32 %v3814_v17, %v3366_v34  ;;  %v3737_v26 = vadd.f32 %v3698_v25, %v8369_v19 }
 0x1a8   : > { %v6790_v58 = vpop.f32.mrf.mxu0  ;;  %v6804_v30 = vpop.f32.mrf.mxu1 }
 0x1a9   : > { %v8445_v39 = vadd.f32 %v6804_v30, %v3369_v38 }
 0x1aa   : > { %v3708_v11 = vpop.f32.mrf.mxu0  ;;  %v3824_v54 = vpop.f32.mrf.mxu1 }
 0x1ab   : > { %8736 = vst [vmem:[#allocation2_spill] sm:$0xff] %v8445_v39  ;;  %v8447_v21 = vadd.f32 %v3824_v54, %v3368_v60  ;;  %v3739_v18 = vadd.f32 %v3708_v11, %v8377_v47 }
 0x1ac   : > { %v6793_v42 = vpop.f32.mrf.mxu0  ;;  %v6807_v6 = vpop.f32.mrf.mxu1 }
 0x1ad   : > { %8737 = vst [vmem:[#allocation3_spill] sm:$0xff] %v8447_v21  ;;  %v8449_v24 = vadd.f32 %v6807_v6, %v3371_v40  ;;  %v3742_v62 = vadd.f32 %v6793_v42, %v8381_v61 }
 0x1ae   : > { %v3718_v4 = vpop.f32.mrf.mxu0  ;;  %v3834_v29 = vpop.f32.mrf.mxu1 }
 0x1af   : > { %8738 = vst [vmem:[#allocation4_spill] sm:$0xff] %v8449_v24  ;;  %v3741_v49 = vadd.f32 %v3718_v4, %v3254_v15  ;;  %v8451_v0 = vadd.f32 %v3834_v29, %v3370_v36 }
 0x1b0   : > { %v6796_v7 = vpop.f32.mrf.mxu0  ;;  %v6810_v34 = vpop.f32.mrf.mxu1 }
 0x1b1   : > { %8739 = vst [vmem:[#allocation5_spill] sm:$0xff] %v8451_v0  ;;  %v3744_v12 = vadd.f32 %v6796_v7, %v3257_v22  ;;  %v8453_v10 = vadd.f32 %v6810_v34, %v3373_v5  ;;  %v3740_v22 = vadd.f32 %v6790_v58, %v8373_v32 }
 0x1b2   : > { %v3728_v38 = vpop.f32.mrf.mxu0  ;;  %v3844_v3 = vpop.f32.mrf.mxu1 }
 0x1b3   : > { %8740 = vst [vmem:[#allocation6_spill] sm:$0xff] %v8453_v10  ;;  %v8456_v60 = vadd.f32 %v3844_v3, %v3372_v27  ;;  %v3743_v6 = vadd.f32 %v3728_v38, %v8389_v55 }
 0x1b4   : > { %v8458_v51 = vpop.f32.mrf.mxu0  ;;  %v6829_v40 = vpop.f32.mrf.mxu1 }
 0x1b5   : > { %8741 = vst [vmem:[#allocation7_spill] sm:$0xff] %v8456_v60  ;;  %v8461_v33 = vadd.f32 %v6829_v40, %v3738_v13 }
 0x1b6   : > { %v8463_v15 = vpop.f32.mrf.mxu0  ;;  %v4072_v36 = vpop.f32.mrf.mxu1 }
 0x1b7   : > { %v8468_v52 = vadd.f32 %v4072_v36, %v3737_v26  ;;  %v3998_v0 = vadd.f32 %v8463_v15, %v8399_v44 }
 0x1b8   : > { %v6818_v63 = vpop.f32.mrf.mxu0  ;;  %v6832_v27 = vpop.f32.mrf.mxu1 }
 0x1b9   : > { %v8473_v19 = vadd.f32 %v6832_v27, %v3740_v22 }
 0x1ba   : > { %v3969_v56 = vpop.f32.mrf.mxu0  ;;  %v4082_v16 = vpop.f32.mrf.mxu1 }
 0x1bb   : > { %8742 = vst [vmem:[#allocation8_spill] sm:$0xff] %v8473_v19  ;;  %v8478_v31 = vadd.f32 %v4082_v16, %v3739_v18  ;;  %v4000_v21 = vadd.f32 %v3969_v56, %v8411_v28 }
 0x1bc   : > { %v6821_v1 = vpop.f32.mrf.mxu0  ;;  %v6835_v25 = vpop.f32.mrf.mxu1 }
 0x1bd   : > { %8743 = vst [vmem:[#allocation9_spill] sm:$0xff] %v8478_v31  ;;  %v8482_v47 = vadd.f32 %v6835_v25, %v3742_v62  ;;  %v4003_v19 = vadd.f32 %v6821_v1, %v8417_v59 }
 0x1be   : > { %v3979_v58 = vpop.f32.mrf.mxu0  ;;  %v4092_v30 = vpop.f32.mrf.mxu1 }
 0x1bf   : > { %8744 = vst [vmem:[#allocation10_spill] sm:$0xff] %v8482_v47  ;;  %v8486_v54 = vadd.f32 %v4092_v30, %v3741_v49  ;;  %v4001_v47 = vadd.f32 %v6818_v63, %v8405_v43 }
 0x1c0   : > { %v6824_v61 = vpop.f32.mrf.mxu0  ;;  %v6838_v42 = vpop.f32.mrf.mxu1 }
 0x1c1   : > { %8745 = vst [vmem:[#allocation11_spill] sm:$0xff] %v8486_v54  ;;  %v8491_v29 = vadd.f32 %v6838_v42, %v3744_v12  ;;  %v3999_v54 = vadd.f32 %v8458_v51, %v8393_v2  ;;  %v4002_v51 = vadd.f32 %v3979_v58, %v8423_v50 }
 0x1c2   : > { %v3989_v7 = vpop.f32.mrf.mxu0  ;;  %v4102_v34 = vpop.f32.mrf.mxu1 }
 0x1c3   : > { %8746 = vst [vmem:[#allocation12_spill] sm:$0xff] %v8491_v29  ;;  %v8495_v13 = vadd.f32 %v4102_v34, %v3743_v6 }
 0x1c4   : > { %v6843_v40 = vpop.f32.mrf.mxu0  ;;  %v6857_v26 = vpop.f32.mrf.mxu1 }
 0x1c5   : > { %8747 = vst [vmem:[#allocation13_spill] sm:$0xff] %v8495_v13  ;;  %v4258_v39 = vadd.f32 %v6843_v40, %v8396_v35  ;;  %v4404_v2 = vadd.f32 %v6857_v26, %v3999_v54 }
 0x1c6   : > { %v4218_v36 = vpop.f32.mrf.mxu0  ;;  %v4364_v22 = vpop.f32.mrf.mxu1 }
 0x1c7   : > { %v4257_v44 = vadd.f32 %v4218_v36, %v8402_v8  ;;  %v4403_v63 = vadd.f32 %v4364_v22, %v3998_v0 }
 0x1c8   : > { %v6846_v55 = vpop.f32.mrf.mxu0  ;;  %v6860_v38 = vpop.f32.mrf.mxu1 }
 0x1c9   : > { %v4406_v35 = vadd.f32 %v6860_v38, %v4001_v47 }
 0x1ca   : > { %v4228_v27 = vpop.f32.mrf.mxu0  ;;  %v4374_v18 = vpop.f32.mrf.mxu1 }
 0x1cb   : > { %v4259_v59 = vadd.f32 %v4228_v27, %v8414_v45  ;;  %v4405_v50 = vadd.f32 %v4374_v18, %v4000_v21 }
 0x1cc   : > { %v6849_v12 = vpop.f32.mrf.mxu0  ;;  %v6863_v16 = vpop.f32.mrf.mxu1 }
 0x1ce   : > { %v4238_v62 = vpop.f32.mrf.mxu0  ;;  %v4384_v25 = vpop.f32.mrf.mxu1 }
 0x1d0   : > { %v6852_v30 = vpop.f32.mrf.mxu0  ;;  %v6866_v42 = vpop.f32.mrf.mxu1 }
 0x1d2   : > { %v4248_v6 = vpop.f32.mrf.mxu0  ;;  %v8499_v34 = vpop.f32.mrf.mxu1 }
 0x1d4   : > { %v6871_v3 = vpop.f32.mrf.mxu0  ;;  %v6885_v4 = vpop.f32.mrf.mxu1 }
 0x1d5   : > { %v4517_v28 = vadd.f32 %v6871_v3, %v4258_v39  ;;  %v4662_v56 = vadd.f32 %v6885_v4, %v4404_v2  ;;  %v4407_v39 = vadd.f32 %v4384_v25, %v4002_v51 }
 0x1d6   : > { %v4477_v11 = vpop.f32.mrf.mxu0  ;;  %v4622_v49 = vpop.f32.mrf.mxu1 }
 0x1d7   : > { %v4516_v1 = vadd.f32 %v4477_v11, %v4257_v44  ;;  %v4661_v58 = vadd.f32 %v4622_v49, %v4403_v63  ;;  %v4263_v11 = vadd.f32 %v4248_v6, %v8438_v57 }
 0x1d8   : > { %v6874_v17 = vpop.f32.mrf.mxu0  ;;  %v6888_v32 = vpop.f32.mrf.mxu1 }
 0x1d9   : > { %v4664_v47 = vadd.f32 %v6888_v32, %v4406_v35  ;;  %v8752_v32 = vmax.f32 %v8441_v23, %v8461_v33  ;;  %v8753_v33 = vmax.f32 %v8443_v41, %v8468_v52  ;;  %v8757_v41 = vld [vmem:[#allocation2_spill] sm:$0xff]  ;;  %v8758_v52 = vld [vmem:[#allocation8_spill] sm:$0xff] }
 0x1da   : > { %v4487_v37 = vpop.f32.mrf.mxu0  ;;  %v4632_v5 = vpop.f32.mrf.mxu1  ;;  %v8759_v44 = vmax.f32 %v8757_v41, %v8758_v52 }
 0x1db   : > { %v4518_v49 = vadd.f32 %v4487_v37, %v4259_v59 }
 0x1dc   : > { %v6877_v13 = vpop.f32.mrf.mxu0  ;;  %v6891_v60 = vpop.f32.mrf.mxu1 }
 0x1de   : > { %v8502_v29 = vpop.f32.mrf.mxu0  ;;  %v8504_v10 = vpop.f32.mrf.mxu1 }
 0x1df   : > { %8748 = vst [vmem:[#allocation14_spill] sm:$0xff] %v8502_v29  ;;  %8749 = vst [vmem:[#allocation15_spill] sm:$0xff] %v8504_v10  ;;  %v4005_v10 = vadd.f32 %v6824_v61, %v8429_v20  ;;  %v4004_v29 = vadd.f32 %v3989_v7, %v8435_v9  ;;  %v4262_v20 = vadd.f32 %v6849_v12, %v8420_v48 }
 0x1e0   : > { %v6880_v24 = vpop.f32.mrf.mxu0  ;;  %v8515_v31 = vpop.f32.mrf.mxu1  ;;  %v4408_v61 = vadd.f32 %v6863_v16, %v4003_v19  ;;  %v4264_v48 = vadd.f32 %v6852_v30, %v8432_v53 }
 0x1e1   : > { %8751 = vst [vmem:[#allocation16_spill] sm:$0xff] %v8515_v31  ;;  %v4260_v31 = vadd.f32 %v6846_v55, %v8408_v46  ;;  %v4261_v46 = vadd.f32 %v4238_v62, %v8426_v14  ;;  %v4410_v26 = vadd.f32 %v6866_v42, %v4005_v10  ;;  %v8540_v14 = vld [vmem:[%s8718_s3] ss:$0 sm:$0xff]  ;;  %v4409_v53 = vadd.f32 %v8499_v34, %v4004_v29 }
 0x1e2   : > { %v4507_v43 = vpop.f32.mrf.mxu0  ;;  %v8524_v15 = vpop.f32.mrf.mxu1  ;;  %v4663_v10 = vadd.f32 %v4632_v5, %v4405_v50  ;;  %v4521_v38 = vadd.f32 %v6877_v13, %v4262_v20  ;;  %v4666_v57 = vadd.f32 %v6891_v60, %v4408_v61  ;;  %v4523_v62 = vadd.f32 %v6880_v24, %v4264_v48 }
 0x1e3   : > { %v4519_v4 = vadd.f32 %v6874_v17, %v4260_v31 }
 0x1e4   : > { %v6899_v9 = vpop.f32.mrf.mxu0  ;;  %v6913_v8 = vpop.f32.mrf.mxu1 }
 0x1e5   : > { %v4775_v54 = vadd.f32 %v6899_v9, %v4517_v28  ;;  %v4920_v0 = vadd.f32 %v6913_v8, %v4662_v56  ;;  %v4522_v28 = vadd.f32 %v4507_v43, %v4263_v11  ;;  %v8764_v11 = vld [vmem:[#allocation10_spill] sm:$0xff] }
 0x1e6   : > { %v4735_v7 = vpop.f32.mrf.mxu0  ;;  %v4880_v3 = vpop.f32.mrf.mxu1  ;;  %v8754_v5 = vld [vmem:[#allocation14_spill] sm:$0xff]  ;;  %v8755_v60 = vld [vmem:[#allocation15_spill] sm:$0xff] }
 0x1e7   : > { %v4936_v45 = vmax.f32 %v4775_v54, %v4920_v0  ;;  %v4774_v40 = vadd.f32 %v4735_v7, %v4516_v1  ;;  %v4919_v21 = vadd.f32 %v4880_v3, %v4661_v58  ;;  %v4520_v13 = vadd.f32 %v8754_v5, %v4261_v46  ;;  %v8760_v54 = vld [vmem:[#allocation3_spill] sm:$0xff]  ;;  %v8761_v0 = vld [vmem:[#allocation9_spill] sm:$0xff] }
 0x1e8   : > { %v6902_v19 = vpop.f32.mrf.mxu0  ;;  %v6916_v31 = vpop.f32.mrf.mxu1  ;;  %v4665_v16 = vadd.f32 %v8755_v60, %v4407_v39  ;;  %v8756_v6 = vld [vmem:[#allocation16_spill] sm:$0xff]  ;;  %v8762_v61 = vmax.f32 %v8760_v54, %v8761_v0  ;;  %v4667_v3 = vadd.f32 %v8524_v15, %v4409_v53 }
 0x1e9   : > { %v4944_v17 = vmax.f32 %v8752_v32, %v4936_v45  ;;  %v4935_v36 = vmax.f32 %v4774_v40, %v4919_v21  ;;  %v4777_v22 = vadd.f32 %v6902_v19, %v4519_v4  ;;  %v4922_v55 = vadd.f32 %v6916_v31, %v4664_v47 }
 0x1ea   : > { %v4745_v37 = vpop.f32.mrf.mxu0  ;;  %v4890_v27 = vpop.f32.mrf.mxu1  ;;  %v4668_v34 = vadd.f32 %v8756_v6, %v4410_v26  ;;  %v8763_v26 = vld [vmem:[#allocation4_spill] sm:$0xff] }
 0x1eb   : > { %v4959_v23 = vadd.f32 %v8540_v14, %v4944_v17  ;;  %v4943_v18 = vmax.f32 %v8753_v33, %v4935_v36  ;;  %v4938_v12 = vmax.f32 %v4777_v22, %v4922_v55  ;;  %v4776_v29 = vadd.f32 %v4745_v37, %v4518_v49  ;;  %v8766_v33 = vld [vmem:[#allocation5_spill] sm:$0xff] }
 0x1ec   : > { %v4921_v25 = vadd.f32 %v4890_v27, %v4663_v10  ;;  %v6905_v30 = vpop.f32.mrf.mxu0  ;;  %v6919_v42 = vpop.f32.mrf.mxu1  ;;  %v8765_v49 = vmax.f32 %v8763_v26, %v8764_v11 }
 0x1ed   : > { %4967 = vst.msk [vmem:[%s8551_s24 + $0x8] sm:$0xff] %vm392_vm1, %v4959_v23  ;;  %v4996_v2 = vmul.f32 %v4959_v23, %v4959_v23  ;;  %v4958_v51 = vadd.f32 %v8540_v14, %v4943_v18  ;;  %v4946_v63 = vmax.f32 %v8759_v44, %v4938_v12  ;;  %v4779_v35 = vadd.f32 %v6905_v30, %v4521_v38  ;;  %v8767_v18 = vld [vmem:[#allocation11_spill] sm:$0xff] }
 0x1ee   : > { %v4937_v56 = vmax.f32 %v4776_v29, %v4921_v25  ;;  %v4924_v59 = vadd.f32 %v6919_v42, %v4666_v57  ;;  %v4755_v24 = vpop.f32.mrf.mxu0  ;;  %v4900_v50 = vpop.f32.mrf.mxu1  ;;  %v4975_v20 = vsel %vm392_vm1, %v4959_v23, 0.0  ;;  %v8768_v12 = vmax.f32 %v8766_v33, %v8767_v18 }
 0x1ef   : > { %4966 = vst.msk [vmem:[%s8551_s24] sm:$0xff] %vm392_vm1, %v4958_v51  ;;  %v4974_v9 = vsel %vm392_vm1, %v4958_v51, 0.0  ;;  %v4995_v8 = vmul.f32 %v4958_v51, %v4958_v51  ;;  %v4961_v1 = vadd.f32 %v8540_v14, %v4946_v63  ;;  %v4778_v39 = vadd.f32 %v4755_v24, %v4520_v13  ;;  %v8772_v63 = vld [vmem:[#allocation7_spill] sm:$0xff] }
 0x1f0   : > { %v4976_v58 = vadd.f32 %v4975_v20, %v4974_v9  ;;  %v4945_v43 = vmax.f32 %v8762_v61, %v4937_v56  ;;  %v4940_v46 = vmax.f32 %v4779_v35, %v4924_v59  ;;  %v6908_v4 = vpop.f32.mrf.mxu0  ;;  %v6922_v7 = vpop.f32.mrf.mxu1  ;;  %v5004_v47 = vsel %vm392_vm1, %v4996_v2, 0.0  ;;  %v8770_v2 = vld [vmem:[#allocation12_spill] sm:$0xff] }
 0x1f1   : > { %v5003_v45 = vsel %vm392_vm1, %v4995_v8, 0.0  ;;  %4969 = vst.msk [vmem:[%s8551_s24 + $0x18] sm:$0xff] %vm392_vm1, %v4961_v1  ;;  %v4923_v40 = vadd.f32 %v4900_v50, %v4665_v16  ;;  %v4781_v31 = vadd.f32 %v6908_v4, %v4523_v62  ;;  %v4998_v36 = vmul.f32 %v4961_v1, %v4961_v1 }
 0x1f2   : > { %v5005_v21 = vadd.f32 %v5004_v47, %v5003_v45  ;;  %v4960_v48 = vadd.f32 %v8540_v14, %v4945_v43  ;;  %v4948_v19 = vmax.f32 %v8765_v49, %v4940_v46  ;;  %v4765_v32 = vpop.f32.mrf.mxu0  ;;  %v4910_v17 = vpop.f32.mrf.mxu1  ;;  %v4926_v22 = vadd.f32 %v6922_v7, %v4668_v34  ;;  %v8769_v34 = vld [vmem:[#allocation6_spill] sm:$0xff] }
 0x1f3   : > { %v4939_v15 = vmax.f32 %v4778_v39, %v4923_v40  ;;  %v4780_v55 = vadd.f32 %v4765_v32, %v4522_v28  ;;  %v4925_v57 = vadd.f32 %v4910_v17, %v4667_v3  ;;  %v4979_v13 = vsel %vm392_vm1, %v4961_v1, 0.0  ;;  %v8773_v28 = vld [vmem:[#allocation13_spill] sm:$0xff] }
 0x1f4   : > { %4968 = vst.msk [vmem:[%s8551_s24 + $0x10] sm:$0xff] %vm392_vm1, %v4960_v48  ;;  %v4977_v53 = vsel %vm392_vm1, %v4960_v48, 0.0  ;;  %v4997_v10 = vmul.f32 %v4960_v48, %v4960_v48  ;;  %v4963_v38 = vadd.f32 %v8540_v14, %v4948_v19  ;;  %v8587_v37 = vpop.f32.mrf.mxu0  ;;  %v8589_v27 = vpop.f32.mrf.mxu1  ;;  %v4942_v5 = vmax.f32 %v4781_v31, %v4926_v22 }
 0x1f5   : > { %v4978_v23 = vadd.f32 %v4977_v53, %v4976_v58  ;;  %v4947_v29 = vmax.f32 %v8768_v12, %v4939_v15  ;;  %v4941_v16 = vmax.f32 %v4780_v55, %v4925_v57  ;;  %v8771_v51 = vmax.f32 %v8769_v34, %v8770_v2 }
 0x1f6   : > { %v5006_v60 = vsel %vm392_vm1, %v4997_v10, 0.0  ;;  %4971 = vst.msk [vmem:[%s8551_s24 + $0x28] sm:$0xff] %vm392_vm1, %v4963_v38  ;;  %v8598_v62 = vpop.f32.mrf.mxu0  ;;  %v8600_v25 = vpop.f32.mrf.mxu1  ;;  %v5008_v52 = vsel %vm392_vm1, %v4998_v36, 0.0  ;;  %v5000_v44 = vmul.f32 %v4963_v38, %v4963_v38  ;;  %v8774_v56 = vmax.f32 %v8772_v63, %v8773_v28 }
 0x1f7   : > { %v5007_v30 = vadd.f32 %v5006_v60, %v5005_v21  ;;  %v4962_v42 = vadd.f32 %v8540_v14, %v4947_v29  ;;  %v4980_v6 = vadd.f32 %v4979_v13, %v4978_v23  ;;  %v4950_v41 = vmax.f32 %v8771_v51, %v4942_v5  ;;  %v8656_v5 = vld [vmem:[%s8720_s5] ss:$0 sm:$0xff] }
 0x1f8   : > { %v4949_v35 = vmax.f32 %v8774_v56, %v4941_v16  ;;  %v8610_v59 = vpop.f32.mrf.mxu0  ;;  %v8612_v24 = vpop.f32.mrf.mxu1  ;;  %v4983_v61 = vsel %vm392_vm1, %v4963_v38, 0.0  ;;  %v5012_v47 = vsel %vm392_vm1, %v5000_v44, 0.0 }
 0x1f9   : > { %4970 = vst.msk [vmem:[%s8551_s24 + $0x20] sm:$0xff] %vm392_vm1, %v4962_v42  ;;  %v4981_v50 = vsel %vm392_vm1, %v4962_v42, 0.0  ;;  %v4999_v20 = vmul.f32 %v4962_v42, %v4962_v42  ;;  %v5009_v9 = vadd.f32 %v5008_v52, %v5007_v30  ;;  %v4965_v8 = vadd.f32 %v8540_v14, %v4950_v41 }
 0x1fa   : > { %v4982_v1 = vadd.f32 %v4981_v50, %v4980_v6  ;;  %v4964_v58 = vadd.f32 %v8540_v14, %v4949_v35  ;;  %v8619_v54 = vpop.f32.mrf.mxu0  ;;  %v8621_v0 = vpop.f32.mrf.mxu1 }
 0x1fb   : > { %v5010_v43 = vsel %vm392_vm1, %v4999_v20, 0.0  ;;  %4973 = vst.msk [vmem:[%s8551_s24 + $0x38] sm:$0xff] %vm392_vm1, %v4965_v8  ;;  %v5002_v45 = vmul.f32 %v4965_v8, %v4965_v8  ;;  %v4987_v49 = vsel %vm392_vm1, %v4965_v8, 0.0 }
 0x1fc   : > { %v5011_v46 = vadd.f32 %v5010_v43, %v5009_v9  ;;  %4972 = vst.msk [vmem:[%s8551_s24 + $0x30] sm:$0xff] %vm392_vm1, %v4964_v58  ;;  %v4984_v39 = vadd.f32 %v4983_v61, %v4982_v1  ;;  %v4985_v4 = vsel %vm392_vm1, %v4964_v58, 0.0  ;;  %v5001_v7 = vmul.f32 %v4964_v58, %v4964_v58  ;;  %v8630_v3 = vpop.f32.mrf.mxu0  ;;  %v8632_v14 = vpop.f32.mrf.mxu1 }
 0x1fd   : > { %v5016_v36 = vsel %vm392_vm1, %v5002_v45, 0.0 }
 0x1fe   : > { %v4986_v40 = vadd.f32 %v4985_v4, %v4984_v39  ;;  %v5013_v21 = vadd.f32 %v5012_v47, %v5011_v46  ;;  %v5014_v48 = vsel %vm392_vm1, %v5001_v7, 0.0  ;;  %v8636_v26 = vpop.f32.mrf.mxu0  ;;  %v8638_v11 = vpop.f32.mrf.mxu1 }
 0x200   : > { %v4988_v19 = vadd.f32 %v4987_v49, %v4986_v40  ;;  %v5015_v31 = vadd.f32 %v5014_v48, %v5013_v21  ;;  %v8641_v32 = vpop.f32.mrf.mxu0  ;;  %v8643_v17 = vpop.f32.mrf.mxu1 }
 0x202   : > { %v4989_v15 = vrot.slane %v4988_v19, 4  ;;  %v5017_v22 = vadd.f32 %v5016_v36, %v5015_v31  ;;  %v8646_v55 = vpop.f32.mrf.mxu0  ;;  %v8648_v53 = vpop.f32.mrf.mxu1 }
 0x204   : > { %v4990_v10 = vadd.f32 %v4989_v15, %v4988_v19  ;;  %v5018_v38 = vrot.slane %v5017_v22, 4  ;;  %v6939_v57 = vpop.f32.mrf.mxu0  ;;  %v6963_v23 = vpop.f32.mrf.mxu1 }
 0x205   : > { %v5387_v33 = vmax.f32 %v8587_v37, %v6939_v57  ;;  %v5395_v18 = vmax.f32 %v8589_v27, %v6963_v23 }
 0x206   : > { %v4991_v12 = vrot.slane %v4990_v10, 2  ;;  %v5019_v29 = vadd.f32 %v5018_v38, %v5017_v22  ;;  %v5267_v13 = vpop.f32.mrf.mxu0  ;;  %v5347_v60 = vpop.f32.mrf.mxu1 }
 0x207   : > { %v5403_v16 = vmax.f32 %v5387_v33, %v5395_v18  ;;  %v5386_v30 = vmax.f32 %v8598_v62, %v5267_v13  ;;  %v5394_v42 = vmax.f32 %v8600_v25, %v5347_v60 }
 0x208   : > { %v4992_v6 = vadd.f32 %v4991_v12, %v4990_v10  ;;  %v5020_v37 = vrot.slane %v5019_v29, 2  ;;  %v6942_v27 = vpop.f32.mrf.mxu0  ;;  %v6966_v34 = vpop.f32.mrf.mxu1 }
 0x209   : > { %v5418_v2 = vadd.f32 %v8656_v5, %v5403_v16  ;;  %v5402_v51 = vmax.f32 %v5386_v30, %v5394_v42  ;;  %v5389_v62 = vmax.f32 %v8610_v59, %v6942_v27  ;;  %v5397_v25 = vmax.f32 %v8612_v24, %v6966_v34 }
 0x20a   : > { %v4993_v41 = vrot.slane %v4992_v6, 1  ;;  %v5021_v52 = vadd.f32 %v5020_v37, %v5019_v29  ;;  %v5277_v44 = vpop.f32.mrf.mxu0  ;;  %v5357_v63 = vpop.f32.mrf.mxu1 }
 0x20b   : > { %5427 = vst.msk [vmem:[%s8668_s9 + $0x8] sm:$0xff] %vm5425_vm2, %v5418_v2  ;;  %v5417_v28 = vadd.f32 %v8656_v5, %v5402_v51  ;;  %v5405_v56 = vmax.f32 %v5389_v62, %v5397_v25  ;;  %v5388_v35 = vmax.f32 %v8619_v54, %v5277_v44  ;;  %v5396_v50 = vmax.f32 %v8621_v0, %v5357_v63 }
 0x20c   : > { %v5022_v20 = vrot.slane %v5021_v52, 1  ;;  %v6945_v59 = vpop.f32.mrf.mxu0  ;;  %v6969_v9 = vpop.f32.mrf.mxu1  ;;  %v4994_v61 = vadd.f32 %v4993_v41, %v4992_v6 }
 0x20d   : > { %5426 = vst.msk [vmem:[%s8668_s9] sm:$0xff] %vm5425_vm2, %v5417_v28  ;;  %v5420_v24 = vadd.f32 %v8656_v5, %v5405_v56  ;;  %v5404_v8 = vmax.f32 %v5388_v35, %v5396_v50  ;;  %v5391_v1 = vmax.f32 %v8630_v3, %v6945_v59  ;;  %v5399_v58 = vmax.f32 %v8632_v14, %v6969_v9 }
 0x20e   : > { %v5023_v54 = vadd.f32 %v5022_v20, %v5021_v52  ;;  %v5287_v0 = vpop.f32.mrf.mxu0  ;;  %v5367_v43 = vpop.f32.mrf.mxu1 }
 0x20f   : > { %5429 = vst.msk [vmem:[%s8668_s9 + $0x18] sm:$0xff] %vm5425_vm2, %v5420_v24  ;;  %v5419_v46 = vadd.f32 %v8656_v5, %v5404_v8  ;;  %v5407_v39 = vmax.f32 %v5391_v1, %v5399_v58  ;;  %v5390_v4 = vmax.f32 %v8636_v26, %v5287_v0  ;;  %v5398_v7 = vmax.f32 %v8638_v11, %v5367_v43 }
 0x210   : > { %v5025_v3 = vsel %vm5024_vm3, %v4994_v61, %v5023_v54  ;;  %v6948_v14 = vpop.f32.mrf.mxu0  ;;  %v6972_v47 = vpop.f32.mrf.mxu1 }
 0x211   : > { %v5027_v45 = vsel %vm5026_vm4, %v5025_v3, 0.0  ;;  %5428 = vst.msk [vmem:[%s8668_s9 + $0x10] sm:$0xff] %vm5425_vm2, %v5419_v46  ;;  %v5422_v40 = vadd.f32 %v8656_v5, %v5407_v39  ;;  %v5406_v21 = vmax.f32 %v5390_v4, %v5398_v7  ;;  %v5393_v48 = vmax.f32 %v8641_v32, %v6948_v14 }
 0x212   : > { %5028 = vst.msk [vmem:[%s357_s12] sm:$0xff] %vm392_vm1, %v5027_v45  ;;  %v5401_v26 = vmax.f32 %v8643_v17, %v6972_v47  ;;  %v5297_v11 = vpop.f32.mrf.mxu0  ;;  %v5377_v49 = vpop.f32.mrf.mxu1 }
 0x213   : > { %5431 = vst.msk [vmem:[%s8668_s9 + $0x28] sm:$0xff] %vm5425_vm2, %v5422_v40  ;;  %v5421_v19 = vadd.f32 %v8656_v5, %v5406_v21  ;;  %v5392_v31 = vmax.f32 %v8646_v55, %v5297_v11  ;;  %v5400_v36 = vmax.f32 %v8648_v53, %v5377_v49 }
 0x214   : > { %v5409_v15 = vmax.f32 %v5393_v48, %v5401_v26 }
 0x215   : > { %5430 = vst.msk [vmem:[%s8668_s9 + $0x20] sm:$0xff] %vm5425_vm2, %v5421_v19  ;;  %v5408_v22 = vmax.f32 %v5392_v31, %v5400_v36 }
 0x216   : > { %v5424_v32 = vadd.f32 %v8656_v5, %v5409_v15 }
 0x217   : > { %v5423_v10 = vadd.f32 %v8656_v5, %v5408_v22 }
 0x218   : > { %5433 = vst.msk [vmem:[%s8668_s9 + $0x38] sm:$0xff] %vm5425_vm2, %v5424_v32 }
 0x219   : > { %5432 = vst.msk [vmem:[%s8668_s9 + $0x30] sm:$0xff] %vm5425_vm2, %v5423_v10 }
 0x21a PF: > { %s19_s27 = sadd.s32 1, %s6990_s27  }
 0x21b   : > { %p16_p7 = scmp.ge.s32.totalorder %s19_s27, 4  }
 0x21d   :  { %18 = sbr.rel (!%p16_p7) target bundleno = 1 (0x1), region = 116 }

</bundles_post_ra>
